<compile_context>
chip_gen: v7x
topology: tpu7x:2x2x1
jax: 0.10.0
libtpu: 0.0.40
codegen_flags: <defaults>
</compile_context>

<pallas_src>
import numpy as np
import jax
import jax.numpy as jnp
from jax import lax
from jax.experimental import pallas as pl
from jax.experimental.pallas import tpu as pltpu

WINDOW = 256          # window_size: 32 channels * 8 positions == linear1 in-features (256)
N_CHANNELS = 3
LATENT = 100
BN_EPS = 1e-5
OUT_COLS = 256        # lane-dense kernel output: [mu (100) | std (100) | zero pad (56)]
LANE = 128

# (C_in, C_out, L_out) of the three Conv1d(kernel=3, stride=2, padding=1) layers.
_LAYERS = ((3, 8, 128), (8, 16, 64), (16, 32, 16))


# ----------------------------------------------------------------------------
# Packed-parameter layout, shared by the host-side packer and the kernel.
# ----------------------------------------------------------------------------
def _align(n, a=LANE):
    return -(-n // a) * a


def _layout(batch):
    """Static placement (slab id, rows, (col0, col1)) of every logical parameter.

    Every region starts at a 128-aligned column so all in-kernel ref slices are
    lane-tile aligned (no relayout on load).
    """
    B = batch
    lay, off = {}, {}

    def add(slab, name, rows, cols):
        o = off.get(slab, 0)
        lay[name] = (slab, rows, (o, o + cols))
        off[slab] = _align(o + cols)

    # slab A: conv1 position taps | linear1 weight^T
    for k in range(3):
        add("A", f"taps1_{k}", WINDOW, WINDOW // 2)
    add("A", "w1t", 256, 128)
    # slab B: conv2 position taps | fused (and zero-padded) linear2/linear3 weight^T
    for k in range(3):
        add("B", f"taps2_{k}", 128, 64)
    add("B", "w23", 128, OUT_COLS)
    # slab C: pool1 / conv3 / pool2 position taps (batch independent)
    for k in range(3):
        add("C", f"pool1_{k}", 64, 32)
    for k in range(3):
        add("C", f"taps3_{k}", 32, 16)
    for k in range(3):
        add("C", f"pool2_{k}", 16, 8)
    # slab M: per-conv channel-mix kron blocks, BN batch-average matrix, (bias|gamma|beta)
    for i, (cin, cout, _) in enumerate(_LAYERS, 1):
        for k in range(3):
            add("M", f"mix{i}_{k}", cout * B, cin * B)
        add("M", f"g{i}", cout * B, cout * B)
        add("M", f"col{i}", cout * B, 3)
    # slab V: linear biases
    add("V", "lb1", 1, 128)
    add("V", "lb23", 1, OUT_COLS)
    return lay


# ----------------------------------------------------------------------------
# Host-side (numpy) construction of the small structural / packed matrices.
# ----------------------------------------------------------------------------
def _tap_matrices(l_in):
    """Three [L_in, L_out] 0/1 gather matrices (kernel=3, stride=2, padding=1)."""
    l_out = l_in // 2
    mats = []
    for k in range(3):
        m = np.zeros((l_in, l_out), np.float32)
        for l in range(l_out):
            p = 2 * l + k - 1
            if 0 <= p < l_in:
                m[p, l] = 1.0
        mats.append(m)
    return mats


def _mix_matrices(w, batch):
    """Conv weight [C_out, C_in, 3] -> three [C_out*B, C_in*B] kron(W_k, I_B) blocks."""
    eye = np.eye(batch, dtype=np.float32)
    return [np.kron(np.asarray(w[:, :, k], np.float32), eye) for k in range(3)]


def _bn_avg_matrix(channels, batch, l_out):
    """[C*B, C*B] per-channel averaging matrix over (batch, length)."""
    g = np.kron(np.eye(channels, dtype=np.float32), np.ones((batch, batch), np.float32))
    return (g / float(batch * l_out)).astype(np.float32)


def _col_params(bias, gamma, beta, batch):
    """[C*B, 3] column params: conv bias, BN gamma, BN beta (repeated over batch)."""
    return np.stack([np.repeat(bias, batch),
                     np.repeat(gamma, batch),
                     np.repeat(beta, batch)], axis=1).astype(np.float32)


def init_params(key):
    """Synthetic (deterministic) torch-layout parameters for the encoder."""
    ks = jax.random.split(key, 18)

    def nrm(k, shape, scale=0.1):
        return np.asarray(jax.random.normal(k, shape, jnp.float32)) * np.float32(scale)

    cw1, cb1 = nrm(ks[0], (8, N_CHANNELS, 3)), nrm(ks[1], (8,))
    cw2, cb2 = nrm(ks[2], (16, 8, 3)), nrm(ks[3], (16,))
    cw3, cb3 = nrm(ks[4], (32, 16, 3)), nrm(ks[5], (32,))
    bg1, bb1 = np.float32(1.0) + nrm(ks[6], (8,)), nrm(ks[7], (8,))
    bg2, bb2 = np.float32(1.0) + nrm(ks[8], (16,)), nrm(ks[9], (16,))
    bg3, bb3 = np.float32(1.0) + nrm(ks[10], (32,)), nrm(ks[11], (32,))
    lw1, lb1 = nrm(ks[12], (128, 256)), nrm(ks[13], (128,))
    lw2, lb2 = nrm(ks[14], (LATENT, 128)), nrm(ks[15], (LATENT,))
    lw3, lb3 = nrm(ks[16], (LATENT, 128)), nrm(ks[17], (LATENT,))
    return (cw1, cb1, bg1, bb1, cw2, cb2, bg2, bb2, cw3, cb3, bg3, bb3,
            lw1, lb1, lw2, lb2, lw3, lb3)


def pack_params(params, batch):
    """Pack everything into 5 contiguous f32 slabs (done once, outside the hot path)."""
    (cw1, cb1, bg1, bb1, cw2, cb2, bg2, bb2, cw3, cb3, bg3, bb3,
     lw1, lb1, lw2, lb2, lw3, lb3) = [np.asarray(p, np.float32) for p in params]
    lay = _layout(batch)

    shapes = {}
    for s, rows, (_, c1) in lay.values():
        r, c = shapes.get(s, (0, 0))
        shapes[s] = (max(r, rows), max(c, c1))
    slabs = {s: np.zeros(sh, np.float32) for s, sh in shapes.items()}

    def put(name, arr):
        s, rows, (c0, c1) = lay[name]
        arr = np.asarray(arr, np.float32)
        assert arr.shape == (rows, c1 - c0), (name, arr.shape, (rows, c1 - c0))
        slabs[s][0:rows, c0:c1] = arr

    for k, m in enumerate(_tap_matrices(WINDOW)):
        put(f"taps1_{k}", m)
    for k, m in enumerate(_tap_matrices(128)):
        put(f"taps2_{k}", m)
    for k, m in enumerate(_tap_matrices(64)):
        put(f"pool1_{k}", m)
    for k, m in enumerate(_tap_matrices(32)):
        put(f"taps3_{k}", m)
    for k, m in enumerate(_tap_matrices(16)):
        put(f"pool2_{k}", m)

    put("w1t", lw1.T)
    pad_w = np.zeros((128, OUT_COLS - 2 * LATENT), np.float32)
    put("w23", np.concatenate([lw2.T, lw3.T, pad_w], axis=1))
    put("lb1", lb1[None, :])
    pad_b = np.zeros((OUT_COLS - 2 * LATENT,), np.float32)
    put("lb23", np.concatenate([lb2, lb3, pad_b])[None, :])

    convs = ((cw1, cb1, bg1, bb1), (cw2, cb2, bg2, bb2), (cw3, cb3, bg3, bb3))
    for i, ((cin, cout, lout), (cw, cb, bg, bb)) in enumerate(zip(_LAYERS, convs), 1):
        for k, m in enumerate(_mix_matrices(cw, batch)):
            put(f"mix{i}_{k}", m)
        put(f"g{i}", _bn_avg_matrix(cout, batch, lout))
        put(f"col{i}", _col_params(cb, bg, bb, batch))

    return tuple(jnp.asarray(slabs[s]) for s in ("A", "B", "C", "M", "V"))


# ----------------------------------------------------------------------------
# The Pallas kernel: whole encoder forward, everything resident in VMEM.
# ----------------------------------------------------------------------------
def _encoder_kernel(h_ref, a_ref, b_ref, c_ref, m_ref, v_ref, out_ref):
    f32 = jnp.float32
    batch = h_ref.shape[0] // N_CHANNELS
    lay = _layout(batch)
    refs = {"A": a_ref, "B": b_ref, "C": c_ref, "M": m_ref, "V": v_ref}

    def get(name):
        s, rows, (c0, c1) = lay[name]
        return refs[s][0:rows, c0:c1]

    def conv_bn(h, i):
        # h: [C_in*B, L_in] -> [C_out*B, L_out]
        col = get(f"col{i}")                                              # [CoutB, 3]
        y = None
        for k in range(3):
            z = jnp.dot(h, get(f"taps{i}_{k}"), preferred_element_type=f32)   # position gather
            yk = jnp.dot(get(f"mix{i}_{k}"), z, preferred_element_type=f32)   # channel mix
            y = yk if y is None else y + yk
        y = y + col[:, 0:1]                                               # conv bias
        # BatchNorm1d, training mode: per-channel stats over (batch, length),
        # two-pass (centered) biased variance, gamma folded into one scale.
        g = get(f"g{i}")
        mean = jnp.dot(g, jnp.sum(y, axis=1, keepdims=True), preferred_element_type=f32)
        cent = y - mean
        var = jnp.dot(g, jnp.sum(cent * cent, axis=1, keepdims=True),
                      preferred_element_type=f32)
        scale = col[:, 1:2] * lax.rsqrt(var + BN_EPS)
        return cent * scale + col[:, 2:3]

    def maxpool(h, i):
        # h >= 0 (post-ReLU), so zero-filled out-of-range taps never win the max.
        t = jnp.dot(h, get(f"pool{i}_0"), preferred_element_type=f32)
        t = jnp.maximum(t, jnp.dot(h, get(f"pool{i}_1"), preferred_element_type=f32))
        return jnp.maximum(t, jnp.dot(h, get(f"pool{i}_2"), preferred_element_type=f32))

    h = h_ref[...]                                                        # [3B, 256]
    h = conv_bn(h, 1)                                                     # [8B, 128]
    h = conv_bn(h, 2)                                                     # [16B, 64]
    h = jnp.maximum(h, 0.0)                                               # relu
    h = maxpool(h, 1)                                                     # [16B, 32]
    h = conv_bn(h, 3)                                                     # [32B, 16]
    h = jnp.maximum(h, 0.0)                                               # relu
    h = maxpool(h, 2)                                                     # [32B, 8]

    # torch.flatten(NCW, start_dim=1): channel-major lanes -> [B, 256]
    c3 = _LAYERS[-1][1]
    flat = jnp.concatenate([h[c * batch:(c + 1) * batch, :] for c in range(c3)], axis=1)

    h1 = jnp.dot(flat, get("w1t"), preferred_element_type=f32) + get("lb1")    # linear1: [B,128]
    y23 = jnp.dot(h1, get("w23"), preferred_element_type=f32) + get("lb23")    # linear2|linear3|pad

    # One lane-dense [B, 256] store: [mu | exp(0.5*log_var) | 0].
    lane = lax.broadcasted_iota(jnp.int32, (batch, OUT_COLS), 1)
    out_ref[...] = jnp.where(lane < LATENT, y23,
                             jnp.where(lane < 2 * LATENT, jnp.exp(0.5 * y23),
                                       jnp.zeros_like(y23)))


# ----------------------------------------------------------------------------
# Wrapper
# ----------------------------------------------------------------------------
@jax.jit
def encoder_forward(x, slabs):
    b = x.shape[0]
    x1 = x[:, :, 0, :]                                                    # [B, C, W]
    # rows = (channel, batch), lanes = position
    h0 = jnp.transpose(x1, (1, 0, 2)).reshape(N_CHANNELS * b, WINDOW).astype(jnp.float32)
    vmem = pl.BlockSpec(memory_space=pltpu.MemorySpace.VMEM)
    out = pl.pallas_call(
        _encoder_kernel,
        out_shape=jax.ShapeDtypeStruct((b, OUT_COLS), jnp.float32),
        in_specs=[vmem] * (1 + len(slabs)),
        out_specs=vmem,
        compiler_params=pltpu.CompilerParams(
            vmem_limit_bytes=16 * 1024 * 1024),   # footprint ~1.6 MB; safe on v5e/v6e/v7x
    )(h0, *slabs)
    mu = out[:, 0:LATENT]
    std = out[:, LATENT:2 * LATENT]
    # torch: eps = torch.randn_like(std) is dead code; sample = mu[:, :, None, None]
    sample = mu[:, :, None, None]
    return sample, std


# ----------------------------------------------------------------------------
# Pure-JAX reference (for correctness checking only)
# ----------------------------------------------------------------------------
def _reference_forward(x, params):
    (cw1, cb1, bg1, bb1, cw2, cb2, bg2, bb2, cw3, cb3, bg3, bb3,
     lw1, lb1, lw2, lb2, lw3, lb3) = [jnp.asarray(p, jnp.float32) for p in params]
    hi = jax.lax.Precision.HIGHEST

    def conv(h, w, b):
        l = h.shape[2]
        hp = jnp.pad(h, ((0, 0), (0, 0), (1, 1)))
        cols = jnp.stack([hp[:, :, k:k + l:2] for k in range(3)], axis=-1)   # [B,C,Lout,3]
        return jnp.einsum('bclk,ock->bol', cols, w, precision=hi) + b[None, :, None]

    def bn(h, gamma, beta):
        mean = jnp.mean(h, axis=(0, 2), keepdims=True)
        var = jnp.mean((h - mean) ** 2, axis=(0, 2), keepdims=True)
        return (h - mean) * jax.lax.rsqrt(var + BN_EPS) * gamma[None, :, None] + beta[None, :, None]

    def pool(h):
        l = h.shape[2]
        hp = jnp.pad(h, ((0, 0), (0, 0), (1, 1)), constant_values=-jnp.inf)
        return jnp.maximum(jnp.maximum(hp[:, :, 0:l:2], hp[:, :, 1:l + 1:2]), hp[:, :, 2:l + 2:2])

    h = x[:, :, 0, :]
    h = bn(conv(h, cw1, cb1), bg1, bb1)
    h = bn(conv(h, cw2, cb2), bg2, bb2)
    h = pool(jax.nn.relu(h))
    h = bn(conv(h, cw3, cb3), bg3, bb3)
    h = pool(jax.nn.relu(h))
    flat = h.reshape(h.shape[0], -1)
    h1 = jnp.dot(flat, lw1.T, precision=hi) + lb1
    mu = jnp.dot(h1, lw2.T, precision=hi) + lb2
    std = jnp.exp(0.5 * (jnp.dot(h1, lw3.T, precision=hi) + lb3))
    return mu, std


if __name__ == "__main__":
    key = jax.random.PRNGKey(0)
    pkey, xkey = jax.random.split(key)
    params = init_params(pkey)

    batch = 2
    slabs = pack_params(params, batch)
    x = jax.random.normal(xkey, (batch, N_CHANNELS, 1, WINDOW), jnp.float32)

    sample, std = encoder_forward(x, slabs)
    jax.block_until_ready((sample, std))
    assert sample.shape == (batch, LATENT, 1, 1)
    assert std.shape == (batch, LATENT)

    # correctness check against a pure-JAX reference of the torch forward pass
    mu_ref, std_ref = jax.jit(_reference_forward)(x, params)
    err_mu = float(jnp.max(jnp.abs(sample[:, :, 0, 0] - mu_ref)))
    err_std = float(jnp.max(jnp.abs(std - std_ref)))
    assert err_mu < 2e-3 and err_std < 2e-3, (err_mu, err_std)

    print("KERNEL_OK")
</pallas_src>

<mosaic_0001>
module attributes {stable_mosaic.version = 11 : i64} {
  func.func @_encoder_kernel(%arg0: memref<6x256xf32, #tpu.memory_space<vmem>>, %arg1: memref<256x512xf32, #tpu.memory_space<vmem>>, %arg2: memref<128x640xf32, #tpu.memory_space<vmem>>, %arg3: memref<64x1032xf32, #tpu.memory_space<vmem>>, %arg4: memref<64x1795xf32, #tpu.memory_space<vmem>>, %arg5: memref<1x384xf32, #tpu.memory_space<vmem>>, %arg6: memref<2x256xf32, #tpu.memory_space<vmem>>) attributes {dimension_semantics = [], scalar_prefetch = 0 : i64, scratch_operands = 0 : i64, tpu.core_type = #tpu.core_type<tc>} {
    %c0 = arith.constant 0 : index
    %c0_0 = arith.constant 0 : index
    %0 = vector.load %arg0[%c0, %c0_0] : memref<6x256xf32, #tpu.memory_space<vmem>>, vector<6x256xf32>
    %c0_1 = arith.constant 0 : index
    %c512 = arith.constant 512 : index
    %1 = vector.load %arg4[%c0_1, %c512] : memref<64x1795xf32, #tpu.memory_space<vmem>>, vector<16x3xf32>
    %c0_2 = arith.constant 0 : index
    %c0_3 = arith.constant 0 : index
    %2 = vector.load %arg1[%c0_2, %c0_3] : memref<256x512xf32, #tpu.memory_space<vmem>>, vector<256x128xf32>
    %cst = arith.constant dense<0.000000e+00> : vector<6x128xf32>
    %3 = tpu.matmul %0, %2, %cst {dimension_numbers = #tpu.dot_dimension_numbers<[1], [0], [0], [1], [0, 0, 1, 1], [], []>} : vector<6x256xf32>, vector<256x128xf32>, vector<6x128xf32> -> vector<6x128xf32>
    %c0_4 = arith.constant 0 : index
    %c0_5 = arith.constant 0 : index
    %4 = vector.load %arg4[%c0_4, %c0_5] : memref<64x1795xf32, #tpu.memory_space<vmem>>, vector<16x6xf32>
    %cst_6 = arith.constant dense<0.000000e+00> : vector<16x128xf32>
    %5 = tpu.matmul %4, %3, %cst_6 {dimension_numbers = #tpu.dot_dimension_numbers<[1], [0], [0], [1], [0, 0, 1, 1], [], []>} : vector<16x6xf32>, vector<6x128xf32>, vector<16x128xf32> -> vector<16x128xf32>
    %c0_7 = arith.constant 0 : index
    %c128 = arith.constant 128 : index
    %6 = vector.load %arg1[%c0_7, %c128] : memref<256x512xf32, #tpu.memory_space<vmem>>, vector<256x128xf32>
    %cst_8 = arith.constant dense<0.000000e+00> : vector<6x128xf32>
    %7 = tpu.matmul %0, %6, %cst_8 {dimension_numbers = #tpu.dot_dimension_numbers<[1], [0], [0], [1], [0, 0, 1, 1], [], []>} : vector<6x256xf32>, vector<256x128xf32>, vector<6x128xf32> -> vector<6x128xf32>
    %c0_9 = arith.constant 0 : index
    %c128_10 = arith.constant 128 : index
    %8 = vector.load %arg4[%c0_9, %c128_10] : memref<64x1795xf32, #tpu.memory_space<vmem>>, vector<16x6xf32>
    %cst_11 = arith.constant dense<0.000000e+00> : vector<16x128xf32>
    %9 = tpu.matmul %8, %7, %cst_11 {dimension_numbers = #tpu.dot_dimension_numbers<[1], [0], [0], [1], [0, 0, 1, 1], [], []>} : vector<16x6xf32>, vector<6x128xf32>, vector<16x128xf32> -> vector<16x128xf32>
    %10 = arith.addf %5, %9 : vector<16x128xf32>
    %c0_12 = arith.constant 0 : index
    %c256 = arith.constant 256 : index
    %11 = vector.load %arg1[%c0_12, %c256] : memref<256x512xf32, #tpu.memory_space<vmem>>, vector<256x128xf32>
    %cst_13 = arith.constant dense<0.000000e+00> : vector<6x128xf32>
    %12 = tpu.matmul %0, %11, %cst_13 {dimension_numbers = #tpu.dot_dimension_numbers<[1], [0], [0], [1], [0, 0, 1, 1], [], []>} : vector<6x256xf32>, vector<256x128xf32>, vector<6x128xf32> -> vector<6x128xf32>
    %c0_14 = arith.constant 0 : index
    %c256_15 = arith.constant 256 : index
    %13 = vector.load %arg4[%c0_14, %c256_15] : memref<64x1795xf32, #tpu.memory_space<vmem>>, vector<16x6xf32>
    %cst_16 = arith.constant dense<0.000000e+00> : vector<16x128xf32>
    %14 = tpu.matmul %13, %12, %cst_16 {dimension_numbers = #tpu.dot_dimension_numbers<[1], [0], [0], [1], [0, 0, 1, 1], [], []>} : vector<16x6xf32>, vector<6x128xf32>, vector<16x128xf32> -> vector<16x128xf32>
    %15 = arith.addf %10, %14 : vector<16x128xf32>
    %16 = vector.extract_strided_slice %1 {offsets = [0, 0], sizes = [16, 1], strides = [1, 1]} : vector<16x3xf32> to vector<16x1xf32>
    %17 = vector.broadcast %16 : vector<16x1xf32> to vector<16x128xf32>
    %18 = arith.addf %15, %17 : vector<16x128xf32>
    %c0_17 = arith.constant 0 : index
    %c384 = arith.constant 384 : index
    %19 = vector.load %arg4[%c0_17, %c384] : memref<64x1795xf32, #tpu.memory_space<vmem>>, vector<16x16xf32>
    %cst_18 = arith.constant dense<0.000000e+00> : vector<16xf32>
    %20 = vector.multi_reduction <add>, %18, %cst_18 [1] : vector<16x128xf32> to vector<16xf32>
    %21 = vector.shape_cast %20 : vector<16xf32> to vector<16x1xf32>
    %cst_19 = arith.constant dense<0.000000e+00> : vector<16x1xf32>
    %22 = tpu.matmul %19, %21, %cst_19 {dimension_numbers = #tpu.dot_dimension_numbers<[1], [0], [0], [1], [0, 0, 1, 1], [], []>} : vector<16x16xf32>, vector<16x1xf32>, vector<16x1xf32> -> vector<16x1xf32>
    %23 = vector.broadcast %22 : vector<16x1xf32> to vector<16x128xf32>
    %24 = arith.subf %18, %23 : vector<16x128xf32>
    %25 = arith.mulf %24, %24 : vector<16x128xf32>
    %cst_20 = arith.constant dense<0.000000e+00> : vector<16xf32>
    %26 = vector.multi_reduction <add>, %25, %cst_20 [1] : vector<16x128xf32> to vector<16xf32>
    %27 = vector.shape_cast %26 : vector<16xf32> to vector<16x1xf32>
    %cst_21 = arith.constant dense<0.000000e+00> : vector<16x1xf32>
    %28 = tpu.matmul %19, %27, %cst_21 {dimension_numbers = #tpu.dot_dimension_numbers<[1], [0], [0], [1], [0, 0, 1, 1], [], []>} : vector<16x16xf32>, vector<16x1xf32>, vector<16x1xf32> -> vector<16x1xf32>
    %29 = vector.extract_strided_slice %1 {offsets = [0, 1], sizes = [16, 1], strides = [1, 1]} : vector<16x3xf32> to vector<16x1xf32>
    %cst_22 = arith.constant 9.99999974E-6 : f32
    %30 = vector.broadcast %cst_22 : f32 to vector<16x1xf32>
    %31 = arith.addf %28, %30 : vector<16x1xf32>
    %32 = math.rsqrt %31 : vector<16x1xf32>
    %33 = arith.mulf %29, %32 : vector<16x1xf32>
    %34 = vector.broadcast %33 : vector<16x1xf32> to vector<16x128xf32>
    %35 = arith.mulf %24, %34 : vector<16x128xf32>
    %36 = vector.extract_strided_slice %1 {offsets = [0, 2], sizes = [16, 1], strides = [1, 1]} : vector<16x3xf32> to vector<16x1xf32>
    %37 = vector.broadcast %36 : vector<16x1xf32> to vector<16x128xf32>
    %38 = arith.addf %35, %37 : vector<16x128xf32>
    %c0_23 = arith.constant 0 : index
    %c1152 = arith.constant 1152 : index
    %39 = vector.load %arg4[%c0_23, %c1152] : memref<64x1795xf32, #tpu.memory_space<vmem>>, vector<32x3xf32>
    %c0_24 = arith.constant 0 : index
    %c0_25 = arith.constant 0 : index
    %40 = vector.load %arg2[%c0_24, %c0_25] : memref<128x640xf32, #tpu.memory_space<vmem>>, vector<128x64xf32>
    %cst_26 = arith.constant dense<0.000000e+00> : vector<16x64xf32>
    %41 = tpu.matmul %38, %40, %cst_26 {dimension_numbers = #tpu.dot_dimension_numbers<[1], [0], [0], [1], [0, 0, 1, 1], [], []>} : vector<16x128xf32>, vector<128x64xf32>, vector<16x64xf32> -> vector<16x64xf32>
    %c0_27 = arith.constant 0 : index
    %c640 = arith.constant 640 : index
    %42 = vector.load %arg4[%c0_27, %c640] : memref<64x1795xf32, #tpu.memory_space<vmem>>, vector<32x16xf32>
    %cst_28 = arith.constant dense<0.000000e+00> : vector<32x64xf32>
    %43 = tpu.matmul %42, %41, %cst_28 {dimension_numbers = #tpu.dot_dimension_numbers<[1], [0], [0], [1], [0, 0, 1, 1], [], []>} : vector<32x16xf32>, vector<16x64xf32>, vector<32x64xf32> -> vector<32x64xf32>
    %c0_29 = arith.constant 0 : index
    %c128_30 = arith.constant 128 : index
    %44 = vector.load %arg2[%c0_29, %c128_30] : memref<128x640xf32, #tpu.memory_space<vmem>>, vector<128x64xf32>
    %cst_31 = arith.constant dense<0.000000e+00> : vector<16x64xf32>
    %45 = tpu.matmul %38, %44, %cst_31 {dimension_numbers = #tpu.dot_dimension_numbers<[1], [0], [0], [1], [0, 0, 1, 1], [], []>} : vector<16x128xf32>, vector<128x64xf32>, vector<16x64xf32> -> vector<16x64xf32>
    %c0_32 = arith.constant 0 : index
    %c768 = arith.constant 768 : index
    %46 = vector.load %arg4[%c0_32, %c768] : memref<64x1795xf32, #tpu.memory_space<vmem>>, vector<32x16xf32>
    %cst_33 = arith.constant dense<0.000000e+00> : vector<32x64xf32>
    %47 = tpu.matmul %46, %45, %cst_33 {dimension_numbers = #tpu.dot_dimension_numbers<[1], [0], [0], [1], [0, 0, 1, 1], [], []>} : vector<32x16xf32>, vector<16x64xf32>, vector<32x64xf32> -> vector<32x64xf32>
    %48 = arith.addf %43, %47 : vector<32x64xf32>
    %c0_34 = arith.constant 0 : index
    %c256_35 = arith.constant 256 : index
    %49 = vector.load %arg2[%c0_34, %c256_35] : memref<128x640xf32, #tpu.memory_space<vmem>>, vector<128x64xf32>
    %cst_36 = arith.constant dense<0.000000e+00> : vector<16x64xf32>
    %50 = tpu.matmul %38, %49, %cst_36 {dimension_numbers = #tpu.dot_dimension_numbers<[1], [0], [0], [1], [0, 0, 1, 1], [], []>} : vector<16x128xf32>, vector<128x64xf32>, vector<16x64xf32> -> vector<16x64xf32>
    %c0_37 = arith.constant 0 : index
    %c896 = arith.constant 896 : index
    %51 = vector.load %arg4[%c0_37, %c896] : memref<64x1795xf32, #tpu.memory_space<vmem>>, vector<32x16xf32>
    %cst_38 = arith.constant dense<0.000000e+00> : vector<32x64xf32>
    %52 = tpu.matmul %51, %50, %cst_38 {dimension_numbers = #tpu.dot_dimension_numbers<[1], [0], [0], [1], [0, 0, 1, 1], [], []>} : vector<32x16xf32>, vector<16x64xf32>, vector<32x64xf32> -> vector<32x64xf32>
    %53 = arith.addf %48, %52 : vector<32x64xf32>
    %54 = vector.extract_strided_slice %39 {offsets = [0, 0], sizes = [32, 1], strides = [1, 1]} : vector<32x3xf32> to vector<32x1xf32>
    %55 = vector.broadcast %54 : vector<32x1xf32> to vector<32x64xf32>
    %56 = arith.addf %53, %55 : vector<32x64xf32>
    %c0_39 = arith.constant 0 : index
    %c1024 = arith.constant 1024 : index
    %57 = vector.load %arg4[%c0_39, %c1024] : memref<64x1795xf32, #tpu.memory_space<vmem>>, vector<32x32xf32>
    %cst_40 = arith.constant dense<0.000000e+00> : vector<32xf32>
    %58 = vector.multi_reduction <add>, %56, %cst_40 [1] : vector<32x64xf32> to vector<32xf32>
    %59 = vector.shape_cast %58 : vector<32xf32> to vector<32x1xf32>
    %cst_41 = arith.constant dense<0.000000e+00> : vector<32x1xf32>
    %60 = tpu.matmul %57, %59, %cst_41 {dimension_numbers = #tpu.dot_dimension_numbers<[1], [0], [0], [1], [0, 0, 1, 1], [], []>} : vector<32x32xf32>, vector<32x1xf32>, vector<32x1xf32> -> vector<32x1xf32>
    %61 = vector.broadcast %60 : vector<32x1xf32> to vector<32x64xf32>
    %62 = arith.subf %56, %61 : vector<32x64xf32>
    %63 = arith.mulf %62, %62 : vector<32x64xf32>
    %cst_42 = arith.constant dense<0.000000e+00> : vector<32xf32>
    %64 = vector.multi_reduction <add>, %63, %cst_42 [1] : vector<32x64xf32> to vector<32xf32>
    %65 = vector.shape_cast %64 : vector<32xf32> to vector<32x1xf32>
    %cst_43 = arith.constant dense<0.000000e+00> : vector<32x1xf32>
    %66 = tpu.matmul %57, %65, %cst_43 {dimension_numbers = #tpu.dot_dimension_numbers<[1], [0], [0], [1], [0, 0, 1, 1], [], []>} : vector<32x32xf32>, vector<32x1xf32>, vector<32x1xf32> -> vector<32x1xf32>
    %67 = vector.extract_strided_slice %39 {offsets = [0, 1], sizes = [32, 1], strides = [1, 1]} : vector<32x3xf32> to vector<32x1xf32>
    %cst_44 = arith.constant 9.99999974E-6 : f32
    %68 = vector.broadcast %cst_44 : f32 to vector<32x1xf32>
    %69 = arith.addf %66, %68 : vector<32x1xf32>
    %70 = math.rsqrt %69 : vector<32x1xf32>
    %71 = arith.mulf %67, %70 : vector<32x1xf32>
    %72 = vector.broadcast %71 : vector<32x1xf32> to vector<32x64xf32>
    %73 = arith.mulf %62, %72 : vector<32x64xf32>
    %74 = vector.extract_strided_slice %39 {offsets = [0, 2], sizes = [32, 1], strides = [1, 1]} : vector<32x3xf32> to vector<32x1xf32>
    %75 = vector.broadcast %74 : vector<32x1xf32> to vector<32x64xf32>
    %76 = arith.addf %73, %75 : vector<32x64xf32>
    %cst_45 = arith.constant 0.000000e+00 : f32
    %77 = vector.broadcast %cst_45 : f32 to vector<32x64xf32>
    %78 = arith.maximumf %76, %77 : vector<32x64xf32>
    %c0_46 = arith.constant 0 : index
    %c0_47 = arith.constant 0 : index
    %79 = vector.load %arg3[%c0_46, %c0_47] : memref<64x1032xf32, #tpu.memory_space<vmem>>, vector<64x32xf32>
    %cst_48 = arith.constant dense<0.000000e+00> : vector<32x32xf32>
    %80 = tpu.matmul %78, %79, %cst_48 {dimension_numbers = #tpu.dot_dimension_numbers<[1], [0], [0], [1], [0, 0, 1, 1], [], []>} : vector<32x64xf32>, vector<64x32xf32>, vector<32x32xf32> -> vector<32x32xf32>
    %c0_49 = arith.constant 0 : index
    %c128_50 = arith.constant 128 : index
    %81 = vector.load %arg3[%c0_49, %c128_50] : memref<64x1032xf32, #tpu.memory_space<vmem>>, vector<64x32xf32>
    %cst_51 = arith.constant dense<0.000000e+00> : vector<32x32xf32>
    %82 = tpu.matmul %78, %81, %cst_51 {dimension_numbers = #tpu.dot_dimension_numbers<[1], [0], [0], [1], [0, 0, 1, 1], [], []>} : vector<32x64xf32>, vector<64x32xf32>, vector<32x32xf32> -> vector<32x32xf32>
    %83 = arith.maximumf %80, %82 : vector<32x32xf32>
    %c0_52 = arith.constant 0 : index
    %c256_53 = arith.constant 256 : index
    %84 = vector.load %arg3[%c0_52, %c256_53] : memref<64x1032xf32, #tpu.memory_space<vmem>>, vector<64x32xf32>
    %cst_54 = arith.constant dense<0.000000e+00> : vector<32x32xf32>
    %85 = tpu.matmul %78, %84, %cst_54 {dimension_numbers = #tpu.dot_dimension_numbers<[1], [0], [0], [1], [0, 0, 1, 1], [], []>} : vector<32x64xf32>, vector<64x32xf32>, vector<32x32xf32> -> vector<32x32xf32>
    %86 = arith.maximumf %83, %85 : vector<32x32xf32>
    %c0_55 = arith.constant 0 : index
    %c1792 = arith.constant 1792 : index
    %87 = vector.load %arg4[%c0_55, %c1792] : memref<64x1795xf32, #tpu.memory_space<vmem>>, vector<64x3xf32>
    %c0_56 = arith.constant 0 : index
    %c384_57 = arith.constant 384 : index
    %88 = vector.load %arg3[%c0_56, %c384_57] : memref<64x1032xf32, #tpu.memory_space<vmem>>, vector<32x16xf32>
    %cst_58 = arith.constant dense<0.000000e+00> : vector<32x16xf32>
    %89 = tpu.matmul %86, %88, %cst_58 {dimension_numbers = #tpu.dot_dimension_numbers<[1], [0], [0], [1], [0, 0, 1, 1], [], []>} : vector<32x32xf32>, vector<32x16xf32>, vector<32x16xf32> -> vector<32x16xf32>
    %c0_59 = arith.constant 0 : index
    %c1280 = arith.constant 1280 : index
    %90 = vector.load %arg4[%c0_59, %c1280] : memref<64x1795xf32, #tpu.memory_space<vmem>>, vector<64x32xf32>
    %cst_60 = arith.constant dense<0.000000e+00> : vector<64x16xf32>
    %91 = tpu.matmul %90, %89, %cst_60 {dimension_numbers = #tpu.dot_dimension_numbers<[1], [0], [0], [1], [0, 0, 1, 1], [], []>} : vector<64x32xf32>, vector<32x16xf32>, vector<64x16xf32> -> vector<64x16xf32>
    %c0_61 = arith.constant 0 : index
    %c512_62 = arith.constant 512 : index
    %92 = vector.load %arg3[%c0_61, %c512_62] : memref<64x1032xf32, #tpu.memory_space<vmem>>, vector<32x16xf32>
    %cst_63 = arith.constant dense<0.000000e+00> : vector<32x16xf32>
    %93 = tpu.matmul %86, %92, %cst_63 {dimension_numbers = #tpu.dot_dimension_numbers<[1], [0], [0], [1], [0, 0, 1, 1], [], []>} : vector<32x32xf32>, vector<32x16xf32>, vector<32x16xf32> -> vector<32x16xf32>
    %c0_64 = arith.constant 0 : index
    %c1408 = arith.constant 1408 : index
    %94 = vector.load %arg4[%c0_64, %c1408] : memref<64x1795xf32, #tpu.memory_space<vmem>>, vector<64x32xf32>
    %cst_65 = arith.constant dense<0.000000e+00> : vector<64x16xf32>
    %95 = tpu.matmul %94, %93, %cst_65 {dimension_numbers = #tpu.dot_dimension_numbers<[1], [0], [0], [1], [0, 0, 1, 1], [], []>} : vector<64x32xf32>, vector<32x16xf32>, vector<64x16xf32> -> vector<64x16xf32>
    %96 = arith.addf %91, %95 : vector<64x16xf32>
    %c0_66 = arith.constant 0 : index
    %c640_67 = arith.constant 640 : index
    %97 = vector.load %arg3[%c0_66, %c640_67] : memref<64x1032xf32, #tpu.memory_space<vmem>>, vector<32x16xf32>
    %cst_68 = arith.constant dense<0.000000e+00> : vector<32x16xf32>
    %98 = tpu.matmul %86, %97, %cst_68 {dimension_numbers = #tpu.dot_dimension_numbers<[1], [0], [0], [1], [0, 0, 1, 1], [], []>} : vector<32x32xf32>, vector<32x16xf32>, vector<32x16xf32> -> vector<32x16xf32>
    %c0_69 = arith.constant 0 : index
    %c1536 = arith.constant 1536 : index
    %99 = vector.load %arg4[%c0_69, %c1536] : memref<64x1795xf32, #tpu.memory_space<vmem>>, vector<64x32xf32>
    %cst_70 = arith.constant dense<0.000000e+00> : vector<64x16xf32>
    %100 = tpu.matmul %99, %98, %cst_70 {dimension_numbers = #tpu.dot_dimension_numbers<[1], [0], [0], [1], [0, 0, 1, 1], [], []>} : vector<64x32xf32>, vector<32x16xf32>, vector<64x16xf32> -> vector<64x16xf32>
    %101 = arith.addf %96, %100 : vector<64x16xf32>
    %102 = vector.extract_strided_slice %87 {offsets = [0, 0], sizes = [64, 1], strides = [1, 1]} : vector<64x3xf32> to vector<64x1xf32>
    %103 = vector.broadcast %102 : vector<64x1xf32> to vector<64x16xf32>
    %104 = arith.addf %101, %103 : vector<64x16xf32>
    %c0_71 = arith.constant 0 : index
    %c1664 = arith.constant 1664 : index
    %105 = vector.load %arg4[%c0_71, %c1664] : memref<64x1795xf32, #tpu.memory_space<vmem>>, vector<64x64xf32>
    %cst_72 = arith.constant dense<0.000000e+00> : vector<64xf32>
    %106 = vector.multi_reduction <add>, %104, %cst_72 [1] : vector<64x16xf32> to vector<64xf32>
    %107 = vector.shape_cast %106 : vector<64xf32> to vector<64x1xf32>
    %cst_73 = arith.constant dense<0.000000e+00> : vector<64x1xf32>
    %108 = tpu.matmul %105, %107, %cst_73 {dimension_numbers = #tpu.dot_dimension_numbers<[1], [0], [0], [1], [0, 0, 1, 1], [], []>} : vector<64x64xf32>, vector<64x1xf32>, vector<64x1xf32> -> vector<64x1xf32>
    %109 = vector.broadcast %108 : vector<64x1xf32> to vector<64x16xf32>
    %110 = arith.subf %104, %109 : vector<64x16xf32>
    %111 = arith.mulf %110, %110 : vector<64x16xf32>
    %cst_74 = arith.constant dense<0.000000e+00> : vector<64xf32>
    %112 = vector.multi_reduction <add>, %111, %cst_74 [1] : vector<64x16xf32> to vector<64xf32>
    %113 = vector.shape_cast %112 : vector<64xf32> to vector<64x1xf32>
    %cst_75 = arith.constant dense<0.000000e+00> : vector<64x1xf32>
    %114 = tpu.matmul %105, %113, %cst_75 {dimension_numbers = #tpu.dot_dimension_numbers<[1], [0], [0], [1], [0, 0, 1, 1], [], []>} : vector<64x64xf32>, vector<64x1xf32>, vector<64x1xf32> -> vector<64x1xf32>
    %115 = vector.extract_strided_slice %87 {offsets = [0, 1], sizes = [64, 1], strides = [1, 1]} : vector<64x3xf32> to vector<64x1xf32>
    %cst_76 = arith.constant 9.99999974E-6 : f32
    %116 = vector.broadcast %cst_76 : f32 to vector<64x1xf32>
    %117 = arith.addf %114, %116 : vector<64x1xf32>
    %118 = math.rsqrt %117 : vector<64x1xf32>
    %119 = arith.mulf %115, %118 : vector<64x1xf32>
    %120 = vector.broadcast %119 : vector<64x1xf32> to vector<64x16xf32>
    %121 = arith.mulf %110, %120 : vector<64x16xf32>
    %122 = vector.extract_strided_slice %87 {offsets = [0, 2], sizes = [64, 1], strides = [1, 1]} : vector<64x3xf32> to vector<64x1xf32>
    %123 = vector.broadcast %122 : vector<64x1xf32> to vector<64x16xf32>
    %124 = arith.addf %121, %123 : vector<64x16xf32>
    %cst_77 = arith.constant 0.000000e+00 : f32
    %125 = vector.broadcast %cst_77 : f32 to vector<64x16xf32>
    %126 = arith.maximumf %124, %125 : vector<64x16xf32>
    %c0_78 = arith.constant 0 : index
    %c768_79 = arith.constant 768 : index
    %127 = vector.load %arg3[%c0_78, %c768_79] : memref<64x1032xf32, #tpu.memory_space<vmem>>, vector<16x8xf32>
    %cst_80 = arith.constant dense<0.000000e+00> : vector<64x8xf32>
    %128 = tpu.matmul %126, %127, %cst_80 {dimension_numbers = #tpu.dot_dimension_numbers<[1], [0], [0], [1], [0, 0, 1, 1], [], []>} : vector<64x16xf32>, vector<16x8xf32>, vector<64x8xf32> -> vector<64x8xf32>
    %c0_81 = arith.constant 0 : index
    %c896_82 = arith.constant 896 : index
    %129 = vector.load %arg3[%c0_81, %c896_82] : memref<64x1032xf32, #tpu.memory_space<vmem>>, vector<16x8xf32>
    %cst_83 = arith.constant dense<0.000000e+00> : vector<64x8xf32>
    %130 = tpu.matmul %126, %129, %cst_83 {dimension_numbers = #tpu.dot_dimension_numbers<[1], [0], [0], [1], [0, 0, 1, 1], [], []>} : vector<64x16xf32>, vector<16x8xf32>, vector<64x8xf32> -> vector<64x8xf32>
    %131 = arith.maximumf %128, %130 : vector<64x8xf32>
    %c0_84 = arith.constant 0 : index
    %c1024_85 = arith.constant 1024 : index
    %132 = vector.load %arg3[%c0_84, %c1024_85] : memref<64x1032xf32, #tpu.memory_space<vmem>>, vector<16x8xf32>
    %cst_86 = arith.constant dense<0.000000e+00> : vector<64x8xf32>
    %133 = tpu.matmul %126, %132, %cst_86 {dimension_numbers = #tpu.dot_dimension_numbers<[1], [0], [0], [1], [0, 0, 1, 1], [], []>} : vector<64x16xf32>, vector<16x8xf32>, vector<64x8xf32> -> vector<64x8xf32>
    %134 = arith.maximumf %131, %133 : vector<64x8xf32>
    %135 = vector.extract_strided_slice %134 {offsets = [0, 0], sizes = [2, 8], strides = [1, 1]} : vector<64x8xf32> to vector<2x8xf32>
    %136 = vector.extract_strided_slice %134 {offsets = [2, 0], sizes = [2, 8], strides = [1, 1]} : vector<64x8xf32> to vector<2x8xf32>
    %137 = vector.extract_strided_slice %134 {offsets = [4, 0], sizes = [2, 8], strides = [1, 1]} : vector<64x8xf32> to vector<2x8xf32>
    %138 = vector.extract_strided_slice %134 {offsets = [6, 0], sizes = [2, 8], strides = [1, 1]} : vector<64x8xf32> to vector<2x8xf32>
    %139 = vector.extract_strided_slice %134 {offsets = [8, 0], sizes = [2, 8], strides = [1, 1]} : vector<64x8xf32> to vector<2x8xf32>
    %140 = vector.extract_strided_slice %134 {offsets = [10, 0], sizes = [2, 8], strides = [1, 1]} : vector<64x8xf32> to vector<2x8xf32>
    %141 = vector.extract_strided_slice %134 {offsets = [12, 0], sizes = [2, 8], strides = [1, 1]} : vector<64x8xf32> to vector<2x8xf32>
    %142 = vector.extract_strided_slice %134 {offsets = [14, 0], sizes = [2, 8], strides = [1, 1]} : vector<64x8xf32> to vector<2x8xf32>
    %143 = vector.extract_strided_slice %134 {offsets = [16, 0], sizes = [2, 8], strides = [1, 1]} : vector<64x8xf32> to vector<2x8xf32>
    %144 = vector.extract_strided_slice %134 {offsets = [18, 0], sizes = [2, 8], strides = [1, 1]} : vector<64x8xf32> to vector<2x8xf32>
    %145 = vector.extract_strided_slice %134 {offsets = [20, 0], sizes = [2, 8], strides = [1, 1]} : vector<64x8xf32> to vector<2x8xf32>
    %146 = vector.extract_strided_slice %134 {offsets = [22, 0], sizes = [2, 8], strides = [1, 1]} : vector<64x8xf32> to vector<2x8xf32>
    %147 = vector.extract_strided_slice %134 {offsets = [24, 0], sizes = [2, 8], strides = [1, 1]} : vector<64x8xf32> to vector<2x8xf32>
    %148 = vector.extract_strided_slice %134 {offsets = [26, 0], sizes = [2, 8], strides = [1, 1]} : vector<64x8xf32> to vector<2x8xf32>
    %149 = vector.extract_strided_slice %134 {offsets = [28, 0], sizes = [2, 8], strides = [1, 1]} : vector<64x8xf32> to vector<2x8xf32>
    %150 = vector.extract_strided_slice %134 {offsets = [30, 0], sizes = [2, 8], strides = [1, 1]} : vector<64x8xf32> to vector<2x8xf32>
    %151 = vector.extract_strided_slice %134 {offsets = [32, 0], sizes = [2, 8], strides = [1, 1]} : vector<64x8xf32> to vector<2x8xf32>
    %152 = vector.extract_strided_slice %134 {offsets = [34, 0], sizes = [2, 8], strides = [1, 1]} : vector<64x8xf32> to vector<2x8xf32>
    %153 = vector.extract_strided_slice %134 {offsets = [36, 0], sizes = [2, 8], strides = [1, 1]} : vector<64x8xf32> to vector<2x8xf32>
    %154 = vector.extract_strided_slice %134 {offsets = [38, 0], sizes = [2, 8], strides = [1, 1]} : vector<64x8xf32> to vector<2x8xf32>
    %155 = vector.extract_strided_slice %134 {offsets = [40, 0], sizes = [2, 8], strides = [1, 1]} : vector<64x8xf32> to vector<2x8xf32>
    %156 = vector.extract_strided_slice %134 {offsets = [42, 0], sizes = [2, 8], strides = [1, 1]} : vector<64x8xf32> to vector<2x8xf32>
    %157 = vector.extract_strided_slice %134 {offsets = [44, 0], sizes = [2, 8], strides = [1, 1]} : vector<64x8xf32> to vector<2x8xf32>
    %158 = vector.extract_strided_slice %134 {offsets = [46, 0], sizes = [2, 8], strides = [1, 1]} : vector<64x8xf32> to vector<2x8xf32>
    %159 = vector.extract_strided_slice %134 {offsets = [48, 0], sizes = [2, 8], strides = [1, 1]} : vector<64x8xf32> to vector<2x8xf32>
    %160 = vector.extract_strided_slice %134 {offsets = [50, 0], sizes = [2, 8], strides = [1, 1]} : vector<64x8xf32> to vector<2x8xf32>
    %161 = vector.extract_strided_slice %134 {offsets = [52, 0], sizes = [2, 8], strides = [1, 1]} : vector<64x8xf32> to vector<2x8xf32>
    %162 = vector.extract_strided_slice %134 {offsets = [54, 0], sizes = [2, 8], strides = [1, 1]} : vector<64x8xf32> to vector<2x8xf32>
    %163 = vector.extract_strided_slice %134 {offsets = [56, 0], sizes = [2, 8], strides = [1, 1]} : vector<64x8xf32> to vector<2x8xf32>
    %164 = vector.extract_strided_slice %134 {offsets = [58, 0], sizes = [2, 8], strides = [1, 1]} : vector<64x8xf32> to vector<2x8xf32>
    %165 = vector.extract_strided_slice %134 {offsets = [60, 0], sizes = [2, 8], strides = [1, 1]} : vector<64x8xf32> to vector<2x8xf32>
    %166 = vector.extract_strided_slice %134 {offsets = [62, 0], sizes = [2, 8], strides = [1, 1]} : vector<64x8xf32> to vector<2x8xf32>
    %167 = tpu.concatenate %135, %136, %137, %138, %139, %140, %141, %142, %143, %144, %145, %146, %147, %148, %149, %150 in 1 : vector<2x8xf32>, vector<2x8xf32>, vector<2x8xf32>, vector<2x8xf32>, vector<2x8xf32>, vector<2x8xf32>, vector<2x8xf32>, vector<2x8xf32>, vector<2x8xf32>, vector<2x8xf32>, vector<2x8xf32>, vector<2x8xf32>, vector<2x8xf32>, vector<2x8xf32>, vector<2x8xf32>, vector<2x8xf32> -> vector<2x128xf32>
    %168 = tpu.concatenate %151, %152, %153, %154, %155, %156, %157, %158, %159, %160, %161, %162, %163, %164, %165, %166 in 1 : vector<2x8xf32>, vector<2x8xf32>, vector<2x8xf32>, vector<2x8xf32>, vector<2x8xf32>, vector<2x8xf32>, vector<2x8xf32>, vector<2x8xf32>, vector<2x8xf32>, vector<2x8xf32>, vector<2x8xf32>, vector<2x8xf32>, vector<2x8xf32>, vector<2x8xf32>, vector<2x8xf32>, vector<2x8xf32> -> vector<2x128xf32>
    %169 = tpu.concatenate %167, %168 in 1 : vector<2x128xf32>, vector<2x128xf32> -> vector<2x256xf32>
    %c0_87 = arith.constant 0 : index
    %c384_88 = arith.constant 384 : index
    %170 = vector.load %arg1[%c0_87, %c384_88] : memref<256x512xf32, #tpu.memory_space<vmem>>, vector<256x128xf32>
    %cst_89 = arith.constant dense<0.000000e+00> : vector<2x128xf32>
    %171 = tpu.matmul %169, %170, %cst_89 {dimension_numbers = #tpu.dot_dimension_numbers<[1], [0], [0], [1], [0, 0, 1, 1], [], []>} : vector<2x256xf32>, vector<256x128xf32>, vector<2x128xf32> -> vector<2x128xf32>
    %c0_90 = arith.constant 0 : index
    %c0_91 = arith.constant 0 : index
    %172 = vector.load %arg5[%c0_90, %c0_91] : memref<1x384xf32, #tpu.memory_space<vmem>>, vector<1x128xf32>
    %173 = vector.broadcast %172 : vector<1x128xf32> to vector<2x128xf32>
    %174 = arith.addf %171, %173 : vector<2x128xf32>
    %c0_92 = arith.constant 0 : index
    %c384_93 = arith.constant 384 : index
    %175 = vector.load %arg2[%c0_92, %c384_93] : memref<128x640xf32, #tpu.memory_space<vmem>>, vector<128x256xf32>
    %cst_94 = arith.constant dense<0.000000e+00> : vector<2x256xf32>
    %176 = tpu.matmul %174, %175, %cst_94 {dimension_numbers = #tpu.dot_dimension_numbers<[1], [0], [0], [1], [0, 0, 1, 1], [], []>} : vector<2x128xf32>, vector<128x256xf32>, vector<2x256xf32> -> vector<2x256xf32>
    %c0_95 = arith.constant 0 : index
    %c128_96 = arith.constant 128 : index
    %177 = vector.load %arg5[%c0_95, %c128_96] : memref<1x384xf32, #tpu.memory_space<vmem>>, vector<1x256xf32>
    %178 = vector.broadcast %177 : vector<1x256xf32> to vector<2x256xf32>
    %179 = arith.addf %176, %178 : vector<2x256xf32>
    %180 = tpu.iota {dimensions = array<i32: 1>} : vector<2x256xi32>
    %c100_i32 = arith.constant 100 : i32
    %181 = vector.broadcast %c100_i32 : i32 to vector<2x256xi32>
    %182 = arith.cmpi slt, %180, %181 : vector<2x256xi32>
    %c200_i32 = arith.constant 200 : i32
    %183 = vector.broadcast %c200_i32 : i32 to vector<2x256xi32>
    %184 = arith.cmpi slt, %180, %183 : vector<2x256xi32>
    %cst_97 = arith.constant 5.000000e-01 : f32
    %185 = vector.broadcast %cst_97 : f32 to vector<2x256xf32>
    %186 = arith.mulf %185, %179 : vector<2x256xf32>
    %187 = math.exp %186 : vector<2x256xf32>
    %cst_98 = arith.constant 0.000000e+00 : f32
    %188 = vector.broadcast %cst_98 : f32 to vector<2x256xf32>
    %189 = arith.select %184, %187, %188 : vector<2x256xi1>, vector<2x256xf32>
    %190 = arith.select %182, %179, %189 : vector<2x256xi1>, vector<2x256xf32>
    %c0_99 = arith.constant 0 : index
    %c0_100 = arith.constant 0 : index
    %191 = vector.load %arg6[%c0_99, %c0_100] : memref<2x256xf32, #tpu.memory_space<vmem>>, vector<2x256xf32>
    tpu.vector_store %arg6[%c0_99, %c0_100], %190 {strides = array<i32>} : memref<2x256xf32, #tpu.memory_space<vmem>>, vector<2x256xf32>,
    return
  }
}

</mosaic_0001>

<bundles_post_ra>
// kernel: encoder_forward.1
= control target key start
LH: loop header
LB: loop body
LE: loop exit
PB: predicated region body
PF: predicated region fallthrough
CT: control target
= control target key end

     0   :  { %11 = vsyncpa [#allocation3], 0  ;;  %s6428_s0 = inlined_call_operand.vmem [shape: f32[6,256], index: 0, kind: input, shape index: {}]   ;;  %s6429_s1 = inlined_call_operand.hbm [shape: f32[256,512], index: 1, kind: input, shape index: {}]   ;;  %s6430_s2 = inlined_call_operand.hbm [shape: f32[128,640], index: 2, kind: input, shape index: {}]   ;;  %s6431_s3 = inlined_call_operand.hbm [shape: f32[64,1032], index: 3, kind: input, shape index: {}]   ;;  %s6432_s4 = inlined_call_operand.hbm [shape: f32[64,1795], index: 4, kind: input, shape index: {}]   ;;  %s6433_s5 = inlined_call_operand.vmem [shape: f32[1,384], index: 5, kind: input, shape index: {}]   ;;  %s6434_s6 = inlined_call_operand.vmem [shape: f32[2,256], index: 6, kind: output, shape index: {}]  }
   0x1   :  { %12 = vsyncpa [#allocation5], 0 }
   0x2   :  { %13 = vsyncpa [#allocation8], 0  ;;  %s5825_s21 = smov [#allocation4]   ;;  %s5731_s25 = scalar_lea.hbm %s6430_s2, 10240 }
   0x3   :  { %s33_s22 = sshll.u32 %s5825_s21, 4  ;;  %p5732_p0 = scmp.ne.s32.totalorder %s6430_s2, %s5731_s25  ;;  %s34_s22 = int_to_ptr.vmem [resolvable:$true] %s33_s22 }
   0x4   :  { %p5735_p1 = scmp.lt.u32.totalorder %s5731_s25, %s6430_s2 }
   0x6   :  { %p5737_p2 = pnand %p5735_p1, %p5732_p0 }
   0x8   :  { %5740 = shalt.err (!%p5737_p2)
}
   0x9   :  { %s5741_s30 = scalar_lea.vmem %s34_s22, 10240  ;;  %p5746_p4 = scmp.lt.s32.totalorder %s34_s22, %s34_s22 }
   0xa   :  { %p5742_p3 = scmp.ne.s32.totalorder %s34_s22, %s5741_s30  ;;  %p5747_p5 = scmp.lt.s32.totalorder %s5741_s30, %s5741_s30 }
   0xc   :  { %p5748_p6 = por %p5747_p5, %p5746_p4 }
   0xe   :  { %p5749_p7 = pnand %p5748_p6, %p5742_p3 }
  0x10   :  { %5752 = shalt.err (!%p5749_p7)
}
  0x11   :  { %s5826_s7 = smov 640   ;;  %s5827_s8 = smov 40  }
  0x12   :  { %39 = dma.hbm_to_vmem [thread:$0]  %s6430_s2, 10240, %s34_s22, [#allocation5], %s5826_s7, %s5826_s7, %s5827_s8  }
  0x13   :  { %s5828_s11 = smov [#allocation2]   ;;  %s5753_s15 = scalar_lea.hbm %s6429_s1, 16384 }
  0x14   :  { %s21_s12 = sshll.u32 %s5828_s11, 4  ;;  %p5754_p8 = scmp.ne.s32.totalorder %s6429_s1, %s5753_s15  ;;  %s22_s12 = int_to_ptr.vmem [resolvable:$true] %s21_s12 }
  0x15   :  { %p5757_p9 = scmp.lt.u32.totalorder %s5753_s15, %s6429_s1 }
  0x17   :  { %p5759_p10 = pnand %p5757_p9, %p5754_p8 }
  0x19   :  { %5762 = shalt.err (!%p5759_p10)
}
  0x1a   :  { %s5763_s20 = scalar_lea.vmem %s22_s12, 16384  ;;  %p5768_p12 = scmp.lt.s32.totalorder %s22_s12, %s22_s12 }
  0x1b   :  { %p5764_p11 = scmp.ne.s32.totalorder %s22_s12, %s5763_s20  ;;  %p5769_p13 = scmp.lt.s32.totalorder %s5763_s20, %s5763_s20 }
  0x1d   :  { %p5770_p0 = por %p5769_p13, %p5768_p12 }
  0x1f   :  { %p5771_p1 = pnand %p5770_p0, %p5764_p11 }
  0x21   :  { %5774 = shalt.err (!%p5771_p1)
}
  0x22   :  { %s5829_s2 = smov 512   ;;  %s5830_s21 = smov 32  }
  0x23   :  { %27 = dma.hbm_to_vmem [thread:$0]  %s6429_s1, 16384, %s22_s12, [#allocation3], %s5829_s2, %s5829_s2, %s5830_s21  }
  0x24   :  { %s5831_s24 = smov [#allocation6]   ;;  %s5775_s28 = scalar_lea.hbm %s6431_s3, 9216 }
  0x25   :  { %s45_s25 = sshll.u32 %s5831_s24, 4  ;;  %p5776_p2 = scmp.ne.s32.totalorder %s6431_s3, %s5775_s28  ;;  %s46_s25 = int_to_ptr.vmem [resolvable:$true] %s45_s25 }
  0x26   :  { %p5779_p3 = scmp.lt.u32.totalorder %s5775_s28, %s6431_s3 }
  0x28   :  { %p5781_p4 = pnand %p5779_p3, %p5776_p2 }
  0x2a   :  { %5784 = shalt.err (!%p5781_p4)
}
  0x2b   :  { %s5785_s10 = scalar_lea.vmem %s46_s25, 9216  ;;  %p5790_p6 = scmp.lt.s32.totalorder %s46_s25, %s46_s25 }
  0x2c   :  { %p5786_p5 = scmp.ne.s32.totalorder %s46_s25, %s5785_s10  ;;  %p5791_p7 = scmp.lt.s32.totalorder %s5785_s10, %s5785_s10 }
  0x2e   :  { %p5792_p8 = por %p5791_p7, %p5790_p6 }
  0x30   :  { %p5793_p9 = pnand %p5792_p8, %p5786_p5 }
  0x32   :  { %5796 = shalt.err (!%p5793_p9)
}
  0x33   :  { %s5832_s1 = smov 1152   ;;  %s5833_s11 = smov 72  }
  0x34   :  { %51 = dma.hbm_to_vmem [thread:$0]  %s6431_s3, 9216, %s46_s25, [#allocation5], %s5832_s1, %s5832_s1, %s5833_s11  }
  0x35   :  { %s5834_s14 = smov [#allocation7]   ;;  %s5797_s18 = scalar_lea.hbm %s6432_s4, 15360 }
  0x36   :  { %s57_s15 = sshll.u32 %s5834_s14, 4  ;;  %p5798_p10 = scmp.ne.s32.totalorder %s6432_s4, %s5797_s18  ;;  %s58_s15 = int_to_ptr.vmem [resolvable:$true] %s57_s15 }
  0x37   :  { %p5801_p11 = scmp.lt.u32.totalorder %s5797_s18, %s6432_s4 }
  0x39   :  { %p5803_p12 = pnand %p5801_p11, %p5798_p10 }
  0x3b   :  { %5806 = shalt.err (!%p5803_p12)
}
  0x3c   :  { %s5807_s23 = scalar_lea.vmem %s58_s15, 15360  ;;  %p5812_p0 = scmp.lt.s32.totalorder %s58_s15, %s58_s15 }
  0x3d   :  { %p5808_p13 = scmp.ne.s32.totalorder %s58_s15, %s5807_s23  ;;  %p5813_p1 = scmp.lt.s32.totalorder %s5807_s23, %s5807_s23 }
  0x3f   :  { %p5814_p2 = por %p5813_p1, %p5812_p0 }
  0x41   :  { %p5815_p3 = pnand %p5814_p2, %p5808_p13 }
  0x43   :  { %5818 = shalt.err (!%p5815_p3)
}
  0x44   :  { %s5835_s3 = smov 1920   ;;  %s5836_s24 = smov 120  }
  0x45   :  { %63 = dma.hbm_to_vmem [thread:$0]  %s6432_s4, 15360, %s58_s15, [#allocation8], %s5835_s3, %s5835_s3, %s5836_s24  }
  0x46   :  { %5819 = dma.done.wait [#allocation3], 16384  }
  0x47   :  { %5820 = vsyncadd [#allocation3], 4294950912 }
  0x48   :  { %5821 = dma.done.wait [#allocation5], 19456  }
  0x49   :  { %5822 = vsyncadd [#allocation5], 4294947840 }
  0x4a   :  { %5823 = dma.done.wait [#allocation8], 15360  }
  0x4b   :  { %5824 = vsyncadd [#allocation8], 4294951936  ;;  %v202_v0 = vld [vmem:[#allocation2 + $0x208] sm:$0xff]  ;;  %v98_v20 = vld [vmem:[#allocation2 + $0x200] sm:$0xff]  ;;  %vm290_vm0 = vcmask 48128   ;;  %vm297_vm1 = vcmask 1045504  }
  0x4c   :  { %v203_v1 = vld [vmem:[#allocation2 + $0x228] sm:$0xff]  ;;  %v99_v21 = vld [vmem:[#allocation2 + $0x220] sm:$0xff]  ;;  %vm668_vm2 = vcmask 130048   ;;  %vm1489_vm3 = vcmask 523264   ;;  %vm1502_vm4 = vcmask 261120   ;;  %s5843_s30 = smov 16  }
  0x4d   :  { %v186_v2 = vld [vmem:[#allocation2 + $0x8] sm:$0xff]  ;;  %v5147_v3 = vpack.c.bf16 %v203_v1, %v202_v0  ;;  %v82_v22 = vld [vmem:[#allocation2] sm:$0xff]  ;;  %v5115_v26 = vpack.c.bf16 %v99_v21, %v98_v20  ;;  %v477_v20 = vld [vmem:[#allocation2 + $0x230] sm:$0xff]  ;;  %s5844_s7 = smov 8   ;;  %s5845_s9 = smov 96   ;;  %vm3762_vm5 = vcmask 64512  }
  0x4e   :  { %v187_v4 = vld [vmem:[#allocation2 + $0x28] sm:$0xff]  ;;  %v83_v27 = vld [vmem:[#allocation2 + $0x20] sm:$0xff]  ;;  %s5846_s10 = smov 24   ;;  %s5847_s1 = smov 64   ;;  %vm3765_vm6 = vcmask 195584   ;;  %vm3768_vm7 = vcmask 326656  }
  0x4f   :  { %v204_v5 = vld [vmem:[#allocation2 + $0x248] sm:$0xff]  ;;  %v5149_v7 = vpack.c.bf16 %v187_v4, %v186_v2  ;;  %5148 = vmatprep.subr.bf16.mxu1 %v5147_v3  ;;  %v5117_v30 = vpack.c.bf16 %v83_v27, %v82_v22  ;;  %v100_v31 = vld [vmem:[#allocation2 + $0x240] sm:$0xff]  ;;  %5116 = vmatprep.subr.bf16.mxu0 %v5115_v26  ;;  %s5848_s12 = smov 104   ;;  %s5849_s13 = smov 80   ;;  %vm3770_vm8 = vcmask 392192   ;;  %vm3772_vm9 = vcmask 457728  }
  0x50   :  { %v205_v6 = vld [vmem:[#allocation2 + $0x268] sm:$0xff]  ;;  %v101_v32 = vld [vmem:[#allocation2 + $0x260] sm:$0xff]  ;;  %s5850_s14 = smov 112   ;;  %s5851_s15 = smov 88   ;;  %vm3775_vm10 = vcmask 588800   ;;  %vm3777_vm11 = vcmask 654336  }
  0x51   :  { %v5151_v8 = vpack.c.bf16 %v205_v6, %v204_v5  ;;  %v188_v9 = vld [vmem:[#allocation2 + $0x48] sm:$0xff]  ;;  %5150 = vmatpush3.bf16.msra.mxu1 %v5149_v7  ;;  %v84_v33 = vld [vmem:[#allocation2 + $0x40] sm:$0xff]  ;;  %5118 = vmatpush3.bf16.msra.mxu0 %v5117_v30  ;;  %v5119_v39 = vpack.c.bf16 %v101_v32, %v100_v31  ;;  %v479_v32 = vld [vmem:[#allocation2 + $0x270] sm:$0xff]  ;;  %vm3779_vm12 = vcmask 719872   ;;  %vm3781_vm13 = vcmask 785408  }
  0x52   :  { %v189_v10 = vld [vmem:[#allocation2 + $0x68] sm:$0xff]  ;;  %v85_v34 = vld [vmem:[#allocation2 + $0x60] sm:$0xff]  ;;  %vm3783_vm14 = vcmask 850944   ;;  %vm3785_vm15 = vcmask 916480  }
  0x53   :  { %v206_v11 = vld [vmem:[#allocation2 + $0x288] sm:$0xff]  ;;  %v5153_v13 = vpack.c.bf16 %v189_v10, %v188_v9  ;;  %5152 = vmatprep.subr.bf16.mxu1 %v5151_v8  ;;  %v5121_v40 = vpack.c.bf16 %v85_v34, %v84_v33  ;;  %v102_v43 = vld [vmem:[#allocation2 + $0x280] sm:$0xff]  ;;  %5120 = vmatprep.subr.bf16.mxu0 %v5119_v39 }
  0x54   :  { %v207_v12 = vld [vmem:[#allocation2 + $0x2a8] sm:$0xff]  ;;  %v103_v44 = vld [vmem:[#allocation2 + $0x2a0] sm:$0xff] }
  0x55   :  { %v5155_v14 = vpack.c.bf16 %v207_v12, %v206_v11  ;;  %v190_v15 = vld [vmem:[#allocation2 + $0x88] sm:$0xff]  ;;  %5154 = vmatpush3.bf16.msra.mxu1 %v5153_v13  ;;  %v5123_v45 = vpack.c.bf16 %v103_v44, %v102_v43  ;;  %v86_v46 = vld [vmem:[#allocation2 + $0x80] sm:$0xff]  ;;  %5122 = vmatpush3.bf16.msra.mxu0 %v5121_v40  ;;  %v463_v40 = vld [vmem:[#allocation2 + $0x70] sm:$0xff] }
  0x56   :  { %v191_v16 = vld [vmem:[#allocation2 + $0xa8] sm:$0xff]  ;;  %v87_v47 = vld [vmem:[#allocation2 + $0xa0] sm:$0xff]  ;;  %v480_v44 = vld [vmem:[#allocation2 + $0x290] sm:$0xff] }
  0x57   :  { %v208_v17 = vld [vmem:[#allocation2 + $0x2c8] sm:$0xff]  ;;  %v5157_v19 = vpack.c.bf16 %v191_v16, %v190_v15  ;;  %5156 = vmatprep.subr.bf16.mxu1 %v5155_v14  ;;  %v5125_v52 = vpack.c.bf16 %v87_v47, %v86_v46  ;;  %v104_v53 = vld [vmem:[#allocation2 + $0x2c0] sm:$0xff]  ;;  %5124 = vmatprep.subr.bf16.mxu0 %v5123_v45  ;;  %v476_v16 = vld [vmem:[#allocation2 + $0x210] sm:$0xff] }
  0x58   :  { %v209_v18 = vld [vmem:[#allocation2 + $0x2e8] sm:$0xff]  ;;  %v105_v55 = vld [vmem:[#allocation2 + $0x2e0] sm:$0xff]  ;;  %v5179_v27 = vpack.c.bf16 %v477_v20, %v476_v16  ;;  %v481_v45 = vld [vmem:[#allocation2 + $0x2b0] sm:$0xff]  ;;  %v5837_v20 = vmov 0  }
  0x59   :  { %v5159_v23 = vpack.c.bf16 %v209_v18, %v208_v17  ;;  %v192_v24 = vld [vmem:[#allocation2 + $0xc8] sm:$0xff]  ;;  %5158 = vmatpush3.bf16.msra.mxu1 %v5157_v19  ;;  %v88_v56 = vld [vmem:[#allocation2 + $0xc0] sm:$0xff]  ;;  %v5127_v60 = vpack.c.bf16 %v105_v55, %v104_v53  ;;  %5126 = vmatpush3.bf16.msra.mxu0 %v5125_v52  ;;  %v482_v52 = vld [vmem:[#allocation2 + $0x2d0] sm:$0xff] }
  0x5a   :  { %v193_v25 = vld [vmem:[#allocation2 + $0xe8] sm:$0xff]  ;;  %v89_v57 = vld [vmem:[#allocation2 + $0xe0] sm:$0xff]  ;;  %v483_v53 = vld [vmem:[#allocation2 + $0x2f0] sm:$0xff]  ;;  %5603 = vset.pattern.permute.xlu0 %v5837_v20  ;;  %5604 = vset.pattern.permute.xlu1 %v5837_v20 }
  0x5b   :  { %v210_v28 = vld [vmem:[#allocation2 + $0x308] sm:$0xff]  ;;  %v5161_v35 = vpack.c.bf16 %v193_v25, %v192_v24  ;;  %5160 = vmatprep.subr.bf16.mxu1 %v5159_v23  ;;  %v106_v61 = vld [vmem:[#allocation2 + $0x300] sm:$0xff]  ;;  %v5129_v2 = vpack.c.bf16 %v89_v57, %v88_v56  ;;  %5128 = vmatprep.subr.bf16.mxu0 %v5127_v60  ;;  %v460_v24 = vld [vmem:[#allocation2 + $0x10] sm:$0xff]  ;;  %v5191_v55 = vpack.c.bf16 %v483_v53, %v482_v52 }
  0x5c   :  { %v211_v29 = vld [vmem:[#allocation2 + $0x328] sm:$0xff]  ;;  %v107_v62 = vld [vmem:[#allocation2 + $0x320] sm:$0xff]  ;;  %v461_v25 = vld [vmem:[#allocation2 + $0x30] sm:$0xff] }
  0x5d   :  { %v194_v36 = vld [vmem:[#allocation2 + $0x108] sm:$0xff]  ;;  %v5163_v41 = vpack.c.bf16 %v211_v29, %v210_v28  ;;  %5162 = vmatpush3.bf16.msra.mxu1 %v5161_v35  ;;  %v5131_v5 = vpack.c.bf16 %v107_v62, %v106_v61  ;;  %v90_v6 = vld [vmem:[#allocation2 + $0x100] sm:$0xff]  ;;  %5130 = vmatpush3.bf16.msra.mxu0 %v5129_v2  ;;  %v478_v28 = vld [vmem:[#allocation2 + $0x250] sm:$0xff] }
  0x5e   :  { %v195_v37 = vld [vmem:[#allocation2 + $0x128] sm:$0xff]  ;;  %v91_v7 = vld [vmem:[#allocation2 + $0x120] sm:$0xff]  ;;  %v5183_v39 = vpack.c.bf16 %v479_v32, %v478_v28  ;;  %v466_v56 = vld [vmem:[#allocation2 + $0xd0] sm:$0xff] }
  0x5f   :  { %v212_v38 = vld [vmem:[#allocation2 + $0x348] sm:$0xff]  ;;  %v5165_v49 = vpack.c.bf16 %v195_v37, %v194_v36  ;;  %5164 = vmatprep.subr.bf16.mxu1 %v5163_v41  ;;  %v108_v9 = vld [vmem:[#allocation2 + $0x340] sm:$0xff]  ;;  %v5133_v14 = vpack.c.bf16 %v91_v7, %v90_v6  ;;  %5132 = vmatprep.subr.bf16.mxu0 %v5131_v5  ;;  %v5181_v36 = vpack.c.bf16 %v461_v25, %v460_v24  ;;  %v462_v37 = vld [vmem:[#allocation2 + $0x50] sm:$0xff] }
  0x60   :  { %v213_v42 = vld [vmem:[#allocation2 + $0x368] sm:$0xff]  ;;  %v109_v10 = vld [vmem:[#allocation2 + $0x360] sm:$0xff]  ;;  %v5185_v46 = vpack.c.bf16 %v463_v40, %v462_v37  ;;  %v467_v57 = vld [vmem:[#allocation2 + $0xf0] sm:$0xff] }
  0x61   :  { %v5943_v48 = vld [vmem:[%s6428_s0 + $0x8] sm:$0x3f]  ;;  %v5167_v54 = vpack.c.bf16 %v213_v42, %v212_v38  ;;  %5166 = vmatpush3.bf16.msra.mxu1 %v5165_v49  ;;  %v5135_v17 = vpack.c.bf16 %v109_v10, %v108_v9  ;;  %v92_v18 = vld [vmem:[#allocation2 + $0x140] sm:$0xff]  ;;  %5134 = vmatpush3.bf16.msra.mxu0 %v5133_v14  ;;  %v5187_v49 = vpack.c.bf16 %v481_v45, %v480_v44  ;;  %v468_v62 = vld [vmem:[#allocation2 + $0x110] sm:$0xff] }
  0x62   :  { %282 = vmatprep.mubr.f32.mxu1 %v5943_v48  ;;  %178 = vmatprep.mubr.f32.mxu0 %v5943_v48  ;;  %v196_v50 = vld [vmem:[#allocation2 + $0x148] sm:$0xff]  ;;  %v93_v19 = vld [vmem:[#allocation2 + $0x160] sm:$0xff]  ;;  %v5193_v60 = vpack.c.bf16 %v467_v57, %v466_v56  ;;  %v488_v5 = vld [vmem:[#allocation2 + $0x390] sm:$0xff] }
  0x63   :  { %v197_v51 = vld [vmem:[#allocation2 + $0x168] sm:$0xff]  ;;  %5168 = vmatprep.subr.bf16.mxu1 %v5167_v54  ;;  %v110_v21 = vld [vmem:[#allocation2 + $0x380] sm:$0xff]  ;;  %v5137_v26 = vpack.c.bf16 %v93_v19, %v92_v18  ;;  %5136 = vmatprep.subr.bf16.mxu0 %v5135_v17  ;;  %v489_v6 = vld [vmem:[#allocation2 + $0x3b0] sm:$0xff] }
  0x64   :  { %v214_v58 = vld [vmem:[#allocation2 + $0x388] sm:$0xff]  ;;  %v5169_v63 = vpack.c.bf16 %v197_v51, %v196_v50  ;;  %v111_v22 = vld [vmem:[#allocation2 + $0x3a0] sm:$0xff]  ;;  %v464_v50 = vld [vmem:[#allocation2 + $0x90] sm:$0xff] }
  0x65   :  { %v215_v59 = vld [vmem:[#allocation2 + $0x3a8] sm:$0xff]  ;;  %v5139_v29 = vpack.c.bf16 %v111_v22, %v110_v21  ;;  %v94_v30 = vld [vmem:[#allocation2 + $0x180] sm:$0xff]  ;;  %5138 = vmatpush3.bf16.msra.mxu0 %v5137_v26  ;;  %v465_v51 = vld [vmem:[#allocation2 + $0xb0] sm:$0xff] }
  0x66   :  { %v198_v0 = vld [vmem:[#allocation2 + $0x188] sm:$0xff]  ;;  %v5171_v3 = vpack.c.bf16 %v215_v59, %v214_v58  ;;  %5170 = vmatpush3.bf16.msra.mxu1 %v5169_v63  ;;  %v95_v31 = vld [vmem:[#allocation2 + $0x1a0] sm:$0xff]  ;;  %v5189_v54 = vpack.c.bf16 %v465_v51, %v464_v50  ;;  %v484_v58 = vld [vmem:[#allocation2 + $0x310] sm:$0xff] }
  0x67   :  { %v199_v1 = vld [vmem:[#allocation2 + $0x1a8] sm:$0xff]  ;;  %v112_v33 = vld [vmem:[#allocation2 + $0x3c0] sm:$0xff]  ;;  %v5141_v38 = vpack.c.bf16 %v95_v31, %v94_v30  ;;  %5140 = vmatprep.subr.bf16.mxu0 %v5139_v29  ;;  %v485_v59 = vld [vmem:[#allocation2 + $0x330] sm:$0xff] }
  0x68   :  { %v216_v4 = vld [vmem:[#allocation2 + $0x3c8] sm:$0xff]  ;;  %v5173_v11 = vpack.c.bf16 %v199_v1, %v198_v0  ;;  %5172 = vmatprep.subr.bf16.mxu1 %v5171_v3  ;;  %v113_v34 = vld [vmem:[#allocation2 + $0x3e0] sm:$0xff]  ;;  %v5195_v61 = vpack.c.bf16 %v485_v59, %v484_v58  ;;  %v469_v63 = vld [vmem:[#allocation2 + $0x130] sm:$0xff] }
  0x69   :  { %v217_v8 = vld [vmem:[#allocation2 + $0x3e8] sm:$0xff]  ;;  %v5950_v35 = vld [vmem:[%s6428_s0] sm:$0x3f]  ;;  %v5143_v41 = vpack.c.bf16 %v113_v34, %v112_v33  ;;  %5142 = vmatpush3.bf16.msra.mxu0 %v5141_v38  ;;  %v486_v0 = vld [vmem:[#allocation2 + $0x350] sm:$0xff]  ;;  %s5840_s0 = smov 1  }
  0x6a   :  { %v200_v12 = vld [vmem:[#allocation2 + $0x1c8] sm:$0xff]  ;;  %v5175_v15 = vpack.c.bf16 %v217_v8, %v216_v4  ;;  %5174 = vmatpush3.bf16.msra.mxu1 %v5173_v11  ;;  %v96_v42 = vld [vmem:[#allocation2 + $0x1c0] sm:$0xff]  ;;  %v487_v1 = vld [vmem:[#allocation2 + $0x370] sm:$0xff]  ;;  %v5203_v8 = vpack.c.bf16 %v489_v6, %v488_v5 }
  0x6b   :  { %v201_v13 = vld [vmem:[#allocation2 + $0x1e8] sm:$0xff]  ;;  %v97_v43 = vld [vmem:[#allocation2 + $0x1e0] sm:$0xff]  ;;  %5144 = vmatprep.subr.bf16.mxu0 %v5143_v41  ;;  %v5199_v2 = vpack.c.bf16 %v487_v1, %v486_v0  ;;  %v470_v3 = vld [vmem:[#allocation2 + $0x150] sm:$0xff]  ;;  %v5839_v0 = vmov 2  }
  0x6c   :  { %v5177_v23 = vpack.c.bf16 %v201_v13, %v200_v12  ;;  %5176 = vmatprep.subr.bf16.mxu1 %v5175_v15  ;;  %v5145_v47 = vpack.c.bf16 %v97_v43, %v96_v42  ;;  %v471_v4 = vld [vmem:[#allocation2 + $0x170] sm:$0xff]  ;;  %v288_v18 = vld [vmem:[#allocation7 + $0x8] sm:$0xff]  ;;  %v5957_v19 = vld [vmem:[#allocation7 + $0x20] sm:$0xff] }
  0x6d   :  { %v5201_v7 = vpack.c.bf16 %v471_v4, %v470_v3  ;;  %v472_v9 = vld [vmem:[#allocation2 + $0x190] sm:$0xff]  ;;  %652 = vperm.xlu0 %5603, %v5957_v19   ;;  %v5962_v21 = vld [vmem:[#allocation7 + $0x98] sm:$0xff]  ;;  %v289_v25 = vld [vmem:[#allocation7 + $0x80] sm:$0xff] }
  0x6e   :  { %5178 = vmatpush3.bf16.msra.mxu1 %v5177_v23  ;;  %5146 = vmatpush3.bf16.msra.mxu0 %v5145_v47  ;;  %v473_v10 = vld [vmem:[#allocation2 + $0x1b0] sm:$0xff]  ;;  %v184_v26 = vld [vmem:[#allocation7] sm:$0xff]  ;;  %v185_v30 = vld [vmem:[#allocation7 + $0x78] sm:$0xff] }
  0x6f   :  { %5180 = vmatprep.subr.bf16.mxu1 %v5179_v27  ;;  %v490_v11 = vld [vmem:[#allocation2 + $0x3d0] sm:$0xff]  ;;  %v5205_v13 = vpack.c.bf16 %v473_v10, %v472_v9  ;;  %v662_v42 = vld [vmem:[#allocation7 + $0x18] sm:$0xff]  ;;  %v881_v1 = vld [vmem:[#allocation4] sm:$0xff] }
  0x70   :  { %v491_v12 = vld [vmem:[#allocation2 + $0x3f0] sm:$0xff] }
  0x71   :  { %283 = vmatmul.mubr.f32.vlgmr.msra.gmra.mrb[0].mxu1 %v5950_v35  ;;  %179 = vmatmul.mubr.f32.vlgmr.msra.gmra.mrb[0].mxu0 %v5950_v35  ;;  %v5207_v14 = vpack.c.bf16 %v491_v12, %v490_v11  ;;  %v474_v15 = vld [vmem:[#allocation2 + $0x1d0] sm:$0xff]  ;;  %v978_v11 = vld [vmem:[#allocation4 + $0x58] sm:$0xff]  ;;  %v979_v12 = vld [vmem:[#allocation4 + $0x80] sm:$0xff] }
  0x72   :  { %5182 = vmatpush3.bf16.msra.mxu1 %v5181_v36  ;;  %556 = vmatprep.mubr.f32.mxu1 %v5943_v48  ;;  %v5197_v48 = vpack.c.bf16 %v469_v63, %v468_v62  ;;  %v475_v16 = vld [vmem:[#allocation2 + $0x1f0] sm:$0xff]  ;;  %v5838_v63 = vmov 1  }
  0x73   :  { %5184 = vmatprep.subr.bf16.mxu1 %v5183_v39  ;;  %v5209_v17 = vpack.c.bf16 %v475_v16, %v474_v15  ;;  %4653 = vmatprep.mubr.msk.f32.mxu0 %vm290_vm0, %v288_v18  ;;  %v562_v31 = vld [vmem:[#allocation7 + $0x10] sm:$0xff]  ;;  %v886_v15 = vld [vmem:[#allocation4 + $0xc8] sm:$0xff] }
  0x74   :  { %657 = vperm.xlu0 %5603, %v5962_v21   ;;  %v977_v5 = vld [vmem:[#allocation4 + $0x30] sm:$0xff]  ;;  %v980_v16 = vld [vmem:[#allocation4 + $0xa8] sm:$0xff] }
  0x75   :  { %v883_v6 = vld [vmem:[#allocation4 + $0x50] sm:$0xff] }
  0x76   :  { %5186 = vmatpush3.bf16.msra.mxu1 %v5185_v46  ;;  %v663_v46 = vld [vmem:[#allocation7 + $0x90] sm:$0xff] }
  0x77   :  { %5188 = vmatprep.subr.bf16.mxu1 %v5187_v49 }
  0x7a   :  { %5190 = vmatpush3.bf16.msra.mxu1 %v5189_v54 }
  0x7b   :  { %5192 = vmatprep.subr.bf16.mxu1 %v5191_v55 }
  0x7e   :  { %5194 = vmatpush3.bf16.msra.mxu1 %v5193_v60 }
  0x7f   :  { %5196 = vmatprep.subr.bf16.mxu1 %v5195_v61 }
  0x82   :  { %5198 = vmatpush3.bf16.msra.mxu1 %v5197_v48  ;;  %v882_v48 = vld [vmem:[#allocation4 + $0x28] sm:$0xff] }
  0x83   :  { %5200 = vmatprep.subr.bf16.mxu1 %v5199_v2  ;;  %v976_v2 = vld [vmem:[#allocation4 + $0x8] sm:$0xff]  ;;  %v5219_v4 = vpack.c.bf16 %v882_v48, %v881_v1 }
  0x84   :  { %v5251_v9 = vpack.c.bf16 %v977_v5, %v976_v2 }
  0x86   :  { %5202 = vmatpush3.bf16.msra.mxu1 %v5201_v7  ;;  %v884_v7 = vld [vmem:[#allocation4 + $0x78] sm:$0xff] }
  0x87   :  { %5204 = vmatprep.subr.bf16.mxu1 %v5203_v8  ;;  %v5223_v10 = vpack.c.bf16 %v884_v7, %v883_v6 }
  0x8a   :  { %5206 = vmatpush3.bf16.msra.mxu1 %v5205_v13  ;;  %v885_v13 = vld [vmem:[#allocation4 + $0xa0] sm:$0xff] }
  0x8b   :  { %5208 = vmatprep.subr.bf16.mxu1 %v5207_v14  ;;  %v5255_v14 = vpack.c.bf16 %v979_v12, %v978_v11  ;;  %v5227_v18 = vpack.c.bf16 %v886_v15, %v885_v13  ;;  %v1069_v11 = vld [vmem:[#allocation7 + $0x120] sm:$0xff]  ;;  %v1070_v13 = vld [vmem:[#allocation7 + $0x198] sm:$0xff] }
  0x8c   :  { %v1267_v15 = vld [vmem:[#allocation4 + $0x60] sm:$0xff] }
  0x8e   :  { %5210 = vmatpush3.bf16.msra.mxu1 %v5209_v17  ;;  %v981_v17 = vld [vmem:[#allocation4 + $0xd0] sm:$0xff] }
  0x8f   :  { %5252 = vmatprep.subr.bf16.mxu1 %v5251_v9 }
  0x91   :  { %557 = vmatmul.mubr.f32.vlgmr.msra.gmra.mrb[2].mxu1 %v5950_v35  ;;  %v563_v35 = vld [vmem:[#allocation7 + $0x88] sm:$0xff] }
  0x92   :  { %5254 = vmatpush3.bf16.msra.mxu1 %v5251_v9  ;;  %v1266_v9 = vld [vmem:[#allocation4 + $0x38] sm:$0xff] }
  0x93   :  { %5256 = vmatprep.subr.bf16.mxu1 %v5255_v14 }
  0x96   :  { %5258 = vmatpush3.bf16.msra.mxu1 %v5255_v14  ;;  %v972_v14 = vld [vmem:[#allocation7 + $0x28] sm:$0xff] }
  0xec   :  { %v653_v36 = vpop.permute.xlu0 %652 }
  0xf3   :  { %v658_v40 = vpop.permute.xlu0 %657 }
 0x144   :  { %v4315_v22 = vpop.f32.mrb[0].mxu1  ;;  %v4280_v27 = vpop.f32.mrb[0].mxu0 }
 0x145   :  { %v4316_v23 = vpop.f32.mrb[1].mxu1  ;;  %v4281_v28 = vpop.f32.mrb[1].mxu0 }
 0x146   :  { %v4317_v24 = vadd.f32 %v4316_v23, %v4315_v22  ;;  %v4282_v29 = vadd.f32 %v4281_v28, %v4280_v27  ;;  %v5259_v22 = vpack.c.bf16 %v981_v17, %v980_v16  ;;  %v887_v23 = vld [vmem:[#allocation4 + $0xf0] sm:$0xff]  ;;  %v1268_v16 = vld [vmem:[#allocation4 + $0x88] sm:$0xff]  ;;  %v973_v17 = vld [vmem:[#allocation7 + $0xa0] sm:$0xff] }
 0x148   :  { %4651 = vmatprep.subr.msk.mxu0 %vm297_vm1, %v4317_v24  ;;  %5260 = vmatprep.subr.bf16.mxu1 %v5259_v22 }
 0x149   :  { %4652 = vmatpush3.msk.msra.mxu0 %vm297_vm1, %v4317_v24  ;;  %v888_v24 = vld [vmem:[#allocation4 + $0x118] sm:$0xff]  ;;  %5262 = vmatpush3.bf16.msra.mxu1 %v5259_v22  ;;  %v5295_v22 = vpack.c.bf16 %v1268_v16, %v1267_v15 }
 0x14a   :  { %4654 = vmatmul.mubr.msk.f32.vlgmr.msra.gmra.mrb[2].mxu0 %vm290_vm0, %v289_v25  ;;  %4656 = vmatprep.subr.msk.mxu0 %vm297_vm1, %v4282_v29  ;;  %v982_v25 = vld [vmem:[#allocation4 + $0xf8] sm:$0xff]  ;;  %v5231_v27 = vpack.c.bf16 %v888_v24, %v887_v23  ;;  %v1269_v23 = vld [vmem:[#allocation4 + $0xb0] sm:$0xff] }
 0x14b   :  { %4658 = vmatprep.mubr.msk.f32.mxu0 %vm290_vm0, %v184_v26  ;;  %4657 = vmatpush3.msk.msra.mxu0 %vm297_vm1, %v4282_v29  ;;  %v983_v26 = vld [vmem:[#allocation4 + $0x120] sm:$0xff]  ;;  %v1270_v24 = vld [vmem:[#allocation4 + $0xd8] sm:$0xff] }
 0x14c   :  { %v5263_v28 = vpack.c.bf16 %v983_v26, %v982_v25  ;;  %v889_v29 = vld [vmem:[#allocation4 + $0x140] sm:$0xff]  ;;  %v975_v25 = vld [vmem:[#allocation7 + $0x190] sm:$0xff]  ;;  %v5299_v26 = vpack.c.bf16 %v1270_v24, %v1269_v23 }
 0x14e   :  { %5264 = vmatprep.subr.bf16.mxu1 %v5263_v28 }
 0x14f   :  { %5266 = vmatpush3.bf16.msra.mxu1 %v5263_v28  ;;  %v1272_v28 = vld [vmem:[#allocation4 + $0x128] sm:$0xff] }
 0x152   :  { %4659 = vmatmul.mubr.msk.f32.vlgmr.msra.gmra.mrb[2].mxu0 %vm290_vm0, %v185_v30  ;;  %v890_v30 = vld [vmem:[#allocation4 + $0x168] sm:$0xff] }
 0x153   :  { %4663 = vmatprep.mubr.msk.f32.mxu0 %vm290_vm0, %v562_v31  ;;  %v984_v31 = vld [vmem:[#allocation4 + $0x148] sm:$0xff] }
 0x164   :  { %v4356_v32 = vpop.f32.mrb[2].mxu1 }
 0x165   :  { %v4357_v33 = vpop.f32.mrb[3].mxu1 }
 0x166   :  { %v4358_v34 = vadd.f32 %v4357_v33, %v4356_v32  ;;  %v985_v32 = vld [vmem:[#allocation4 + $0x170] sm:$0xff]  ;;  %v5235_v33 = vpack.c.bf16 %v890_v30, %v889_v29 }
 0x167   :  { %v1273_v30 = vld [vmem:[#allocation4 + $0x150] sm:$0xff] }
 0x168   :  { %4661 = vmatprep.subr.msk.mxu0 %vm297_vm1, %v4358_v34 }
 0x169   :  { %4662 = vmatpush3.msk.msra.mxu0 %vm297_vm1, %v4358_v34  ;;  %v5267_v34 = vpack.c.bf16 %v985_v32, %v984_v31  ;;  %v1274_v31 = vld [vmem:[#allocation4 + $0x178] sm:$0xff] }
 0x16a   :  { %4664 = vmatmul.mubr.msk.f32.vlgmr.msra.gmra.mrb[2].mxu0 %vm290_vm0, %v563_v35  ;;  %v5307_v32 = vpack.c.bf16 %v1274_v31, %v1273_v30  ;;  %vm3787_vm0 = vcmask 982016  }
 0x16b   :  { %4670 = vmatprep.mubr.msk.f32.mxu0 %vm668_vm2, %v662_v42  ;;  %5268 = vmatprep.subr.bf16.mxu1 %v5267_v34 }
 0x16c   :  { %5270 = vmatpush3.bf16.msra.mxu1 %v5267_v34  ;;  %v1276_v34 = vld [vmem:[#allocation4 + $0x1c8] sm:$0xff] }
 0x23d   :  { %v4665_v37 = vpop.f32.mrb[2].mxu0 }
 0x23e   :  { %v639_v38 = vpop.f32.mrb[3].mxu0  ;;  %v661_v41 = vadd.f32 %v4665_v37, %v658_v40  ;;  %v892_v37 = vld [vmem:[#allocation4 + $0x1b8] sm:$0xff] }
 0x23f   :  { %v660_v39 = vadd.f32 %v653_v36, %v639_v38  ;;  %v891_v36 = vld [vmem:[#allocation4 + $0x190] sm:$0xff]  ;;  %v986_v38 = vld [vmem:[#allocation4 + $0x198] sm:$0xff] }
 0x240   :  { %v5239_v40 = vpack.c.bf16 %v892_v37, %v891_v36  ;;  %v1277_v36 = vld [vmem:[#allocation4 + $0x1f0] sm:$0xff]  ;;  %v1278_v37 = vld [vmem:[#allocation4 + $0x218] sm:$0xff] }
 0x241   :  { %664 = vadd.xlane.f32.xlu1 %v660_v39 }
 0x245   :  { %666 = vadd.xlane.f32.xlu1 %v661_v41 }
 0x2ce   :  { %v665_v43 = vpop.xlane.xlu1 %664 }
 0x2d2   :  { %v667_v44 = vpop.xlane.xlu1 %666 }
 0x2d3   :  { %v5211_v45 = vpack.c.bf16 %v667_v44, %v665_v43  ;;  %v893_v44 = vld [vmem:[#allocation4 + $0x1e0] sm:$0xff] }
 0x2d5   :  { %5212 = vmatprep.subr.bf16.mxu0 %v5211_v45 }
 0x2d6   :  { %5214 = vmatpush3.bf16.msra.mxu0 %v5211_v45  ;;  %v894_v45 = vld [vmem:[#allocation4 + $0x208] sm:$0xff] }
 0x2d9   :  { %4671 = vmatmul.mubr.msk.f32.vlgmr.msra.gmra.mrb[4].mxu0 %vm668_vm2, %v663_v46 }
 0x2da   :  { %4677 = vmatprep.mubr.msk.f32.mxu0 %vm668_vm2, %v662_v42 }
 0x3ac   :  { %v4672_v47 = vpop.f32.mrb[4].mxu0 }
 0x3ad   :  { %757 = vperm.xlu1 %5604, %v4672_v47   ;;  %v741_v49 = vpop.f32.mrb[5].mxu0 }
 0x3ae   :  { %752 = vperm.xlu0 %5603, %v741_v49   ;;  %v5243_v49 = vpack.c.bf16 %v894_v45, %v893_v44  ;;  %v6017_v44 = vld [vmem:[#allocation7 + $0xc0] sm:$0xff]  ;;  %v6021_v45 = vld [vmem:[#allocation7 + $0x138] sm:$0xff] }
 0x3b1   :  { %5607 = vset.pattern.permute.xlu1 %v5839_v0 }
 0x3b2   :  { %5605 = vset.pattern.permute.xlu0 %v5838_v63 }
 0x42c   :  { %v758_v50 = vpop.permute.xlu1 %757 }
 0x42d   :  { %v5979_v51 = vsub.f32 %v661_v41, %v758_v50  ;;  %v753_v52 = vpop.permute.xlu0 %752  ;;  %v987_v41 = vld [vmem:[#allocation4 + $0x1c0] sm:$0xff]  ;;  %v989_v50 = vld [vmem:[#allocation4 + $0x210] sm:$0xff] }
 0x42e   :  { %v5981_v53 = vsub.f32 %v660_v39, %v753_v52  ;;  %v5271_v43 = vpack.c.bf16 %v987_v41, %v986_v38  ;;  %v5315_v38 = vpack.c.bf16 %v1278_v37, %v1277_v36 }
 0x42f   :  { %v763_v54 = vmul.f32 %v5979_v51, %v5979_v51 }
 0x430   :  { %v762_v55 = vmul.f32 %v5981_v53, %v5981_v53  ;;  %5272 = vmatprep.subr.bf16.mxu1 %v5271_v43 }
 0x431   :  { %766 = vadd.xlane.f32.xlu1 %v763_v54  ;;  %5274 = vmatpush3.bf16.msra.mxu1 %v5271_v43  ;;  %v896_v54 = vld [vmem:[#allocation4 + $0x258] sm:$0xff]  ;;  %v6015_v43 = vld [vmem:[#allocation7 + $0x48] sm:$0xff] }
 0x432   :  { %764 = vadd.xlane.f32.xlu0 %v762_v55  ;;  %v990_v55 = vld [vmem:[#allocation4 + $0x238] sm:$0xff] }
 0x4be   :  { %v767_v56 = vpop.xlane.xlu1 %766 }
 0x4bf   :  { %v765_v57 = vpop.xlane.xlu0 %764 }
 0x4c0   :  { %v5215_v58 = vpack.c.bf16 %v767_v56, %v765_v57  ;;  %v991_v57 = vld [vmem:[#allocation4 + $0x260] sm:$0xff] }
 0x4c2   :  { %5216 = vmatprep.subr.bf16.mxu0 %v5215_v58 }
 0x4c3   :  { %5218 = vmatpush3.bf16.msra.mxu0 %v5215_v58  ;;  %v5279_v58 = vpack.c.bf16 %v991_v57, %v990_v55 }
 0x4c4   :  { %5220 = vmatprep.subr.bf16.mxu0 %v5219_v4 }
 0x4c6   :  { %4678 = vmatmul.mubr.msk.f32.vlgmr.msra.gmra.mrb[6].mxu0 %vm668_vm2, %v663_v46  ;;  %v988_v46 = vld [vmem:[#allocation4 + $0x1e8] sm:$0xff] }
 0x4c7   :  { %5222 = vmatpush3.bf16.msra.mxu0 %v5219_v4  ;;  %v5275_v52 = vpack.c.bf16 %v989_v50, %v988_v46  ;;  %v6024_v46 = vld [vmem:[#allocation7 + $0x1b0] sm:$0xff] }
 0x4c8   :  { %5224 = vmatprep.subr.bf16.mxu0 %v5223_v10 }
 0x4c9   :  { %5276 = vmatprep.subr.bf16.mxu1 %v5275_v52 }
 0x4ca   :  { %5278 = vmatpush3.bf16.msra.mxu1 %v5275_v52  ;;  %v1357_v52 = vld [vmem:[#allocation7 + $0xb0] sm:$0xff] }
 0x4cb   :  { %5226 = vmatpush3.bf16.msra.mxu0 %v5223_v10  ;;  %5280 = vmatprep.subr.bf16.mxu1 %v5279_v58  ;;  %v1068_v10 = vld [vmem:[#allocation7 + $0xa8] sm:$0xff] }
 0x4cc   :  { %5228 = vmatprep.subr.bf16.mxu0 %v5227_v18 }
 0x4ce   :  { %5282 = vmatpush3.bf16.msra.mxu1 %v5279_v58 }
 0x4cf   :  { %5230 = vmatpush3.bf16.msra.mxu0 %v5227_v18  ;;  %v974_v18 = vld [vmem:[#allocation7 + $0x118] sm:$0xff] }
 0x4d0   :  { %5232 = vmatprep.subr.bf16.mxu0 %v5231_v27 }
 0x4d3   :  { %5234 = vmatpush3.bf16.msra.mxu0 %v5231_v27  ;;  %v1271_v27 = vld [vmem:[#allocation4 + $0x100] sm:$0xff] }
 0x4d4   :  { %5236 = vmatprep.subr.bf16.mxu0 %v5235_v33  ;;  %v5303_v29 = vpack.c.bf16 %v1272_v28, %v1271_v27 }
 0x4d7   :  { %5238 = vmatpush3.bf16.msra.mxu0 %v5235_v33  ;;  %v1275_v33 = vld [vmem:[#allocation4 + $0x1a0] sm:$0xff] }
 0x4d8   :  { %5240 = vmatprep.subr.bf16.mxu0 %v5239_v40 }
 0x4db   :  { %5242 = vmatpush3.bf16.msra.mxu0 %v5239_v40  ;;  %v1280_v40 = vld [vmem:[#allocation4 + $0x268] sm:$0xff] }
 0x4dc   :  { %5244 = vmatprep.subr.bf16.mxu0 %v5243_v49 }
 0x4df   :  { %5246 = vmatpush3.bf16.msra.mxu0 %v5243_v49 }
 0x599   :  { %v4679_v59 = vpop.f32.mrb[6].mxu0 }
 0x59a   :  { %v840_v60 = vadd.f32 1e-05, %v4679_v59  ;;  %v834_v61 = vpop.f32.mrb[7].mxu0 }
 0x59b   :  { %v835_v62 = vadd.f32 1e-05, %v834_v61 }
 0x59c   :  { %5699 = vrsqrt.f32 %v840_v60 }
 0x59d   :  { %5701 = vrsqrt.f32 %v835_v62 }
 0x5a6   :  { %v5700_v3 = vpop.eup %5699 }
 0x5a7   :  { %v5702_v8 = vpop.eup %5701  ;;  %849 = vrot.lane.b32.xlu1 %v5700_v3, %s5840_s0 }
 0x5a8   :  { %847 = vrot.lane.b32.xlu0 %v5702_v8, %s5840_s0 }
 0x5ab   :  { %872 = vperm.xlu1 %5607, %v5962_v21  }
 0x5af   :  { %5608 = vset.pattern.permute.xlu1 %v5837_v20 }
 0x5b0   :  { %1463 = vperm.xlu1 %5608, %v6015_v43  }
 0x5b4   :  { %1473 = vperm.xlu1 %5608, %v6021_v45  }
 0x5b8   :  { %1478 = vperm.xlu1 %5608, %v6024_v46  }
 0x619   :  { %v850_v35 = vpop.permute.xlu1 %849 }
 0x61a   :  { %v854_v39 = vmul.f32 %v850_v35, %v5962_v21  ;;  %v848_v42 = vpop.permute.xlu0 %847  ;;  %v895_v21 = vld [vmem:[#allocation4 + $0x230] sm:$0xff]  ;;  %v5311_v35 = vpack.c.bf16 %v1276_v34, %v1275_v33 }
 0x61b   :  { %v853_v47 = vmul.f32 %v848_v42, %v5957_v19  ;;  %v5247_v56 = vpack.c.bf16 %v896_v54, %v895_v21  ;;  %v1356_v42 = vld [vmem:[#allocation7 + $0x38] sm:$0xff]  ;;  %v1358_v21 = vld [vmem:[#allocation7 + $0x128] sm:$0xff]  ;;  %v1359_v54 = vld [vmem:[#allocation7 + $0x1a0] sm:$0xff] }
 0x61c   :  { %862 = vperm.xlu0 %5605, %v854_v39   ;;  %v1279_v39 = vld [vmem:[#allocation4 + $0x240] sm:$0xff] }
 0x61d   :  { %5248 = vmatprep.subr.bf16.mxu0 %v5247_v56  ;;  %v5319_v41 = vpack.c.bf16 %v1280_v40, %v1279_v39 }
 0x61e   :  { %5250 = vmatpush3.bf16.msra.mxu0 %v5247_v56 }
 0x620   :  { %857 = vperm.xlu0 %5605, %v853_v47  }
 0x624   :  { %5606 = vset.pattern.permute.xlu0 %v5839_v0 }
 0x625   :  { %868 = vperm.xlu0 %5606, %v5957_v19   ;;  %v1067_v19 = vld [vmem:[#allocation7 + $0x30] sm:$0xff] }
 0x629   :  { %5609 = vset.pattern.permute.xlu0 %v5837_v20 }
 0x62a   :  { %v873_v62 = vpop.permute.xlu1 %872  ;;  %1468 = vperm.xlu0 %5609, %v6017_v44  }
 0x62f   :  { %v1464_v55 = vpop.permute.xlu1 %1463 }
 0x633   :  { %v1474_v58 = vpop.permute.xlu1 %1473 }
 0x69b   :  { %v863_v59 = vpop.permute.xlu0 %862 }
 0x69c   :  { %v866_v61 = vmul.f32 %v863_v59, %v5979_v51 }
 0x69e   :  { %v6001_v3 = vadd.f32 %v873_v62, %v866_v61 }
 0x69f   :  { %v858_v60 = vpop.permute.xlu0 %857 }
 0x6a0   :  { %v865_v1 = vmul.f32 %v858_v60, %v5981_v53  ;;  %v1265_v53 = vld [vmem:[#allocation4 + $0x10] sm:$0xff] }
 0x6a1   :  { %v5291_v12 = vpack.c.bf16 %v1266_v9, %v1265_v53 }
 0x6a4   :  { %v869_v48 = vpop.permute.xlu0 %868 }
 0x6a5   :  { %v875_v2 = vadd.f32 %v869_v48, %v865_v1 }
 0x6a7   :  { %4712 = vmatprep.mubr.f32.mxu0 %v875_v2  ;;  %4747 = vmatprep.mubr.f32.mxu1 %v875_v2 }
 0x6a8   :  { %4713 = vmatmul.mubr.f32.vlgmr.msra.gmra.mrb[8].mxu0 %v6001_v3  ;;  %4748 = vmatmul.mubr.f32.vlgmr.msra.gmra.mrb[4].mxu1 %v6001_v3 }
 0x6a9   :  { %4754 = vmatprep.mubr.msk.f32.mxu0 %vm668_vm2, %v1067_v19  ;;  %v1469_v56 = vpop.permute.xlu0 %1468  ;;  %v1479_v19 = vpop.permute.xlu1 %1478 }
 0x77b   :  { %v4714_v4 = vpop.f32.mrb[8].mxu0  ;;  %v4749_v5 = vpop.f32.mrb[4].mxu1 }
 0x77c   :  { %v963_v6 = vpop.f32.mrb[9].mxu0  ;;  %v1058_v51 = vpop.f32.mrb[5].mxu1 }
 0x77d   :  { %v5287_v7 = vpack.c.bf16 %v4714_v4, %v963_v6  ;;  %v5283_v8 = vpack.c.bf16 %v4749_v5, %v1058_v51  ;;  %v1485_v51 = vld [vmem:[#allocation7 + $0x40] sm:$0xff] }
 0x77e   :  { %4837 = vmatprep.mubr.msk.f32.mxu1 %vm1502_vm4, %v1485_v51 }
 0x77f   :  { %5284 = vmatprep.subr.bf16.mxu0 %v5283_v8 }
 0x780   :  { %5286 = vmatpush3.bf16.msra.mxu0 %v5283_v8 }
 0x781   :  { %5288 = vmatprep.subr.bf16.mxu0 %v5287_v7 }
 0x783   :  { %4755 = vmatmul.mubr.msk.f32.vlgmr.msra.gmra.mrb[10].mxu0 %vm668_vm2, %v1068_v10 }
 0x784   :  { %5290 = vmatpush3.bf16.msra.mxu0 %v5287_v7  ;;  %4757 = vmatprep.mubr.msk.f32.mxu0 %vm668_vm2, %v1069_v11 }
 0x785   :  { %5292 = vmatprep.subr.bf16.mxu0 %v5291_v12 }
 0x787   :  { %4758 = vmatmul.mubr.msk.f32.gmra.mrb[12].mxu0 %vm668_vm2, %v1070_v13  ;;  %v1487_v13 = vld [vmem:[#allocation7 + $0x130] sm:$0xff] }
 0x788   :  { %4764 = vmatprep.mubr.msk.f32.mxu0 %vm668_vm2, %v972_v14  ;;  %v1488_v14 = vld [vmem:[#allocation7 + $0x1a8] sm:$0xff] }
 0x78b   :  { %4765 = vmatmul.mubr.msk.f32.vlgmr.msra.gmra.mrb[10].mxu0 %vm668_vm2, %v973_v17 }
 0x78c   :  { %5294 = vmatpush3.bf16.msra.mxu0 %v5291_v12  ;;  %4767 = vmatprep.mubr.msk.f32.mxu0 %vm668_vm2, %v974_v18  ;;  %v1486_v12 = vld [vmem:[#allocation7 + $0xb8] sm:$0xff] }
 0x78d   :  { %5296 = vmatprep.subr.bf16.mxu0 %v5295_v22 }
 0x78f   :  { %4768 = vmatmul.mubr.msk.f32.gmra.mrb[12].mxu0 %vm668_vm2, %v975_v25 }
 0x790   :  { %5298 = vmatpush3.bf16.msra.mxu0 %v5295_v22  ;;  %4802 = vmatprep.mubr.f32.mxu0 %v875_v2 }
 0x791   :  { %5300 = vmatprep.subr.bf16.mxu0 %v5299_v26 }
 0x794   :  { %5302 = vmatpush3.bf16.msra.mxu0 %v5299_v26 }
 0x795   :  { %5304 = vmatprep.subr.bf16.mxu0 %v5303_v29 }
 0x798   :  { %5306 = vmatpush3.bf16.msra.mxu0 %v5303_v29 }
 0x799   :  { %5308 = vmatprep.subr.bf16.mxu0 %v5307_v32 }
 0x79c   :  { %5310 = vmatpush3.bf16.msra.mxu0 %v5307_v32 }
 0x79d   :  { %5312 = vmatprep.subr.bf16.mxu0 %v5311_v35 }
 0x7a0   :  { %5314 = vmatpush3.bf16.msra.mxu0 %v5311_v35 }
 0x7a1   :  { %5316 = vmatprep.subr.bf16.mxu0 %v5315_v38 }
 0x7a4   :  { %5318 = vmatpush3.bf16.msra.mxu0 %v5315_v38 }
 0x7a5   :  { %5320 = vmatprep.subr.bf16.mxu0 %v5319_v41 }
 0x7a8   :  { %5322 = vmatpush3.bf16.msra.mxu0 %v5319_v41 }
 0x7ab   :  { %4803 = vmatmul.mubr.f32.vlgmr.msra.gmra.mrb[14].mxu0 %v6001_v3 }
 0x7ac   :  { %4809 = vmatprep.mubr.msk.f32.mxu0 %vm668_vm2, %v1356_v42 }
 0x87e   :  { %v4804_v47 = vpop.f32.mrb[14].mxu0 }
 0x87f   :  { %v1347_v49 = vpop.f32.mrb[15].mxu0 }
 0x880   :  { %v5323_v50 = vpack.c.bf16 %v4804_v47, %v1347_v49 }
 0x882   :  { %5324 = vmatprep.subr.bf16.mxu0 %v5323_v50 }
 0x883   :  { %5326 = vmatpush3.bf16.msra.mxu0 %v5323_v50 }
 0x886   :  { %4810 = vmatmul.mubr.msk.f32.vlgmr.msra.gmra.mrb[10].mxu0 %vm668_vm2, %v1357_v52 }
 0x887   :  { %4812 = vmatprep.mubr.msk.f32.mxu0 %vm668_vm2, %v1358_v21 }
 0x88a   :  { %4813 = vmatmul.mubr.msk.f32.gmra.mrb[12].mxu0 %vm668_vm2, %v1359_v54 }
 0x88b   :  { %4823 = vmatprep.mubr.msk.f32.mxu0 %vm1502_vm4, %v1485_v51  ;;  %v2001_v51 = vld [vmem:[#allocation6 + $0xa0] sm:$0xff] }
 0x959   :  { %v4811_v57 = vpop.f32.mrb[10].mxu0 }
 0x95a   :  { %v1482_v59 = vadd.f32 %v4811_v57, %v1469_v56  ;;  %v1438_v60 = vpop.f32.mrb[11].mxu0 }
 0x95b   :  { %v1481_v61 = vadd.f32 %v1464_v55, %v1438_v60 }
 0x95c   :  { %v1493_v62 = vsel %vm1489_vm3, %v1482_v59, 0.0 }
 0x95d   :  { %v4814_v1 = vpop.f32.mrb[12].mxu0  ;;  %1494 = vadd.xlane.f32.xlu1 %v1493_v62  ;;  %v1490_v48 = vsel %vm1489_vm3, %v1481_v61, 0.0  ;;  %v1797_v62 = vld [vmem:[#allocation6] sm:$0xff] }
 0x95e   :  { %1491 = vadd.xlane.f32.xlu0 %v1490_v48  ;;  %v1448_v2 = vpop.f32.mrb[13].mxu0  ;;  %v1484_v4 = vadd.f32 %v4814_v1, %v1479_v19  ;;  %v1798_v1 = vld [vmem:[#allocation6 + $0x48] sm:$0xff]  ;;  %v1999_v48 = vld [vmem:[#allocation6 + $0x10] sm:$0xff] }
 0x95f   :  { %v1483_v3 = vadd.f32 %v1474_v58, %v1448_v2  ;;  %v5343_v2 = vpack.c.bf16 %v1798_v1, %v1797_v62  ;;  %v1799_v19 = vld [vmem:[#allocation6 + $0x90] sm:$0xff] }
 0x960   :  { %v1499_v6 = vsel %vm1489_vm3, %v1484_v4, 0.0 }
 0x961   :  { %v1496_v5 = vsel %vm1489_vm3, %v1483_v3, 0.0 }
 0x962   :  { %1497 = vadd.xlane.f32.xlu0 %v1496_v5 }
 0x966   :  { %1500 = vadd.xlane.f32.xlu0 %v1499_v6 }
 0x9ea   :  { %v1495_v7 = vpop.xlane.xlu1 %1494 }
 0x9eb   :  { %v1492_v8 = vpop.xlane.xlu0 %1491 }
 0x9ec   :  { %v5327_v53 = vpack.c.bf16 %v1495_v7, %v1492_v8  ;;  %v2002_v7 = vld [vmem:[#allocation6 + $0xe8] sm:$0xff] }
 0x9ed   :  { %v5379_v8 = vpack.c.bf16 %v2002_v7, %v2001_v51  ;;  %v2107_v51 = vld [vmem:[#allocation6 + $0xf0] sm:$0xff] }
 0x9ee   :  { %5328 = vmatprep.subr.bf16.mxu0 %v5327_v53  ;;  %v2215_v7 = vld [vmem:[#allocation6 + $0xb0] sm:$0xff] }
 0x9ef   :  { %5330 = vmatpush3.bf16.msra.mxu0 %v5327_v53  ;;  %v1498_v9 = vpop.xlane.xlu0 %1497 }
 0x9f3   :  { %v1501_v10 = vpop.xlane.xlu0 %1500 }
 0x9f4   :  { %v5331_v11 = vpack.c.bf16 %v1501_v10, %v1498_v9 }
 0x9f6   :  { %5332 = vmatprep.subr.bf16.mxu0 %v5331_v11 }
 0x9f7   :  { %5334 = vmatpush3.bf16.msra.mxu0 %v5331_v11 }
 0x9fa   :  { %4824 = vmatmul.mubr.msk.f32.vlgmr.msra.gmra.mrb[16].mxu0 %vm1502_vm4, %v1486_v12 }
 0x9fb   :  { %4826 = vmatprep.mubr.msk.f32.mxu0 %vm1502_vm4, %v1487_v13 }
 0x9fe   :  { %4827 = vmatmul.mubr.msk.f32.gmra.mrb[18].mxu0 %vm1502_vm4, %v1488_v14 }
 0xacd   :  { %v4825_v15 = vpop.f32.mrb[16].mxu0 }
 0xace   :  { %1607 = vperm.xlu0 %5609, %v4825_v15   ;;  %v1581_v16 = vpop.f32.mrb[17].mxu0 }
 0xacf   :  { %1602 = vperm.xlu1 %5608, %v1581_v16   ;;  %v2004_v16 = vld [vmem:[#allocation6 + $0x178] sm:$0xff] }
 0xad1   :  { %v4828_v17 = vpop.f32.mrb[18].mxu0 }
 0xad2   :  { %v1591_v18 = vpop.f32.mrb[19].mxu0  ;;  %5612 = vset.pattern.permute.xlu0 %v5838_v63 }
 0xad3   :  { %1612 = vperm.xlu1 %5608, %v1591_v18  }
 0xad7   :  { %1617 = vperm.xlu1 %5608, %v4828_v17  }
 0xadb   :  { %5610 = vset.pattern.permute.xlu1 %v5838_v63 }
 0xb4d   :  { %v1608_v22 = vpop.permute.xlu0 %1607 }
 0xb4e   :  { %v6041_v23 = vsub.f32 %v1482_v59, %v1608_v22  ;;  %v1603_v24 = vpop.permute.xlu1 %1602  ;;  %v1803_v22 = vld [vmem:[#allocation6 + $0x1b0] sm:$0xff] }
 0xb4f   :  { %v6043_v25 = vsub.f32 %v1481_v61, %v1603_v24  ;;  %v1804_v24 = vld [vmem:[#allocation6 + $0x1f8] sm:$0xff] }
 0xb50   :  { %v1625_v26 = vmul.f32 %v6041_v23, %v6041_v23 }
 0xb51   :  { %v1624_v27 = vmul.f32 %v6043_v25, %v6043_v25 }
 0xb52   :  { %v1613_v28 = vpop.permute.xlu1 %1612  ;;  %v1631_v29 = vsel %vm1489_vm3, %v1625_v26, 0.0  ;;  %v2005_v26 = vld [vmem:[#allocation6 + $0x1c0] sm:$0xff] }
 0xb53   :  { %v6050_v30 = vsub.f32 %v1483_v3, %v1613_v28  ;;  %1632 = vadd.xlane.f32.xlu1 %v1631_v29  ;;  %v1628_v31 = vsel %vm1489_vm3, %v1624_v27, 0.0  ;;  %v2000_v3 = vld [vmem:[#allocation6 + $0x58] sm:$0xff]  ;;  %v5355_v27 = vpack.c.bf16 %v1804_v24, %v1803_v22  ;;  %v2006_v28 = vld [vmem:[#allocation6 + $0x208] sm:$0xff] }
 0xb54   :  { %1629 = vadd.xlane.f32.xlu0 %v1628_v31  ;;  %v5375_v5 = vpack.c.bf16 %v2000_v3, %v1999_v48  ;;  %v5387_v29 = vpack.c.bf16 %v2006_v28, %v2005_v26  ;;  %v2213_v3 = vld [vmem:[#allocation6 + $0x20] sm:$0xff] }
 0xb55   :  { %v1626_v32 = vmul.f32 %v6050_v30, %v6050_v30 }
 0xb56   :  { %v1618_v33 = vpop.permute.xlu1 %1617  ;;  %5376 = vmatprep.subr.bf16.mxu0 %v5375_v5 }
 0xb57   :  { %v6055_v34 = vsub.f32 %v1484_v4, %v1618_v33  ;;  %v1634_v35 = vsel %vm1489_vm3, %v1626_v32, 0.0  ;;  %v1800_v4 = vld [vmem:[#allocation6 + $0xd8] sm:$0xff]  ;;  %5378 = vmatpush3.bf16.msra.mxu0 %v5375_v5  ;;  %v1902_v33 = vld [vmem:[#allocation6 + $0x8] sm:$0xff] }
 0xb58   :  { %1635 = vadd.xlane.f32.xlu0 %v1634_v35  ;;  %v5347_v6 = vpack.c.bf16 %v1800_v4, %v1799_v19  ;;  %5380 = vmatprep.subr.bf16.mxu0 %v5379_v8  ;;  %v1903_v35 = vld [vmem:[#allocation6 + $0x50] sm:$0xff]  ;;  %v2214_v4 = vld [vmem:[#allocation6 + $0x68] sm:$0xff] }
 0xb59   :  { %v1627_v36 = vmul.f32 %v6055_v34, %v6055_v34  ;;  %v5399_v5 = vpack.c.bf16 %v2214_v4, %v2213_v3  ;;  %v2305_v4 = vld [vmem:[#allocation7 + $0x1c0] sm:$0xff] }
 0xb5b   :  { %v1637_v37 = vsel %vm1489_vm3, %v1627_v36, 0.0  ;;  %5382 = vmatpush3.bf16.msra.mxu0 %v5379_v8  ;;  %v5359_v36 = vpack.c.bf16 %v1903_v35, %v1902_v33 }
 0xb5c   :  { %1638 = vadd.xlane.f32.xlu0 %v1637_v37 }
 0xbe0   :  { %v1633_v38 = vpop.xlane.xlu1 %1632 }
 0xbe1   :  { %v1630_v39 = vpop.xlane.xlu0 %1629 }
 0xbe2   :  { %v5335_v40 = vpack.c.bf16 %v1633_v38, %v1630_v39 }
 0xbe4   :  { %5336 = vmatprep.subr.bf16.mxu1 %v5335_v40 }
 0xbe5   :  { %v1636_v41 = vpop.xlane.xlu0 %1635  ;;  %5338 = vmatpush3.bf16.msra.mxu1 %v5335_v40 }
 0xbe9   :  { %v1639_v42 = vpop.xlane.xlu0 %1638 }
 0xbea   :  { %v5339_v47 = vpack.c.bf16 %v1639_v42, %v1636_v41 }
 0xbec   :  { %5340 = vmatprep.subr.bf16.mxu1 %v5339_v47 }
 0xbed   :  { %5342 = vmatpush3.bf16.msra.mxu1 %v5339_v47  ;;  %v1904_v47 = vld [vmem:[#allocation6 + $0x98] sm:$0xff] }
 0xbee   :  { %5344 = vmatprep.subr.bf16.mxu1 %v5343_v2 }
 0xbf0   :  { %4838 = vmatmul.mubr.msk.f32.vlgmr.msra.gmra.mrb[6].mxu1 %vm1502_vm4, %v1486_v12  ;;  %v1801_v12 = vld [vmem:[#allocation6 + $0x120] sm:$0xff] }
 0xbf1   :  { %4840 = vmatprep.mubr.msk.f32.mxu1 %vm1502_vm4, %v1487_v13  ;;  %5346 = vmatpush3.bf16.msra.mxu1 %v5343_v2  ;;  %v1802_v13 = vld [vmem:[#allocation6 + $0x168] sm:$0xff] }
 0xbf2   :  { %5348 = vmatprep.subr.bf16.mxu1 %v5347_v6  ;;  %v5351_v15 = vpack.c.bf16 %v1802_v13, %v1801_v12 }
 0xbf4   :  { %4841 = vmatmul.mubr.msk.f32.gmra.mrb[8].mxu1 %vm1502_vm4, %v1488_v14  ;;  %v2003_v14 = vld [vmem:[#allocation6 + $0x130] sm:$0xff] }
 0xbf5   :  { %5350 = vmatpush3.bf16.msra.mxu1 %v5347_v6  ;;  %v5383_v17 = vpack.c.bf16 %v2004_v16, %v2003_v14  ;;  %v2106_v6 = vld [vmem:[#allocation6 + $0xa8] sm:$0xff] }
 0xbf6   :  { %5352 = vmatprep.subr.bf16.mxu1 %v5351_v15  ;;  %v5395_v8 = vpack.c.bf16 %v2107_v51, %v2106_v6  ;;  %v2306_v6 = vld [vmem:[#allocation7 + $0x238] sm:$0xff]  ;;  %v2307_v51 = vld [vmem:[#allocation7 + $0x2b0] sm:$0xff] }
 0xbf7   :  { %5384 = vmatprep.subr.bf16.mxu0 %v5383_v17 }
 0xbf8   :  { %5386 = vmatpush3.bf16.msra.mxu0 %v5383_v17 }
 0xbf9   :  { %5354 = vmatpush3.bf16.msra.mxu1 %v5351_v15  ;;  %5388 = vmatprep.subr.bf16.mxu0 %v5387_v29 }
 0xbfa   :  { %5356 = vmatprep.subr.bf16.mxu1 %v5355_v27 }
 0xbfc   :  { %5390 = vmatpush3.bf16.msra.mxu0 %v5387_v29 }
 0xbfd   :  { %5358 = vmatpush3.bf16.msra.mxu1 %v5355_v27  ;;  %5400 = vmatprep.subr.bf16.mxu0 %v5399_v5 }
 0xbfe   :  { %5360 = vmatprep.subr.bf16.mxu1 %v5359_v36 }
 0xcc3   :  { %v4839_v49 = vpop.f32.mrb[6].mxu1 }
 0xcc4   :  { %v1712_v50 = vadd.f32 1e-05, %v4839_v49  ;;  %v1706_v52 = vpop.f32.mrb[7].mxu1 }
 0xcc5   :  { %v1707_v21 = vadd.f32 1e-05, %v1706_v52 }
 0xcc6   :  { %5703 = vrsqrt.f32 %v1712_v50 }
 0xcc7   :  { %5705 = vrsqrt.f32 %v1707_v21  ;;  %v4842_v54 = vpop.f32.mrb[8].mxu1 }
 0xcc8   :  { %v1716_v55 = vpop.f32.mrb[9].mxu1  ;;  %v1722_v57 = vadd.f32 1e-05, %v4842_v54  ;;  %v1907_v54 = vld [vmem:[#allocation6 + $0x170] sm:$0xff] }
 0xcc9   :  { %v1717_v56 = vadd.f32 1e-05, %v1716_v55 }
 0xccb   :  { %5707 = vrsqrt.f32 %v1717_v56  ;;  %v1908_v56 = vld [vmem:[#allocation6 + $0x1b8] sm:$0xff] }
 0xccc   :  { %5709 = vrsqrt.f32 %v1722_v57  ;;  %v1909_v57 = vld [vmem:[#allocation6 + $0x200] sm:$0xff] }
 0xcd0   :  { %v5704_v58 = vpop.eup %5703 }
 0xcd1   :  { %v5706_v59 = vpop.eup %5705  ;;  %1735 = vrot.lane.b32.xlu0 %v5704_v58, %s5840_s0 }
 0xcd2   :  { %1733 = vrot.lane.b32.xlu1 %v5706_v59, %s5840_s0 }
 0xcd5   :  { %v5708_v60 = vpop.eup %5707 }
 0xcd6   :  { %1737 = vrot.lane.b32.xlu1 %v5708_v60, %s5840_s0  ;;  %v5710_v61 = vpop.eup %5709 }
 0xcda   :  { %1739 = vrot.lane.b32.xlu1 %v5710_v61, %s5840_s0  ;;  %v5371_v61 = vpack.c.bf16 %v1909_v57, %v1908_v56 }
 0xd43   :  { %v1736_v53 = vpop.permute.xlu0 %1735 }
 0xd44   :  { %v1746_v9 = vmul.f32 %v1736_v53, %v6017_v44  ;;  %v1734_v10 = vpop.permute.xlu1 %1733  ;;  %v2216_v53 = vld [vmem:[#allocation6 + $0xf8] sm:$0xff] }
 0xd45   :  { %v1745_v11 = vmul.f32 %v1734_v10, %v6015_v43  ;;  %v2568_v10 = vld [vmem:[#allocation6 + $0x28] sm:$0xff] }
 0xd46   :  { %1756 = vperm.xlu1 %5610, %v1746_v9   ;;  %v5403_v9 = vpack.c.bf16 %v2216_v53, %v2215_v7  ;;  %v2308_v7 = vld [vmem:[#allocation7 + $0x328] sm:$0xff]  ;;  %v2205_v53 = vld [vmem:[#allocation7 + $0x50] sm:$0xff] }
 0xd47   :  { %1751 = vperm.xlu0 %5612, %v1745_v11   ;;  %v2569_v11 = vld [vmem:[#allocation6 + $0x70] sm:$0xff] }
 0xd48   :  { %v1738_v18 = vpop.permute.xlu1 %1737  ;;  %v5423_v12 = vpack.c.bf16 %v2569_v11, %v2568_v10  ;;  %v2207_v10 = vld [vmem:[#allocation7 + $0x140] sm:$0xff]  ;;  %v2208_v11 = vld [vmem:[#allocation7 + $0x1b8] sm:$0xff] }
 0xd4a   :  { %5611 = vset.pattern.permute.xlu1 %v5839_v0 }
 0xd4b   :  { %1774 = vperm.xlu1 %5611, %v6015_v43   ;;  %5613 = vset.pattern.permute.xlu0 %v5839_v0  ;;  %v1747_v43 = vmul.f32 %v1738_v18, %v6021_v45 }
 0xd4c   :  { %1778 = vperm.xlu0 %5613, %v6017_v44   ;;  %v1740_v31 = vpop.permute.xlu1 %1739 }
 0xd4d   :  { %v1748_v32 = vmul.f32 %v1740_v31, %v6024_v46  ;;  %v2570_v31 = vld [vmem:[#allocation6 + $0xb8] sm:$0xff] }
 0xd4f   :  { %5614 = vset.pattern.permute.xlu1 %v5838_v63 }
 0xd50   :  { %1766 = vperm.xlu1 %5614, %v1748_v32   ;;  %1782 = vperm.xlu0 %5613, %v6021_v45   ;;  %v1905_v45 = vld [vmem:[#allocation6 + $0xe0] sm:$0xff] }
 0xd51   :  { %v5363_v21 = vpack.c.bf16 %v1905_v45, %v1904_v47  ;;  %v2571_v32 = vld [vmem:[#allocation6 + $0x100] sm:$0xff]  ;;  %v6113_v47 = vld [vmem:[#allocation7 + $0xe8] sm:$0xff]  ;;  %v6117_v45 = vld [vmem:[#allocation7 + $0x1d8] sm:$0xff] }
 0xd54   :  { %1761 = vperm.xlu1 %5614, %v1747_v43   ;;  %5616 = vset.pattern.permute.xlu0 %v5837_v20 }
 0xd58   :  { %5615 = vset.pattern.permute.xlu1 %v5839_v0 }
 0xd59   :  { %1786 = vperm.xlu1 %5615, %v6024_v46   ;;  %v1906_v46 = vld [vmem:[#allocation6 + $0x128] sm:$0xff] }
 0xd5d   :  { %5617 = vset.pattern.permute.xlu1 %v5837_v20 }
 0xd5e   :  { %2809 = vperm.xlu1 %5617, %v6113_v47  }
 0xdc5   :  { %v1757_v44 = vpop.permute.xlu1 %1756 }
 0xdc6   :  { %v1752_v37 = vpop.permute.xlu0 %1751  ;;  %v1770_v39 = vmul.f32 %v1757_v44, %v6041_v23  ;;  %v5367_v23 = vpack.c.bf16 %v1907_v54, %v1906_v46 }
 0xdc7   :  { %v1769_v38 = vmul.f32 %v1752_v37, %v6043_v25  ;;  %v5427_v37 = vpack.c.bf16 %v2571_v32, %v2570_v31 }
 0xdca   :  { %v1775_v40 = vpop.permute.xlu1 %1774 }
 0xdcb   :  { %v1789_v41 = vadd.f32 %v1775_v40, %v1769_v38  ;;  %v1779_v42 = vpop.permute.xlu0 %1778 }
 0xdcc   :  { %v1790_v49 = vadd.f32 %v1779_v42, %v1770_v39  ;;  %v6111_v42 = vld [vmem:[#allocation7 + $0x70] sm:$0xff] }
 0xdcd   :  { %v1793_v50 = vmax.f32 %v1789_v41, 0.0  ;;  %v2302_v41 = vld [vmem:[#allocation7 + $0x58] sm:$0xff]  ;;  %2804 = vperm.xlu0 %5616, %v6111_v42  }
 0xdce   :  { %v1794_v52 = vmax.f32 %v1790_v49, 0.0  ;;  %v6119_v49 = vld [vmem:[#allocation7 + $0x160] sm:$0xff] }
 0xdcf   :  { %4859 = vmatprep.mubr.msk.f32.mxu1 %vm1489_vm3, %v1793_v50  ;;  %4903 = vmatprep.mubr.msk.f32.mxu0 %vm1489_vm3, %v1793_v50  ;;  %v1767_v20 = vpop.permute.xlu1 %1766  ;;  %v1783_v58 = vpop.permute.xlu0 %1782 }
 0xdd0   :  { %4860 = vmatmul.mubr.msk.f32.vlgmr.msra.gmra.mrb[10].mxu1 %vm1489_vm3, %v1794_v52  ;;  %4904 = vmatmul.mubr.msk.f32.vlgmr.msra.gmra.mrb[20].mxu0 %vm1489_vm3, %v1794_v52  ;;  %v1772_v60 = vmul.f32 %v1767_v20, %v6055_v34  ;;  %v2105_v34 = vld [vmem:[#allocation6 + $0x60] sm:$0xff] }
 0xdd1   :  { %5362 = vmatpush3.bf16.msra.mxu1 %v5359_v36  ;;  %5402 = vmatpush3.bf16.msra.mxu0 %v5399_v5  ;;  %v6131_v20 = vld [vmem:[#allocation7 + $0x340] sm:$0xff] }
 0xdd2   :  { %5364 = vmatprep.subr.bf16.mxu1 %v5363_v21  ;;  %5404 = vmatprep.subr.bf16.mxu0 %v5403_v9 }
 0xdd3   :  { %v1762_v25 = vpop.permute.xlu1 %1761  ;;  %2819 = vperm.xlu0 %5616, %v6117_v45   ;;  %2814 = vperm.xlu1 %5617, %v6119_v49  }
 0xdd4   :  { %v1771_v55 = vmul.f32 %v1762_v25, %v6050_v30  ;;  %v2104_v30 = vld [vmem:[#allocation6 + $0x18] sm:$0xff] }
 0xdd5   :  { %5366 = vmatpush3.bf16.msra.mxu1 %v5363_v21  ;;  %v5391_v19 = vpack.c.bf16 %v2105_v34, %v2104_v30  ;;  %5406 = vmatpush3.bf16.msra.mxu0 %v5403_v9  ;;  %v6129_v21 = vld [vmem:[#allocation7 + $0x3b8] sm:$0xff]  ;;  %v2304_v34 = vld [vmem:[#allocation7 + $0x148] sm:$0xff] }
 0xdd6   :  { %v1791_v59 = vadd.f32 %v1783_v58, %v1771_v55  ;;  %5368 = vmatprep.subr.bf16.mxu1 %v5367_v23  ;;  %5424 = vmatprep.subr.bf16.mxu0 %v5423_v12  ;;  %v2206_v9 = vld [vmem:[#allocation7 + $0xc8] sm:$0xff] }
 0xdd8   :  { %v1795_v62 = vmax.f32 %v1791_v59, 0.0  ;;  %v1787_v1 = vpop.permute.xlu1 %1786 }
 0xdd9   :  { %v1792_v48 = vadd.f32 %v1787_v1, %v1772_v60  ;;  %5370 = vmatpush3.bf16.msra.mxu1 %v5367_v23 }
 0xdda   :  { %4862 = vmatprep.mubr.msk.f32.mxu1 %vm1489_vm3, %v1795_v62  ;;  %4906 = vmatprep.mubr.msk.f32.mxu0 %vm1489_vm3, %v1795_v62 }
 0xddb   :  { %v1796_v2 = vmax.f32 %v1792_v48, 0.0  ;;  %5372 = vmatprep.subr.bf16.mxu1 %v5371_v61 }
 0xddd   :  { %4863 = vmatmul.mubr.msk.f32.gmra.mrb[12].mxu1 %vm1489_vm3, %v1796_v2  ;;  %4907 = vmatmul.mubr.msk.f32.gmra.mrb[22].mxu0 %vm1489_vm3, %v1796_v2  ;;  %v2810_v31 = vpop.permute.xlu1 %2809 }
 0xdde   :  { %5374 = vmatpush3.bf16.msra.mxu1 %v5371_v61  ;;  %4881 = vmatprep.mubr.msk.f32.mxu1 %vm1489_vm3, %v1793_v50  ;;  %v6123_v50 = vld [vmem:[#allocation7 + $0x2c8] sm:$0xff] }
 0xddf   :  { %5392 = vmatprep.subr.bf16.mxu1 %v5391_v19  ;;  %2829 = vperm.xlu0 %5616, %v6123_v50  }
 0xde1   :  { %4882 = vmatmul.mubr.msk.f32.vlgmr.msra.gmra.mrb[14].mxu1 %vm1489_vm3, %v1794_v52  ;;  %v6125_v52 = vld [vmem:[#allocation7 + $0x250] sm:$0xff] }
 0xde2   :  { %4884 = vmatprep.mubr.msk.f32.mxu1 %vm1489_vm3, %v1795_v62  ;;  %5394 = vmatpush3.bf16.msra.mxu1 %v5391_v19 }
 0xde3   :  { %5396 = vmatprep.subr.bf16.mxu1 %v5395_v8  ;;  %2824 = vperm.xlu1 %5617, %v6125_v52  }
 0xde4   :  { %2839 = vperm.xlu0 %5616, %v6129_v21  }
 0xde5   :  { %4885 = vmatmul.mubr.msk.f32.gmra.mrb[16].mxu1 %vm1489_vm3, %v1796_v2  ;;  %v2303_v2 = vld [vmem:[#allocation7 + $0xd0] sm:$0xff] }
 0xde6   :  { %5398 = vmatpush3.bf16.msra.mxu1 %v5395_v8  ;;  %v2309_v8 = vld [vmem:[#allocation7 + $0x3a0] sm:$0xff] }
 0xde7   :  { %2834 = vperm.xlu1 %5617, %v6131_v20  }
 0xea3   :  { %v4861_v13 = vpop.f32.mrb[10].mxu1  ;;  %v4905_v14 = vpop.f32.mrb[20].mxu0 }
 0xea4   :  { %v1883_v15 = vpop.f32.mrb[11].mxu1  ;;  %v2073_v16 = vpop.f32.mrb[21].mxu0 }
 0xeb0   :  { %v4864_v17 = vpop.f32.mrb[12].mxu1  ;;  %v4908_v18 = vpop.f32.mrb[22].mxu0 }
 0xeb1   :  { %v1893_v22 = vpop.f32.mrb[13].mxu1  ;;  %v2083_v24 = vpop.f32.mrb[23].mxu0 }
 0xeb4   :  { %v4883_v26 = vpop.f32.mrb[14].mxu1 }
 0xeb5   :  { %v1996_v27 = vmax.f32 %v4861_v13, %v4883_v26  ;;  %v1976_v28 = vpop.f32.mrb[15].mxu1  ;;  %v2210_v13 = vld [vmem:[#allocation7 + $0x2a8] sm:$0xff]  ;;  %v2662_v26 = vld [vmem:[#allocation7 + $0x2b8] sm:$0xff] }
 0xeb6   :  { %v1995_v29 = vmax.f32 %v1883_v15, %v1976_v28  ;;  %v2212_v15 = vld [vmem:[#allocation7 + $0x398] sm:$0xff]  ;;  %v2664_v28 = vld [vmem:[#allocation7 + $0x3a8] sm:$0xff] }
 0xeb7   :  { %v2093_v33 = vmax.f32 %v1996_v27, %v4905_v14  ;;  %v2211_v14 = vld [vmem:[#allocation7 + $0x320] sm:$0xff]  ;;  %v2663_v27 = vld [vmem:[#allocation7 + $0x330] sm:$0xff] }
 0xeb8   :  { %v2092_v35 = vmax.f32 %v1995_v29, %v2073_v16  ;;  %v4886_v36 = vpop.f32.mrb[16].mxu1  ;;  %v2657_v16 = vld [vmem:[#allocation7 + $0x60] sm:$0xff]  ;;  %v2805_v29 = vpop.permute.xlu0 %2804 }
 0xeb9   :  { %v1998_v43 = vmax.f32 %v4864_v17, %v4886_v36  ;;  %v1986_v44 = vpop.f32.mrb[17].mxu1  ;;  %v2658_v17 = vld [vmem:[#allocation7 + $0xd8] sm:$0xff] }
 0xeba   :  { %v1997_v38 = vmax.f32 %v1893_v22, %v1986_v44  ;;  %4917 = vmatprep.mubr.msk.f32.mxu1 %vm1502_vm4, %v2092_v35  ;;  %4931 = vmatprep.mubr.msk.f32.mxu0 %vm1502_vm4, %v2092_v35  ;;  %v2660_v22 = vld [vmem:[#allocation7 + $0x1c8] sm:$0xff] }
 0xebb   :  { %v2095_v39 = vmax.f32 %v1998_v43, %v4908_v18  ;;  %4918 = vmatmul.mubr.msk.f32.vlgmr.msra.gmra.mrb[18].mxu1 %vm1502_vm4, %v2093_v33  ;;  %4932 = vmatmul.mubr.msk.f32.vlgmr.msra.gmra.mrb[24].mxu0 %vm1502_vm4, %v2093_v33  ;;  %v2659_v18 = vld [vmem:[#allocation7 + $0x150] sm:$0xff] }
 0xebc   :  { %v2094_v40 = vmax.f32 %v1997_v38, %v2083_v24  ;;  %5426 = vmatpush3.bf16.msra.mxu0 %v5423_v12  ;;  %v2209_v12 = vld [vmem:[#allocation7 + $0x230] sm:$0xff]  ;;  %v2661_v24 = vld [vmem:[#allocation7 + $0x240] sm:$0xff]  ;;  %v2820_v32 = vpop.permute.xlu0 %2819 }
 0xebd   :  { %5428 = vmatprep.subr.bf16.mxu0 %v5427_v37 }
 0xebe   :  { %4920 = vmatprep.mubr.msk.f32.mxu1 %vm1502_vm4, %v2094_v40  ;;  %4934 = vmatprep.mubr.msk.f32.mxu0 %vm1502_vm4, %v2094_v40 }
 0xebf   :  { %4921 = vmatmul.mubr.msk.f32.gmra.mrb[20].mxu1 %vm1502_vm4, %v2095_v39  ;;  %4935 = vmatmul.mubr.msk.f32.gmra.mrb[26].mxu0 %vm1502_vm4, %v2095_v39 }
 0xec0   :  { %5430 = vmatpush3.bf16.msra.mxu0 %v5427_v37  ;;  %4985 = vmatprep.mubr.msk.f32.mxu0 %vm1502_vm4, %v2092_v35  ;;  %v2815_v35 = vpop.permute.xlu1 %2814 }
 0xec1   :  { %4945 = vmatprep.mubr.msk.f32.mxu1 %vm1502_vm4, %v2302_v41 }
 0xec3   :  { %4986 = vmatmul.mubr.msk.f32.vlgmr.msra.gmra.mrb[28].mxu0 %vm1502_vm4, %v2093_v33 }
 0xec4   :  { %4988 = vmatprep.mubr.msk.f32.mxu0 %vm1502_vm4, %v2094_v40 }
 0xec7   :  { %4989 = vmatmul.mubr.msk.f32.gmra.mrb[30].mxu0 %vm1502_vm4, %v2095_v39 }
 0xf8e   :  { %v4919_v46 = vpop.f32.mrb[18].mxu1  ;;  %v4933_v54 = vpop.f32.mrb[24].mxu0 }
 0xf8f   :  { %v2186_v23 = vpop.f32.mrb[19].mxu1  ;;  %v2283_v25 = vpop.f32.mrb[25].mxu0 }
 0xf90   :  { %v5415_v55 = vpack.c.bf16 %v4919_v46, %v2186_v23  ;;  %v5407_v56 = vpack.c.bf16 %v4933_v54, %v2283_v25  ;;  %v2830_v46 = vpop.permute.xlu0 %2829  ;;  %v2825_v23 = vpop.permute.xlu1 %2824 }
 0xf92   :  { %v4922_v57 = vpop.f32.mrb[20].mxu1  ;;  %v4936_v58 = vpop.f32.mrb[26].mxu0  ;;  %5408 = vmatprep.subr.bf16.mxu1 %v5407_v56 }
 0xf93   :  { %v2196_v59 = vpop.f32.mrb[21].mxu1  ;;  %v2293_v60 = vpop.f32.mrb[27].mxu0  ;;  %5410 = vmatpush3.bf16.msra.mxu1 %v5407_v56 }
 0xf94   :  { %v5419_v61 = vpack.c.bf16 %v4922_v57, %v2196_v59  ;;  %v5411_v62 = vpack.c.bf16 %v4936_v58, %v2293_v60 }
 0xf96   :  { %5412 = vmatprep.subr.bf16.mxu1 %v5411_v62  ;;  %v4987_v1 = vpop.f32.mrb[28].mxu0 }
 0xf97   :  { %5414 = vmatpush3.bf16.msra.mxu1 %v5411_v62  ;;  %v2638_v48 = vpop.f32.mrb[29].mxu0 }
 0xf98   :  { %v5431_v30 = vpack.c.bf16 %v4987_v1, %v2638_v48  ;;  %5416 = vmatprep.subr.bf16.mxu1 %v5415_v55  ;;  %v2835_v48 = vpop.permute.xlu1 %2834 }
 0xf9a   :  { %4946 = vmatmul.mubr.msk.f32.vlgmr.msra.gmra.mrb[22].mxu1 %vm1502_vm4, %v2303_v2  ;;  %v4990_v3 = vpop.f32.mrb[30].mxu0 }
 0xf9b   :  { %5418 = vmatpush3.bf16.msra.mxu1 %v5415_v55  ;;  %v2648_v19 = vpop.f32.mrb[31].mxu0  ;;  %4948 = vmatprep.mubr.msk.f32.mxu1 %vm1502_vm4, %v2304_v34 }
 0xf9c   :  { %v5435_v5 = vpack.c.bf16 %v4990_v3, %v2648_v19  ;;  %5420 = vmatprep.subr.bf16.mxu1 %v5419_v61 }
 0xf9e   :  { %4949 = vmatmul.mubr.msk.f32.gmra.mrb[24].mxu1 %vm1502_vm4, %v2305_v4  ;;  %v2850_v4 = vld [vmem:[#allocation7 + $0x68] sm:$0xff] }
 0xf9f   :  { %5422 = vmatpush3.bf16.msra.mxu1 %v5419_v61  ;;  %4951 = vmatprep.mubr.msk.f32.mxu1 %vm1502_vm4, %v2306_v6  ;;  %v2840_v61 = vpop.permute.xlu0 %2839 }
 0xfa0   :  { %5432 = vmatprep.subr.bf16.mxu1 %v5431_v30  ;;  %5027 = vmatprep.mubr.msk.f32.mxu0 %vm1489_vm3, %v2850_v4 }
 0xfa2   :  { %4952 = vmatmul.mubr.msk.f32.gmra.mrb[26].mxu1 %vm1502_vm4, %v2307_v51 }
 0xfa3   :  { %4954 = vmatprep.mubr.msk.f32.mxu1 %vm1502_vm4, %v2308_v7 }
 0xfa6   :  { %4955 = vmatmul.mubr.msk.f32.gmra.mrb[28].mxu1 %vm1502_vm4, %v2309_v8 }
 0xfa7   :  { %4965 = vmatprep.mubr.msk.f32.mxu1 %vm1502_vm4, %v2205_v53 }
 0xfaa   :  { %4966 = vmatmul.mubr.msk.f32.vlgmr.msra.gmra.mrb[22].mxu1 %vm1502_vm4, %v2206_v9 }
 0xfab   :  { %5434 = vmatpush3.bf16.msra.mxu1 %v5431_v30  ;;  %4968 = vmatprep.mubr.msk.f32.mxu1 %vm1502_vm4, %v2207_v10 }
 0xfac   :  { %5436 = vmatprep.subr.bf16.mxu1 %v5435_v5 }
 0xfae   :  { %4969 = vmatmul.mubr.msk.f32.gmra.mrb[24].mxu1 %vm1502_vm4, %v2208_v11 }
 0xfaf   :  { %5438 = vmatpush3.bf16.msra.mxu1 %v5435_v5  ;;  %4971 = vmatprep.mubr.msk.f32.mxu1 %vm1502_vm4, %v2209_v12 }
 0xfb2   :  { %4972 = vmatmul.mubr.msk.f32.gmra.mrb[26].mxu1 %vm1502_vm4, %v2210_v13 }
 0xfb3   :  { %4974 = vmatprep.mubr.msk.f32.mxu1 %vm1502_vm4, %v2211_v14 }
 0xfb6   :  { %4975 = vmatmul.mubr.msk.f32.gmra.mrb[28].mxu1 %vm1502_vm4, %v2212_v15  ;;  %v6191_v15 = vld [vmem:[#allocation7 + $0xe0] sm:$0xff] }
 0xfb7   :  { %4999 = vmatprep.mubr.msk.f32.mxu1 %vm1502_vm4, %v2657_v16  ;;  %v6193_v16 = vld [vmem:[#allocation7 + $0x158] sm:$0xff] }
 0xfba   :  { %5000 = vmatmul.mubr.msk.f32.vlgmr.msra.gmra.mrb[22].mxu1 %vm1502_vm4, %v2658_v17  ;;  %v6199_v17 = vld [vmem:[#allocation7 + $0x1d0] sm:$0xff] }
 0xfbb   :  { %5002 = vmatprep.mubr.msk.f32.mxu1 %vm1502_vm4, %v2659_v18  ;;  %v6201_v18 = vld [vmem:[#allocation7 + $0x248] sm:$0xff] }
 0xfbe   :  { %5003 = vmatmul.mubr.msk.f32.gmra.mrb[24].mxu1 %vm1502_vm4, %v2660_v22  ;;  %v6207_v22 = vld [vmem:[#allocation7 + $0x2c0] sm:$0xff] }
 0xfbf   :  { %5005 = vmatprep.mubr.msk.f32.mxu1 %vm1502_vm4, %v2661_v24  ;;  %v6209_v24 = vld [vmem:[#allocation7 + $0x338] sm:$0xff] }
 0xfc2   :  { %5006 = vmatmul.mubr.msk.f32.gmra.mrb[26].mxu1 %vm1502_vm4, %v2662_v26  ;;  %v6215_v26 = vld [vmem:[#allocation7 + $0x3b0] sm:$0xff] }
 0xfc3   :  { %5008 = vmatprep.mubr.msk.f32.mxu1 %vm1502_vm4, %v2663_v27 }
 0xfc6   :  { %5009 = vmatmul.mubr.msk.f32.gmra.mrb[28].mxu1 %vm1502_vm4, %v2664_v28 }
0x108d   :  { %v5001_v33 = vpop.f32.mrb[22].mxu1 }
0x108e   :  { %v6158_v36 = vadd.f32 %v5001_v33, %v2810_v31  ;;  %v2755_v43 = vpop.f32.mrb[23].mxu1 }
0x108f   :  { %v6160_v44 = vadd.f32 %v2805_v29, %v2755_v43 }
0x1090   :  { %v2861_v37 = vsel %vm668_vm2, %v6158_v36, 0.0 }
0x1091   :  { %v5004_v38 = vpop.f32.mrb[24].mxu1  ;;  %2862 = vadd.xlane.f32.xlu0 %v2861_v37  ;;  %v2858_v39 = vsel %vm668_vm2, %v6160_v44, 0.0 }
0x1092   :  { %v6166_v40 = vadd.f32 %v5004_v38, %v2820_v32  ;;  %2859 = vadd.xlane.f32.xlu1 %v2858_v39  ;;  %v2765_v41 = vpop.f32.mrb[25].mxu1 }
0x1093   :  { %v6168_v54 = vadd.f32 %v2815_v35, %v2765_v41 }
0x1094   :  { %v2867_v25 = vsel %vm668_vm2, %v6166_v40, 0.0 }
0x1095   :  { %v5007_v55 = vpop.f32.mrb[26].mxu1  ;;  %v2864_v56 = vsel %vm668_vm2, %v6168_v54, 0.0 }
0x1096   :  { %v6174_v57 = vadd.f32 %v5007_v55, %v2830_v46  ;;  %2868 = vadd.xlane.f32.xlu1 %v2867_v25  ;;  %v2775_v58 = vpop.f32.mrb[27].mxu1  ;;  %2865 = vadd.xlane.f32.xlu0 %v2864_v56 }
0x1097   :  { %v6176_v59 = vadd.f32 %v2825_v23, %v2775_v58 }
0x1098   :  { %v2873_v60 = vsel %vm668_vm2, %v6174_v57, 0.0 }
0x1099   :  { %v5010_v62 = vpop.f32.mrb[28].mxu1  ;;  %v2870_v1 = vsel %vm668_vm2, %v6176_v59, 0.0 }
0x109a   :  { %v6182_v2 = vadd.f32 %v5010_v62, %v2840_v61  ;;  %2874 = vadd.xlane.f32.xlu1 %v2873_v60  ;;  %v2785_v30 = vpop.f32.mrb[29].mxu1  ;;  %2871 = vadd.xlane.f32.xlu0 %v2870_v1 }
0x109b   :  { %v6184_v34 = vadd.f32 %v2835_v48, %v2785_v30 }
0x109c   :  { %v2879_v3 = vsel %vm668_vm2, %v6182_v2, 0.0 }
0x109d   :  { %v2876_v19 = vsel %vm668_vm2, %v6184_v34, 0.0 }
0x109e   :  { %2880 = vadd.xlane.f32.xlu1 %v2879_v3  ;;  %2877 = vadd.xlane.f32.xlu0 %v2876_v19 }
0x111e   :  { %v2863_v5 = vpop.xlane.xlu0 %2862 }
0x111f   :  { %v2860_v6 = vpop.xlane.xlu1 %2859 }
0x1120   :  { %v5439_v51 = vpack.c.bf16 %v2863_v5, %v2860_v6 }
0x1122   :  { %5440 = vmatprep.subr.bf16.mxu0 %v5439_v51 }
0x1123   :  { %v2866_v7 = vpop.xlane.xlu0 %2865  ;;  %5442 = vmatpush3.bf16.msra.mxu0 %v5439_v51  ;;  %v2869_v8 = vpop.xlane.xlu1 %2868 }
0x1124   :  { %v5443_v53 = vpack.c.bf16 %v2869_v8, %v2866_v7 }
0x1126   :  { %5444 = vmatprep.subr.bf16.mxu0 %v5443_v53 }
0x1127   :  { %v2872_v9 = vpop.xlane.xlu0 %2871  ;;  %5446 = vmatpush3.bf16.msra.mxu0 %v5443_v53  ;;  %v2875_v10 = vpop.xlane.xlu1 %2874 }
0x1128   :  { %v5447_v11 = vpack.c.bf16 %v2875_v10, %v2872_v9 }
0x112a   :  { %5448 = vmatprep.subr.bf16.mxu0 %v5447_v11 }
0x112b   :  { %v2878_v12 = vpop.xlane.xlu0 %2877  ;;  %5450 = vmatpush3.bf16.msra.mxu0 %v5447_v11  ;;  %v2881_v13 = vpop.xlane.xlu1 %2880 }
0x112c   :  { %v5451_v14 = vpack.c.bf16 %v2881_v13, %v2878_v12 }
0x112e   :  { %5452 = vmatprep.subr.bf16.mxu0 %v5451_v14 }
0x112f   :  { %5454 = vmatpush3.bf16.msra.mxu0 %v5451_v14 }
0x1132   :  { %5028 = vmatmul.mubr.msk.f32.vlgmr.msra.gmra.mrb[32].mxu0 %vm1489_vm3, %v6191_v15 }
0x1133   :  { %5030 = vmatprep.mubr.msk.f32.mxu0 %vm1489_vm3, %v6193_v16 }
0x1136   :  { %5031 = vmatmul.mubr.msk.f32.gmra.mrb[34].mxu0 %vm1489_vm3, %v6199_v17 }
0x1137   :  { %5033 = vmatprep.mubr.msk.f32.mxu0 %vm1489_vm3, %v6201_v18 }
0x113a   :  { %5034 = vmatmul.mubr.msk.f32.gmra.mrb[36].mxu0 %vm1489_vm3, %v6207_v22 }
0x113b   :  { %5036 = vmatprep.mubr.msk.f32.mxu0 %vm1489_vm3, %v6209_v24 }
0x113e   :  { %5037 = vmatmul.mubr.msk.f32.gmra.mrb[38].mxu0 %vm1489_vm3, %v6215_v26 }
0x113f   :  { %5055 = vmatprep.mubr.msk.f32.mxu0 %vm1489_vm3, %v2850_v4 }
0x1205   :  { %v5029_v27 = vpop.f32.mrb[32].mxu0 }
0x1206   :  { %3018 = vperm.xlu1 %5617, %v5029_v27   ;;  %v2972_v28 = vpop.f32.mrb[33].mxu0 }
0x1207   :  { %3013 = vperm.xlu0 %5616, %v2972_v28  }
0x1209   :  { %v5032_v29 = vpop.f32.mrb[34].mxu0 }
0x120a   :  { %v2982_v31 = vpop.f32.mrb[35].mxu0 }
0x120b   :  { %3028 = vperm.xlu0 %5616, %v5032_v29   ;;  %3023 = vperm.xlu1 %5617, %v2982_v31  }
0x120d   :  { %v5035_v32 = vpop.f32.mrb[36].mxu0 }
0x120e   :  { %v2992_v33 = vpop.f32.mrb[37].mxu0 }
0x120f   :  { %3038 = vperm.xlu0 %5616, %v5035_v32   ;;  %3033 = vperm.xlu1 %5617, %v2992_v33  }
0x1211   :  { %v5038_v35 = vpop.f32.mrb[38].mxu0 }
0x1212   :  { %v3002_v43 = vpop.f32.mrb[39].mxu0 }
0x1213   :  { %3048 = vperm.xlu0 %5616, %v5038_v35   ;;  %3043 = vperm.xlu1 %5617, %v3002_v43  }
0x1217   :  { %5618 = vset.pattern.permute.xlu1 %v5839_v0  ;;  %5619 = vset.pattern.permute.xlu0 %v5839_v0 }
0x1285   :  { %v3019_v37 = vpop.permute.xlu1 %3018 }
0x1286   :  { %v6223_v38 = vsub.f32 %v6158_v36, %v3019_v37  ;;  %v3014_v39 = vpop.permute.xlu0 %3013 }
0x1287   :  { %v6226_v41 = vsub.f32 %v6160_v44, %v3014_v39 }
0x1288   :  { %v3060_v46 = vmul.f32 %v6223_v38, %v6223_v38 }
0x1289   :  { %v3059_v23 = vmul.f32 %v6226_v41, %v6226_v41 }
0x128a   :  { %v3029_v25 = vpop.permute.xlu0 %3028  ;;  %v3024_v55 = vpop.permute.xlu1 %3023  ;;  %v3070_v56 = vsel %vm668_vm2, %v3060_v46, 0.0 }
0x128b   :  { %v6234_v58 = vsub.f32 %v6166_v40, %v3029_v25  ;;  %v6237_v36 = vsub.f32 %v6168_v54, %v3024_v55  ;;  %3071 = vadd.xlane.f32.xlu0 %v3070_v56  ;;  %v3067_v44 = vsel %vm668_vm2, %v3059_v23, 0.0 }
0x128c   :  { %3068 = vadd.xlane.f32.xlu1 %v3067_v44 }
0x128d   :  { %v3061_v60 = vmul.f32 %v6237_v36, %v6237_v36  ;;  %v3062_v61 = vmul.f32 %v6234_v58, %v6234_v58 }
0x128e   :  { %v3039_v62 = vpop.permute.xlu0 %3038  ;;  %v3034_v1 = vpop.permute.xlu1 %3033 }
0x128f   :  { %v6245_v48 = vsub.f32 %v6174_v57, %v3039_v62  ;;  %v6248_v40 = vsub.f32 %v6176_v59, %v3034_v1  ;;  %v3073_v54 = vsel %vm668_vm2, %v3061_v60, 0.0  ;;  %v3076_v30 = vsel %vm668_vm2, %v3062_v61, 0.0 }
0x1290   :  { %3074 = vadd.xlane.f32.xlu0 %v3073_v54  ;;  %3077 = vadd.xlane.f32.xlu1 %v3076_v30 }
0x1291   :  { %v3063_v3 = vmul.f32 %v6248_v40, %v6248_v40  ;;  %v3064_v19 = vmul.f32 %v6245_v48, %v6245_v48 }
0x1292   :  { %v3049_v4 = vpop.permute.xlu0 %3048  ;;  %v3044_v5 = vpop.permute.xlu1 %3043 }
0x1293   :  { %v6257_v57 = vsub.f32 %v6182_v2, %v3049_v4  ;;  %v6260_v59 = vsub.f32 %v6184_v34, %v3044_v5  ;;  %v3079_v6 = vsel %vm668_vm2, %v3063_v3, 0.0  ;;  %v3082_v51 = vsel %vm668_vm2, %v3064_v19, 0.0 }
0x1294   :  { %3080 = vadd.xlane.f32.xlu0 %v3079_v6  ;;  %3083 = vadd.xlane.f32.xlu1 %v3082_v51 }
0x1295   :  { %v3066_v7 = vmul.f32 %v6257_v57, %v6257_v57  ;;  %v3065_v8 = vmul.f32 %v6260_v59, %v6260_v59 }
0x1297   :  { %v3088_v53 = vsel %vm668_vm2, %v3066_v7, 0.0  ;;  %v3085_v2 = vsel %vm668_vm2, %v3065_v8, 0.0  ;;  %v3340_v7 = vld [vmem:[#allocation6 + $0x30] sm:$0xff]  ;;  %v3341_v8 = vld [vmem:[#allocation6 + $0x78] sm:$0xff] }
0x1298   :  { %3089 = vadd.xlane.f32.xlu1 %v3088_v53  ;;  %3086 = vadd.xlane.f32.xlu0 %v3085_v2  ;;  %v3471_v53 = vld [vmem:[#allocation6 + $0x38] sm:$0xff] }
0x1318   :  { %v3072_v34 = vpop.xlane.xlu0 %3071 }
0x1319   :  { %v3069_v9 = vpop.xlane.xlu1 %3068 }
0x131a   :  { %v5455_v10 = vpack.c.bf16 %v3072_v34, %v3069_v9  ;;  %v5471_v9 = vpack.c.bf16 %v3341_v8, %v3340_v7 }
0x131c   :  { %5456 = vmatprep.subr.bf16.mxu0 %v5455_v10  ;;  %5472 = vmatprep.subr.bf16.mxu1 %v5471_v9 }
0x131d   :  { %v3075_v11 = vpop.xlane.xlu0 %3074  ;;  %5458 = vmatpush3.bf16.msra.mxu0 %v5455_v10  ;;  %v3078_v12 = vpop.xlane.xlu1 %3077  ;;  %v3472_v10 = vld [vmem:[#allocation6 + $0x80] sm:$0xff]  ;;  %5474 = vmatpush3.bf16.msra.mxu1 %v5471_v9 }
0x131e   :  { %v5459_v13 = vpack.c.bf16 %v3078_v12, %v3075_v11 }
0x1320   :  { %5460 = vmatprep.subr.bf16.mxu0 %v5459_v13 }
0x1321   :  { %v3081_v14 = vpop.xlane.xlu0 %3080  ;;  %5462 = vmatpush3.bf16.msra.mxu0 %v5459_v13  ;;  %v3084_v27 = vpop.xlane.xlu1 %3083 }
0x1322   :  { %v5463_v28 = vpack.c.bf16 %v3084_v27, %v3081_v14  ;;  %v3586_v27 = vld [vmem:[#allocation6 + $0x40] sm:$0xff] }
0x1324   :  { %5464 = vmatprep.subr.bf16.mxu0 %v5463_v28 }
0x1325   :  { %v3087_v29 = vpop.xlane.xlu0 %3086  ;;  %5466 = vmatpush3.bf16.msra.mxu0 %v5463_v28  ;;  %v3090_v31 = vpop.xlane.xlu1 %3089  ;;  %v3587_v28 = vld [vmem:[#allocation6 + $0x88] sm:$0xff] }
0x1326   :  { %v5467_v32 = vpack.c.bf16 %v3090_v31, %v3087_v29 }
0x1328   :  { %5468 = vmatprep.subr.bf16.mxu0 %v5467_v32 }
0x1329   :  { %5470 = vmatpush3.bf16.msra.mxu0 %v5467_v32 }
0x132c   :  { %5056 = vmatmul.mubr.msk.f32.vlgmr.msra.gmra.mrb[40].mxu0 %vm1489_vm3, %v6191_v15 }
0x132d   :  { %5058 = vmatprep.mubr.msk.f32.mxu0 %vm1489_vm3, %v6193_v16 }
0x1330   :  { %5059 = vmatmul.mubr.msk.f32.gmra.mrb[42].mxu0 %vm1489_vm3, %v6199_v17 }
0x1331   :  { %5061 = vmatprep.mubr.msk.f32.mxu0 %vm1489_vm3, %v6201_v18 }
0x1334   :  { %5062 = vmatmul.mubr.msk.f32.gmra.mrb[44].mxu0 %vm1489_vm3, %v6207_v22 }
0x1335   :  { %5064 = vmatprep.mubr.msk.f32.mxu0 %vm1489_vm3, %v6209_v24 }
0x1338   :  { %5065 = vmatmul.mubr.msk.f32.gmra.mrb[46].mxu0 %vm1489_vm3, %v6215_v26 }
0x13ff   :  { %v5057_v33 = vpop.f32.mrb[40].mxu0 }
0x1400   :  { %v3163_v15 = vadd.f32 1e-05, %v5057_v33  ;;  %v3157_v35 = vpop.f32.mrb[41].mxu0 }
0x1401   :  { %v3158_v43 = vadd.f32 1e-05, %v3157_v35 }
0x1402   :  { %5711 = vrsqrt.f32 %v3163_v15 }
0x1403   :  { %5713 = vrsqrt.f32 %v3158_v43  ;;  %v5060_v16 = vpop.f32.mrb[42].mxu0 }
0x1404   :  { %v3173_v17 = vadd.f32 1e-05, %v5060_v16  ;;  %v3167_v37 = vpop.f32.mrb[43].mxu0 }
0x1405   :  { %v3168_v39 = vadd.f32 1e-05, %v3167_v37 }
0x1406   :  { %5715 = vrsqrt.f32 %v3173_v17 }
0x1407   :  { %5717 = vrsqrt.f32 %v3168_v39  ;;  %v5063_v18 = vpop.f32.mrb[44].mxu0 }
0x1408   :  { %v3183_v22 = vadd.f32 1e-05, %v5063_v18  ;;  %v3177_v46 = vpop.f32.mrb[45].mxu0 }
0x1409   :  { %v3178_v23 = vadd.f32 1e-05, %v3177_v46 }
0x140a   :  { %5719 = vrsqrt.f32 %v3183_v22 }
0x140b   :  { %5721 = vrsqrt.f32 %v3178_v23  ;;  %v5066_v24 = vpop.f32.mrb[46].mxu0 }
0x140c   :  { %v5712_v26 = vpop.eup %5711  ;;  %v3193_v25 = vadd.f32 1e-05, %v5066_v24  ;;  %v3187_v55 = vpop.f32.mrb[47].mxu0 }
0x140d   :  { %v5714_v56 = vpop.eup %5713  ;;  %v3188_v44 = vadd.f32 1e-05, %v3187_v55  ;;  %3214 = vrot.lane.b32.xlu1 %v5712_v26, %s5840_s0 }
0x140e   :  { %5723 = vrsqrt.f32 %v3193_v25  ;;  %3212 = vrot.lane.b32.xlu0 %v5714_v56, %s5840_s0 }
0x140f   :  { %5725 = vrsqrt.f32 %v3188_v44 }
0x1410   :  { %v5716_v60 = vpop.eup %5715 }
0x1411   :  { %v5718_v61 = vpop.eup %5717 }
0x1412   :  { %3216 = vrot.lane.b32.xlu1 %v5718_v61, %s5840_s0  ;;  %3218 = vrot.lane.b32.xlu0 %v5716_v60, %s5840_s0 }
0x1414   :  { %v5720_v62 = vpop.eup %5719 }
0x1415   :  { %v5722_v1 = vpop.eup %5721 }
0x1416   :  { %3220 = vrot.lane.b32.xlu1 %v5722_v1, %s5840_s0  ;;  %3222 = vrot.lane.b32.xlu0 %v5720_v62, %s5840_s0 }
0x1418   :  { %v5724_v54 = vpop.eup %5723 }
0x1419   :  { %v5726_v30 = vpop.eup %5725 }
0x141a   :  { %3224 = vrot.lane.b32.xlu1 %v5726_v30, %s5840_s0  ;;  %3226 = vrot.lane.b32.xlu0 %v5724_v54, %s5840_s0 }
0x141e   :  { %3293 = vperm.xlu1 %5618, %v6111_v42   ;;  %3301 = vperm.xlu0 %5619, %v6119_v49  }
0x1422   :  { %3297 = vperm.xlu1 %5618, %v6113_v47   ;;  %5620 = vset.pattern.permute.xlu0 %v5838_v63 }
0x1426   :  { %3305 = vperm.xlu1 %5618, %v6117_v45  }
0x142a   :  { %3309 = vperm.xlu1 %5618, %v6125_v52  }
0x142e   :  { %3313 = vperm.xlu1 %5618, %v6123_v50  }
0x1432   :  { %5621 = vset.pattern.permute.xlu1 %v5838_v63  ;;  %v5475_v63 = vpack.c.bf16 %v3472_v10, %v3471_v53 }
0x1434   :  { %5476 = vmatprep.subr.bf16.mxu0 %v5475_v63 }
0x1435   :  { %5478 = vmatpush3.bf16.msra.mxu0 %v5475_v63 }
0x147f   :  { %v3215_v3 = vpop.permute.xlu1 %3214 }
0x1480   :  { %v3237_v19 = vmul.f32 %v3215_v3, %v6113_v47  ;;  %v3213_v4 = vpop.permute.xlu0 %3212 }
0x1481   :  { %v3236_v5 = vmul.f32 %v3213_v4, %v6111_v42 }
0x1482   :  { %3251 = vperm.xlu0 %5620, %v3237_v19  }
0x1483   :  { %3246 = vperm.xlu1 %5621, %v3236_v5  }
0x1484   :  { %v3217_v6 = vpop.permute.xlu1 %3216  ;;  %v3219_v51 = vpop.permute.xlu0 %3218 }
0x1485   :  { %v3238_v2 = vmul.f32 %v3217_v6, %v6119_v49  ;;  %v3239_v34 = vmul.f32 %v3219_v51, %v6117_v45 }
0x1487   :  { %3256 = vperm.xlu0 %5620, %v3238_v2   ;;  %3261 = vperm.xlu1 %5621, %v3239_v34  }
0x1488   :  { %v3221_v47 = vpop.permute.xlu1 %3220  ;;  %v3223_v11 = vpop.permute.xlu0 %3222 }
0x1489   :  { %v3240_v42 = vmul.f32 %v3221_v47, %v6125_v52  ;;  %v3241_v12 = vmul.f32 %v3223_v11, %v6123_v50  ;;  %v5479_v52 = vpack.c.bf16 %v3587_v28, %v3586_v27 }
0x148b   :  { %3266 = vperm.xlu1 %5621, %v3240_v42   ;;  %3271 = vperm.xlu0 %5620, %v3241_v12  }
0x148c   :  { %v3225_v49 = vpop.permute.xlu1 %3224  ;;  %v3227_v13 = vpop.permute.xlu0 %3226  ;;  %5480 = vmatprep.subr.bf16.mxu1 %v5479_v52 }
0x148d   :  { %v3242_v45 = vmul.f32 %v3225_v49, %v6131_v20  ;;  %v3243_v14 = vmul.f32 %v3227_v13, %v6129_v21 }
0x148f   :  { %3276 = vperm.xlu0 %5620, %v3242_v45   ;;  %3281 = vperm.xlu1 %5621, %v3243_v14  }
0x1493   :  { %5622 = vset.pattern.permute.xlu0 %v5839_v0  ;;  %5623 = vset.pattern.permute.xlu1 %v5839_v0 }
0x1494   :  { %3317 = vperm.xlu0 %5622, %v6131_v20   ;;  %3321 = vperm.xlu1 %5623, %v6129_v21  }
0x149d   :  { %v3294_v50 = vpop.permute.xlu1 %3293  ;;  %v3302_v33 = vpop.permute.xlu0 %3301 }
0x14a1   :  { %v3298_v29 = vpop.permute.xlu1 %3297 }
0x14a5   :  { %v3306_v31 = vpop.permute.xlu1 %3305 }
0x14a9   :  { %v3310_v32 = vpop.permute.xlu1 %3309 }
0x14ad   :  { %v3314_v15 = vpop.permute.xlu1 %3313 }
0x1501   :  { %v3252_v35 = vpop.permute.xlu0 %3251 }
0x1502   :  { %v3285_v43 = vmul.f32 %v3252_v35, %v6223_v38  ;;  %v3247_v16 = vpop.permute.xlu1 %3246  ;;  %v3865_v35 = vld [vmem:[#allocation2 + $0x18] sm:$0xff] }
0x1503   :  { %v3284_v17 = vmul.f32 %v3247_v16, %v6226_v41 }
0x1504   :  { %v3325_v37 = vadd.f32 %v3298_v29, %v3285_v43  ;;  %v3881_v29 = vld [vmem:[#allocation2 + $0x218] sm:$0xff] }
0x1505   :  { %v3324_v0 = vadd.f32 %v3294_v50, %v3284_v17  ;;  %v3866_v43 = vld [vmem:[#allocation2 + $0x38] sm:$0xff] }
0x1506   :  { %v3262_v39 = vpop.permute.xlu1 %3261  ;;  %v3257_v18 = vpop.permute.xlu0 %3256  ;;  %v3333_v46 = vmax.f32 %v3325_v37, 0.0  ;;  %v5485_v17 = vpack.c.bf16 %v3866_v43, %v3865_v35 }
0x1507   :  { %v3332_v20 = vmax.f32 %v3324_v0, 0.0  ;;  %v3287_v21 = vmul.f32 %v3262_v39, %v6234_v58  ;;  %v3286_v22 = vmul.f32 %v3257_v18, %v6237_v36  ;;  %v3883_v0 = vld [vmem:[#allocation2 + $0x258] sm:$0xff] }
0x1508   :  { %v3884_v39 = vld [vmem:[#allocation2 + $0x278] sm:$0xff] }
0x1509   :  { %v3327_v23 = vadd.f32 %v3306_v31, %v3287_v21  ;;  %v3326_v24 = vadd.f32 %v3302_v33, %v3286_v22  ;;  %5071 = vmatprep.mubr.msk.f32.mxu1 %vm668_vm2, %v3332_v20  ;;  %5087 = vmatprep.mubr.msk.f32.mxu0 %vm668_vm2, %v3332_v20  ;;  %v3882_v31 = vld [vmem:[#allocation2 + $0x238] sm:$0xff]  ;;  %v5487_v21 = vpack.c.bf16 %v3884_v39, %v3883_v0 }
0x150a   :  { %v3267_v38 = vpop.permute.xlu1 %3266  ;;  %5072 = vmatmul.mubr.msk.f32.vlgmr.msra.gmra.mrb[30].mxu1 %vm668_vm2, %v3333_v46  ;;  %5088 = vmatmul.mubr.msk.f32.vlgmr.msra.gmra.mrb[48].mxu0 %vm668_vm2, %v3333_v46  ;;  %v3272_v41 = vpop.permute.xlu0 %3271  ;;  %v3867_v22 = vld [vmem:[#allocation2 + $0x58] sm:$0xff] }
0x150b   :  { %v3335_v26 = vmax.f32 %v3327_v23, 0.0  ;;  %v3334_v25 = vmax.f32 %v3326_v24, 0.0  ;;  %v3288_v55 = vmul.f32 %v3267_v38, %v6248_v40  ;;  %v3289_v58 = vmul.f32 %v3272_v41, %v6245_v48  ;;  %5482 = vmatpush3.bf16.msra.mxu1 %v5479_v52  ;;  %v3873_v0 = vld [vmem:[#allocation2 + $0x118] sm:$0xff] }
0x150c   :  { %v3874_v39 = vld [vmem:[#allocation2 + $0x138] sm:$0xff] }
0x150d   :  { %v3328_v36 = vadd.f32 %v3310_v32, %v3288_v55  ;;  %v3329_v56 = vadd.f32 %v3314_v15, %v3289_v58  ;;  %5074 = vmatprep.mubr.msk.f32.mxu1 %vm668_vm2, %v3334_v25  ;;  %5090 = vmatprep.mubr.msk.f32.mxu0 %vm668_vm2, %v3334_v25  ;;  %v5483_v15 = vpack.c.bf16 %v3882_v31, %v3881_v29  ;;  %v3890_v29 = vld [vmem:[#allocation2 + $0x338] sm:$0xff] }
0x150e   :  { %v3282_v44 = vpop.permute.xlu1 %3281  ;;  %5075 = vmatmul.mubr.msk.f32.gmra.mrb[32].mxu1 %vm668_vm2, %v3335_v26  ;;  %5091 = vmatmul.mubr.msk.f32.gmra.mrb[50].mxu0 %vm668_vm2, %v3335_v26  ;;  %v3277_v60 = vpop.permute.xlu0 %3276 }
0x150f   :  { %v3336_v61 = vmax.f32 %v3328_v36, 0.0  ;;  %v3337_v62 = vmax.f32 %v3329_v56, 0.0  ;;  %v3291_v48 = vmul.f32 %v3282_v44, %v6257_v57  ;;  %v3290_v40 = vmul.f32 %v3277_v60, %v6260_v59  ;;  %5484 = vmatprep.subr.bf16.mxu0 %v5483_v15  ;;  %v3886_v56 = vld [vmem:[#allocation2 + $0x2b8] sm:$0xff] }
0x1510   :  { %5486 = vmatpush3.bf16.msra.mxu0 %v5485_v17  ;;  %v3869_v44 = vld [vmem:[#allocation2 + $0x98] sm:$0xff] }
0x1511   :  { %5077 = vmatprep.mubr.msk.f32.mxu1 %vm668_vm2, %v3336_v61  ;;  %5093 = vmatprep.mubr.msk.f32.mxu0 %vm668_vm2, %v3336_v61  ;;  %v3870_v60 = vld [vmem:[#allocation2 + $0xb8] sm:$0xff] }
0x1512   :  { %5078 = vmatmul.mubr.msk.f32.gmra.mrb[34].mxu1 %vm668_vm2, %v3337_v62  ;;  %5094 = vmatmul.mubr.msk.f32.gmra.mrb[52].mxu0 %vm668_vm2, %v3337_v62 }
0x1513   :  { %v3322_v1 = vpop.permute.xlu1 %3321  ;;  %v3318_v54 = vpop.permute.xlu0 %3317  ;;  %5488 = vmatprep.subr.bf16.mxu0 %v5487_v21 }
0x1514   :  { %v3331_v30 = vadd.f32 %v3322_v1, %v3291_v48  ;;  %v3330_v3 = vadd.f32 %v3318_v54, %v3290_v40  ;;  %v5493_v40 = vpack.c.bf16 %v3870_v60, %v3869_v44 }
0x1516   :  { %v3339_v19 = vmax.f32 %v3331_v30, 0.0  ;;  %v3338_v4 = vmax.f32 %v3330_v3, 0.0 }
0x1518   :  { %5080 = vmatprep.mubr.msk.f32.mxu1 %vm668_vm2, %v3338_v4  ;;  %5096 = vmatprep.mubr.msk.f32.mxu0 %vm668_vm2, %v3338_v4 }
0x1519   :  { %5081 = vmatmul.mubr.msk.f32.gmra.mrb[36].mxu1 %vm668_vm2, %v3339_v19  ;;  %5097 = vmatmul.mubr.msk.f32.gmra.mrb[54].mxu0 %vm668_vm2, %v3339_v19 }
0x151a   :  { %5103 = vmatprep.mubr.msk.f32.mxu1 %vm668_vm2, %v3332_v20 }
0x151d   :  { %5104 = vmatmul.mubr.msk.f32.vlgmr.msra.gmra.mrb[38].mxu1 %vm668_vm2, %v3333_v46  ;;  %v3868_v46 = vld [vmem:[#allocation2 + $0x78] sm:$0xff] }
0x151e   :  { %5106 = vmatprep.mubr.msk.f32.mxu1 %vm668_vm2, %v3334_v25  ;;  %v5489_v24 = vpack.c.bf16 %v3868_v46, %v3867_v22  ;;  %v3891_v46 = vld [vmem:[#allocation2 + $0x358] sm:$0xff] }
0x1520   :  { %5490 = vmatpush3.bf16.msra.mxu0 %v5489_v24 }
0x1521   :  { %5107 = vmatmul.mubr.msk.f32.gmra.mrb[40].mxu1 %vm668_vm2, %v3335_v26  ;;  %v3885_v26 = vld [vmem:[#allocation2 + $0x298] sm:$0xff] }
0x1522   :  { %5109 = vmatprep.mubr.msk.f32.mxu1 %vm668_vm2, %v3336_v61  ;;  %v5491_v48 = vpack.c.bf16 %v3886_v56, %v3885_v26  ;;  %v3894_v56 = vld [vmem:[#allocation2 + $0x3b8] sm:$0xff] }
0x1524   :  { %5492 = vmatprep.subr.bf16.mxu0 %v5491_v48  ;;  %v3877_v48 = vld [vmem:[#allocation2 + $0x198] sm:$0xff] }
0x1525   :  { %5110 = vmatmul.mubr.msk.f32.gmra.mrb[42].mxu1 %vm668_vm2, %v3337_v62  ;;  %5494 = vmatpush3.bf16.msra.mxu0 %v5493_v40  ;;  %v3878_v40 = vld [vmem:[#allocation2 + $0x1b8] sm:$0xff] }
0x1526   :  { %5112 = vmatprep.mubr.msk.f32.mxu1 %vm668_vm2, %v3338_v4 }
0x1529   :  { %5113 = vmatmul.mubr.msk.f32.gmra.mrb[44].mxu1 %vm668_vm2, %v3339_v19 }
0x15dd   :  { %v5073_v57 = vpop.f32.mrb[30].mxu1  ;;  %v5089_v59 = vpop.f32.mrb[48].mxu0 }
0x15de   :  { %v3579_v5 = vmax.f32 %v5073_v57, %v5089_v59  ;;  %v3432_v6 = vpop.f32.mrb[31].mxu1  ;;  %v3539_v51 = vpop.f32.mrb[49].mxu0 }
0x15df   :  { %v3578_v7 = vmax.f32 %v3432_v6, %v3539_v51 }
0x15e1   :  { %v5076_v8 = vpop.f32.mrb[32].mxu1  ;;  %v5092_v53 = vpop.f32.mrb[50].mxu0 }
0x15e2   :  { %v3581_v2 = vmax.f32 %v5076_v8, %v5092_v53  ;;  %v3442_v34 = vpop.f32.mrb[33].mxu1  ;;  %v3549_v9 = vpop.f32.mrb[51].mxu0 }
0x15e3   :  { %v3580_v10 = vmax.f32 %v3442_v34, %v3549_v9 }
0x15e5   :  { %v5079_v63 = vpop.f32.mrb[34].mxu1  ;;  %v5095_v47 = vpop.f32.mrb[52].mxu0 }
0x15e6   :  { %v3583_v11 = vmax.f32 %v5079_v63, %v5095_v47  ;;  %v3452_v42 = vpop.f32.mrb[35].mxu1  ;;  %v3559_v12 = vpop.f32.mrb[53].mxu0 }
0x15e7   :  { %v3582_v49 = vmax.f32 %v3452_v42, %v3559_v12  ;;  %v3887_v12 = vld [vmem:[#allocation2 + $0x2d8] sm:$0xff] }
0x15ec   :  { %v5082_v13 = vpop.f32.mrb[36].mxu1  ;;  %v5098_v45 = vpop.f32.mrb[54].mxu0 }
0x15ed   :  { %v3585_v14 = vmax.f32 %v5082_v13, %v5098_v45  ;;  %v3462_v27 = vpop.f32.mrb[37].mxu1  ;;  %v3569_v28 = vpop.f32.mrb[55].mxu0  ;;  %v3871_v13 = vld [vmem:[#allocation2 + $0xd8] sm:$0xff] }
0x15ee   :  { %v3584_v52 = vmax.f32 %v3462_v27, %v3569_v28 }
0x15f0   :  { %v5105_v50 = vpop.f32.mrb[38].mxu1 }
0x15f1   :  { %v3694_v32 = vmax.f32 %v3579_v5, %v5105_v50  ;;  %v3654_v33 = vpop.f32.mrb[39].mxu1  ;;  %v3889_v50 = vld [vmem:[#allocation2 + $0x318] sm:$0xff] }
0x15f2   :  { %v6344_v16 = vmax.f32 %v3578_v7, %v3654_v33  ;;  %v5499_v22 = vpack.c.bf16 %v3890_v29, %v3889_v50  ;;  %v3991_v50 = vld [vmem:[#allocation4 + $0x160] sm:$0xff]  ;;  %v3993_v29 = vld [vmem:[#allocation4 + $0x188] sm:$0xff] }
0x15f3   :  { %v3726_v38 = vrot.slane %v3694_v32, 6  ;;  %v3718_v58 = vrot.slane %v3694_v32, 2  ;;  %v3722_v36 = vrot.slane %v3694_v32, 4 }
0x15f4   :  { %v5108_v37 = vpop.f32.mrb[40].mxu1  ;;  %v3706_v62 = vrot.slane %v6344_v16, 4 }
0x15f5   :  { %v6346_v18 = vmax.f32 %v3581_v2, %v5108_v37  ;;  %v3664_v20 = vpop.f32.mrb[41].mxu1 }
0x15f6   :  { %v6348_v23 = vmax.f32 %v3580_v10, %v3664_v20 }
0x15f7   :  { %v3750_v19 = vrot.slane %v6346_v18, 2  ;;  %v3754_v4 = vrot.slane %v6346_v18, 4  ;;  %v3758_v5 = vrot.slane %v6346_v18, 6 }
0x15f8   :  { %v5111_v41 = vpop.f32.mrb[42].mxu1  ;;  %v3738_v57 = vrot.slane %v6348_v23, 4  ;;  %v3742_v2 = vrot.slane %v6348_v23, 6  ;;  %v3734_v10 = vrot.slane %v6348_v23, 2 }
0x15f9   :  { %v3698_v25 = vmax.f32 %v3583_v11, %v5111_v41  ;;  %v3674_v55 = vpop.f32.mrb[43].mxu1  ;;  %v5501_v41 = vpack.c.bf16 %v3874_v39, %v3873_v0  ;;  %v3994_v0 = vld [vmem:[#allocation4 + $0x1a8] sm:$0xff]  ;;  %v3996_v39 = vld [vmem:[#allocation4 + $0x1d0] sm:$0xff] }
0x15fa   :  { %v6350_v61 = vmax.f32 %v3582_v49, %v3674_v55  ;;  %v3888_v49 = vld [vmem:[#allocation2 + $0x2f8] sm:$0xff] }
0x15fb   :  { %v3814_v1 = vrot.slane %v3698_v25, 6  ;;  %v5624_v54 = vpack.i.bf16 %v3694_v32, %v3698_v25  ;;  %v3806_v30 = vrot.slane %v3698_v25, 2  ;;  %v3810_v3 = vrot.slane %v3698_v25, 4  ;;  %v3875_v25 = vld [vmem:[#allocation2 + $0x158] sm:$0xff] }
0x15fc   :  { %v5114_v59 = vpop.f32.mrb[44].mxu1  ;;  %v3794_v9 = vrot.slane %v6350_v61, 4  ;;  %v3790_v31 = vrot.slane %v6350_v61, 2  ;;  %v5495_v37 = vpack.c.bf16 %v3888_v49, %v3887_v12  ;;  %v3798_v24 = vrot.slane %v6350_v61, 6  ;;  %v3876_v55 = vld [vmem:[#allocation2 + $0x178] sm:$0xff]  ;;  %v3984_v49 = vld [vmem:[#allocation4 + $0xe0] sm:$0xff] }
0x15fd   :  { %v6357_v6 = vmax.f32 %v3585_v14, %v5114_v59  ;;  %5625 = vrot.lane.b32.xlu0 %v5624_v54, %s5830_s21  ;;  %v3684_v51 = vpop.f32.mrb[45].mxu1  ;;  %v5629_v7 = vpack.i.bf16 %v3718_v58, %v3806_v30  ;;  %v5634_v8 = vpack.i.bf16 %v3722_v36, %v3810_v3  ;;  %v5639_v53 = vpack.i.bf16 %v3726_v38, %v3814_v1  ;;  %s5842_s21 = smov 56   ;;  %v3893_v36 = vld [vmem:[#allocation2 + $0x398] sm:$0xff]  ;;  %v3975_v59 = vld [vmem:[#allocation4 + $0x20] sm:$0xff] }
0x15fe   :  { %v6361_v34 = vmax.f32 %v3584_v52, %v3684_v51  ;;  %v3872_v52 = vld [vmem:[#allocation2 + $0xf8] sm:$0xff]  ;;  %v5649_v20 = vpack.i.bf16 %v3706_v62, %v3794_v9  ;;  %5496 = vmatprep.subr.bf16.mxu0 %v5495_v37  ;;  %v3710_v58 = vrot.slane %v6344_v16, 6  ;;  %v5505_v60 = vpack.c.bf16 %v3876_v55, %v3875_v25  ;;  %v3978_v9 = vld [vmem:[#allocation4 + $0x68] sm:$0xff] }
0x15ff   :  { %v3838_v63 = vrot.slane %v6357_v6, 2  ;;  %v3842_v47 = vrot.slane %v6357_v6, 4  ;;  %5630 = vrot.lane.b32.xlu1 %v5629_v7, %s5827_s8  ;;  %v5659_v11 = vpack.i.bf16 %v6346_v18, %v6357_v6  ;;  %v3846_v42 = vrot.slane %v6357_v6, 6  ;;  %s5841_s8 = smov 48   ;;  %v3895_v1 = vld [vmem:[#allocation2 + $0x3d8] sm:$0xff]  ;;  %v3976_v7 = vld [vmem:[#allocation4 + $0x40] sm:$0xff] }
0x1600   :  { %v3826_v45 = vrot.slane %v6361_v34, 4  ;;  %v3830_v14 = vrot.slane %v6361_v34, 6  ;;  %v5664_v27 = vpack.i.bf16 %v6348_v23, %v6361_v34  ;;  %v3822_v28 = vrot.slane %v6361_v34, 2  ;;  %v3892_v23 = vld [vmem:[#allocation2 + $0x378] sm:$0xff] }
0x1601   :  { %5635 = vrot.lane.b32.xlu0 %v5634_v8, %s5841_s8  ;;  %v5669_v32 = vpack.i.bf16 %v3750_v19, %v3838_v63  ;;  %v6377_v33 = vpack.i.bf16 %v3754_v4, %v3842_v47  ;;  %v6379_v15 = vpack.i.bf16 %v3758_v5, %v3846_v42  ;;  %v3702_v18 = vrot.slane %v6344_v16, 2  ;;  %v3896_v54 = vld [vmem:[#allocation2 + $0x3f8] sm:$0xff]  ;;  %v3977_v5 = vld [vmem:[#allocation4 + $0x48] sm:$0xff]  ;;  %v3979_v8 = vld [vmem:[#allocation4 + $0x70] sm:$0xff] }
0x1602   :  { %v5679_v35 = vpack.i.bf16 %v3738_v57, %v3826_v45  ;;  %v5674_v43 = vpack.i.bf16 %v3734_v10, %v3822_v28  ;;  %v6381_v17 = vpack.i.bf16 %v3742_v2, %v3830_v14  ;;  %v5497_v21 = vpack.c.bf16 %v3872_v52, %v3871_v13  ;;  %v3879_v19 = vld [vmem:[#allocation2 + $0x1d8] sm:$0xff]  ;;  %v3980_v10 = vld [vmem:[#allocation4 + $0x90] sm:$0xff]  ;;  %v3983_v63 = vld [vmem:[#allocation4 + $0xc0] sm:$0xff] }
0x1603   :  { %5640 = vrot.lane.b32.xlu1 %v5639_v53, %s5842_s21  ;;  %v5644_v38 = vpack.i.bf16 %v3702_v18, %v3790_v31  ;;  %v5503_v26 = vpack.c.bf16 %v3892_v23, %v3891_v46  ;;  %v5654_v44 = vpack.i.bf16 %v3710_v58, %v3798_v24  ;;  %v5507_v62 = vpack.c.bf16 %v3894_v56, %v3893_v36  ;;  %v3880_v4 = vld [vmem:[#allocation2 + $0x1f8] sm:$0xff]  ;;  %v3985_v47 = vld [vmem:[#allocation4 + $0xe8] sm:$0xff]  ;;  %v3987_v13 = vld [vmem:[#allocation4 + $0x110] sm:$0xff] }
0x1604   :  { %5498 = vmatpush3.bf16.msra.mxu0 %v5497_v21  ;;  %v5509_v30 = vpack.c.bf16 %v3878_v40, %v3877_v48  ;;  %v5511_v3 = vpack.c.bf16 %v3896_v54, %v3895_v1  ;;  %v5513_v57 = vpack.c.bf16 %v3880_v4, %v3879_v19  ;;  %v3974_v6 = vld [vmem:[#allocation4 + $0x18] sm:$0xff]  ;;  %v5515_v51 = vpack.c.bf16 %v3977_v5, %v3975_v59  ;;  %v3986_v28 = vld [vmem:[#allocation4 + $0x108] sm:$0xff]  ;;  %v3988_v52 = vld [vmem:[#allocation4 + $0x130] sm:$0xff] }
0x1605   :  { %5650 = vrot.lane.b32.xlu0 %v5649_v20, %s5843_s30  ;;  %5500 = vmatprep.subr.bf16.mxu0 %v5499_v22  ;;  %v3981_v53 = vld [vmem:[#allocation4 + $0x98] sm:$0xff]  ;;  %v5517_v2 = vpack.c.bf16 %v3976_v7, %v3974_v6  ;;  %v5523_v42 = vpack.c.bf16 %v3985_v47, %v3983_v63  ;;  %v5529_v31 = vpack.c.bf16 %v3988_v52, %v3986_v28  ;;  %v3999_v18 = vld [vmem:[#allocation4 + $0x200] sm:$0xff]  ;;  %v4001_v20 = vld [vmem:[#allocation4 + $0x228] sm:$0xff] }
0x1606   :  { %v5519_v34 = vpack.c.bf16 %v3981_v53, %v3979_v8  ;;  %5516 = vmatprep.subr.bf16.mxu1 %v5515_v51  ;;  %v3982_v12 = vld [vmem:[#allocation4 + $0xb8] sm:$0xff]  ;;  %v5537_v21 = vpack.c.bf16 %v3996_v39, %v3994_v0  ;;  %v5539_v22 = vpack.c.bf16 %v4001_v20, %v3999_v18  ;;  %v4000_v23 = vld [vmem:[#allocation4 + $0x220] sm:$0xff] }
0x1607   :  { %5645 = vrot.lane.b32.xlu1 %v5644_v38, %s5844_s7  ;;  %5518 = vmatpush1.bf16.msra.mxu1 %v5517_v2  ;;  %v3989_v45 = vld [vmem:[#allocation4 + $0x138] sm:$0xff]  ;;  %v5525_v14 = vpack.c.bf16 %v3984_v49, %v3982_v12 }
0x1608   :  { %5502 = vmatpush3.bf16.msra.mxu0 %v5501_v41  ;;  %5520 = vmatprep.subr.bf16.mxu1 %v5519_v34  ;;  %v3998_v46 = vld [vmem:[#allocation4 + $0x1f8] sm:$0xff] }
0x1609   :  { %5660 = vrot.lane.b32.xlu0 %v5659_v11, %s5845_s9  ;;  %5504 = vmatprep.subr.bf16.mxu0 %v5503_v26  ;;  %v5521_v11 = vpack.c.bf16 %v3980_v10, %v3978_v9  ;;  %v5541_v24 = vpack.c.bf16 %v4000_v23, %v3998_v46 }
0x160b   :  { %5655 = vrot.lane.b32.xlu1 %v5654_v44, %s5846_s10  ;;  %5522 = vmatpush1.bf16.msra.mxu1 %v5521_v11 }
0x160c   :  { %5506 = vmatpush3.bf16.msra.mxu0 %v5505_v60  ;;  %5524 = vmatprep.subr.bf16.mxu1 %v5523_v42 }
0x160d   :  { %5665 = vrot.lane.b32.xlu0 %v5664_v27, %s5847_s1  ;;  %5508 = vmatprep.subr.bf16.mxu0 %v5507_v62  ;;  %v5527_v27 = vpack.c.bf16 %v3989_v45, %v3987_v13 }
0x160f   :  { %5670 = vrot.lane.b32.xlu1 %v5669_v32, %s5848_s12  ;;  %5526 = vmatpush1.bf16.msra.mxu1 %v5525_v14  ;;  %v5531_v32 = vpack.c.bf16 %v3993_v29, %v3991_v50 }
0x1610   :  { %5510 = vmatpush3.bf16.msra.mxu0 %v5509_v30  ;;  %5528 = vmatprep.subr.bf16.mxu1 %v5527_v27 }
0x1611   :  { %5680 = vrot.lane.b32.xlu0 %v5679_v35, %s5849_s13  ;;  %5512 = vmatprep.subr.bf16.mxu0 %v5511_v3  ;;  %v3992_v35 = vld [vmem:[#allocation4 + $0x180] sm:$0xff] }
0x1613   :  { %5675 = vrot.lane.b32.xlu1 %v5674_v43, %s5833_s11  ;;  %v3995_v43 = vld [vmem:[#allocation4 + $0x1b0] sm:$0xff]  ;;  %5530 = vmatpush1.bf16.msra.mxu1 %v5529_v31 }
0x1614   :  { %5514 = vmatpush3.bf16.msra.mxu0 %v5513_v57  ;;  %5532 = vmatprep.subr.bf16.mxu1 %v5531_v32 }
0x1615   :  { %5690 = vrot.lane.b32.xlu0 %v6377_v33, %s5850_s14  ;;  %v3990_v33 = vld [vmem:[#allocation4 + $0x158] sm:$0xff] }
0x1616   :  { %v5533_v37 = vpack.c.bf16 %v3992_v35, %v3990_v33 }
0x1617   :  { %5685 = vrot.lane.b32.xlu1 %v6381_v17, %s5851_s15  ;;  %v3997_v17 = vld [vmem:[#allocation4 + $0x1d8] sm:$0xff] }
0x1618   :  { %5534 = vmatpush1.bf16.msra.mxu1 %v5533_v37 }
0x161b   :  { %5695 = vrot.lane.b32.xlu1 %v6379_v15, %s5836_s24  ;;  %v5535_v15 = vpack.c.bf16 %v3997_v17, %v3995_v43 }
0x161d   :  { %5536 = vmatprep.subr.bf16.mxu1 %v5535_v15 }
0x161e   :  { %5538 = vmatpush1.bf16.msra.mxu1 %v5537_v21 }
0x161f   :  { %5540 = vmatprep.subr.bf16.mxu1 %v5539_v22 }
0x1622   :  { %5542 = vmatpush1.bf16.msra.mxu1 %v5541_v24 }
0x166f   :  { %v5626_v38 = vpop.permute.xlu0 %5625 }
0x1670   :  { %v5628_v3 = vunpack.i.h.bf16 %v5626_v38  ;;  %v5627_v19 = vunpack.i.l.bf16 %v5626_v38 }
0x1671   :  { %v5631_v41 = vpop.permute.xlu1 %5630 }
0x1672   :  { %v5633_v5 = vunpack.i.h.bf16 %v5631_v41 }
0x1673   :  { %v5636_v26 = vpop.permute.xlu0 %5635 }
0x1674   :  { %v5638_v51 = vunpack.i.h.bf16 %v5636_v26  ;;  %v5637_v7 = vunpack.i.l.bf16 %v5636_v26 }
0x1675   :  { %v5641_v25 = vpop.permute.xlu1 %5640 }
0x1676   :  { %v5643_v34 = vunpack.i.h.bf16 %v5641_v25  ;;  %v5642_v9 = vunpack.i.l.bf16 %v5641_v25 }
0x1677   :  { %v5651_v55 = vpop.permute.xlu0 %5650 }
0x1678   :  { %v5653_v48 = vunpack.i.h.bf16 %v5651_v55  ;;  %v5652_v40 = vunpack.i.l.bf16 %v5651_v55 }
0x1679   :  { %v5646_v58 = vpop.permute.xlu1 %5645 }
0x167a   :  { %v5648_v36 = vunpack.i.h.bf16 %v5646_v58  ;;  %v5647_v56 = vunpack.i.l.bf16 %v5646_v58 }
0x167b   :  { %v6391_v44 = vpop.permute.xlu0 %5660 }
0x167c   :  { %v3763_v60 = vsel %vm3762_vm5, %v6344_v16, %v5648_v36  ;;  %v3850_v62 = vsel %vm3762_vm5, %v6350_v61, %v5647_v56  ;;  %v5632_v16 = vunpack.i.l.bf16 %v5631_v41  ;;  %v5663_v15 = vunpack.i.h.bf16 %v6391_v44 }
0x167d   :  { %v5656_v1 = vpop.permute.xlu1 %5655  ;;  %v3764_v4 = vsel %vm668_vm2, %v3763_v60, %v5653_v48  ;;  %v3851_v57 = vsel %vm668_vm2, %v3850_v62, %v5652_v40  ;;  %v5662_v0 = vunpack.i.l.bf16 %v6391_v44  ;;  %v4003_v48 = vld [vmem:[#allocation4 + $0x250] sm:$0xff]  ;;  %v4005_v40 = vld [vmem:[#allocation4 + $0x278] sm:$0xff] }
0x167e   :  { %v5658_v54 = vunpack.i.h.bf16 %v5656_v1  ;;  %v5657_v30 = vunpack.i.l.bf16 %v5656_v1  ;;  %v5543_v1 = vpack.c.bf16 %v4005_v40, %v4003_v48 }
0x167f   :  { %v5666_v59 = vpop.permute.xlu0 %5665 }
0x1680   :  { %v3766_v6 = vsel %vm3765_vm6, %v3764_v4, %v5658_v54  ;;  %v3852_v61 = vsel %vm3765_vm6, %v3851_v57, %v5657_v30  ;;  %v5668_v13 = vunpack.i.h.bf16 %v5666_v59  ;;  %v5667_v45 = vunpack.i.l.bf16 %v5666_v59  ;;  %v4002_v54 = vld [vmem:[#allocation4 + $0x248] sm:$0xff]  ;;  %v4004_v30 = vld [vmem:[#allocation4 + $0x270] sm:$0xff]  ;;  %5544 = vmatprep.subr.bf16.mxu1 %v5543_v1  ;;  %v4246_v57 = vld [vmem:[%s6433_s5] ss:$0 sm:$0xff] }
0x1681   :  { %v3767_v8 = vsel %vm1502_vm4, %v3766_v6, %v5628_v3  ;;  %v3853_v53 = vsel %vm1502_vm4, %v3852_v61, %v5627_v19  ;;  %v5671_v2 = vpop.permute.xlu1 %5670  ;;  %v5545_v3 = vpack.c.bf16 %v4004_v30, %v4002_v54  ;;  %v5852_v19 = vmov 0.0  }
0x1682   :  { %v3769_v10 = vsel %vm3768_vm7, %v3767_v8, %v5633_v5  ;;  %v3854_v63 = vsel %vm3768_vm7, %v3853_v53, %v5632_v16  ;;  %v5673_v20 = vunpack.i.h.bf16 %v5671_v2  ;;  %v5672_v21 = vunpack.i.l.bf16 %v5671_v2  ;;  %4082 = vmatprep.mubr.f32.mxu1 %v5852_v19 }
0x1683   :  { %v3771_v47 = vsel %vm3770_vm8, %v3769_v10, %v5638_v51  ;;  %v3855_v11 = vsel %vm3770_vm8, %v3854_v63, %v5637_v7  ;;  %v5681_v49 = vpop.permute.xlu0 %5680  ;;  %5546 = vmatpush1.bf16.msra.mxu1 %v5545_v3  ;;  %v4008_v6 = vlaneseq  ;;  %v4006_v7 = vld [vmem:[%s6433_s5 + $0x1] sm:$0x3] }
0x1684   :  { %v3773_v42 = vsel %vm3772_vm9, %v3771_v47, %v5643_v34  ;;  %v3856_v12 = vsel %vm3772_vm9, %v3855_v11, %v5642_v9  ;;  %v5683_v32 = vunpack.i.h.bf16 %v5681_v49  ;;  %v5682_v33 = vunpack.i.l.bf16 %v5681_v49 }
0x1685   :  { %v5676_v14 = vpop.permute.xlu1 %5675  ;;  %v3774_v52 = vsel %vm1489_vm3, %v3773_v42, %v5668_v13  ;;  %v3857_v50 = vsel %vm1489_vm3, %v3856_v12, %v5667_v45  ;;  %v4009_v61 = vshrl.u32 %v4008_v6, 7  ;;  %v4090_v49 = vand.u32 127, %v4008_v6 }
0x1686   :  { %v5678_v27 = vunpack.i.h.bf16 %v5676_v14  ;;  %v5677_v28 = vunpack.i.l.bf16 %v5676_v14 }
0x1687   :  { %v5691_v43 = vpop.permute.xlu0 %5690  ;;  %v4010_v51 = vsub.s32 0, %v4009_v61  ;;  %v4014_v8 = vsub.s32 1, %v4009_v61  ;;  %v4091_v13 = vadd.s32 128, %v4090_v49  ;;  %vm4092_vm1 = vcmp.lt.s32.totalorder %v4090_v49, 100 }
0x1688   :  { %v3776_v29 = vsel %vm3775_vm10, %v3774_v52, %v5678_v27  ;;  %v3858_v31 = vsel %vm3775_vm10, %v3857_v50, %v5677_v28  ;;  %v5693_v23 = vunpack.i.h.bf16 %v5691_v43  ;;  %v5692_v24 = vunpack.i.l.bf16 %v5691_v43 }
0x1689   :  { %v5686_v35 = vpop.permute.xlu1 %5685  ;;  %v3778_v39 = vsel %vm3777_vm11, %v3776_v29, %v5683_v32  ;;  %v3859_v18 = vsel %vm3777_vm11, %v3858_v31, %v5682_v33  ;;  %v4011_v53 = vrot.slane %v4006_v7, %v4010_v51  ;;  %v4015_v2 = vrot.slane %v4006_v7, %v4014_v8 }
0x168a   :  { %v5688_v17 = vunpack.i.h.bf16 %v5686_v35  ;;  %v5687_v37 = vunpack.i.l.bf16 %v5686_v35  ;;  %vm4095_vm2 = vcmp.lt.s32.totalorder %v4091_v13, 200 }
0x168c   :  { %v3780_v22 = vsel %vm3779_vm12, %v3778_v39, %v5688_v17  ;;  %v3860_v46 = vsel %vm3779_vm12, %v3859_v18, %v5687_v37 }
0x168d   :  { %v3782_v38 = vsel %vm3781_vm13, %v3780_v22, %v5663_v15  ;;  %v5696_v41 = vpop.permute.xlu1 %5695  ;;  %v3861_v26 = vsel %vm3781_vm13, %v3860_v46, %v5662_v0 }
0x168e   :  { %v5698_v25 = vunpack.i.h.bf16 %v5696_v41  ;;  %v5697_v55 = vunpack.i.l.bf16 %v5696_v41  ;;  %v3862_v58 = vsel %vm3783_vm14, %v3861_v26, %v5672_v21  ;;  %v3784_v36 = vsel %vm3783_vm14, %v3782_v38, %v5673_v20 }
0x168f   :  { %v3863_v56 = vsel %vm3785_vm15, %v3862_v58, %v5692_v24  ;;  %v3786_v44 = vsel %vm3785_vm15, %v3784_v36, %v5693_v23 }
0x1690   :  { %v3864_v60 = vsel %vm3787_vm0, %v3863_v56, %v5697_v55  ;;  %v3788_v62 = vsel %vm3787_vm0, %v3786_v44, %v5698_v25 }
0x1691   :  { %3968 = vmatprep.mubr.f32.mxu0 %v3864_v60 }
0x1692   :  { %3969 = vmatmul.mubr.f32.vlgmr.msra.gmra.mrb[56].mxu0 %v3788_v62 }
0x1765   :  { %v4648_v4 = vpop.f32.mrb[56].mxu0 }
0x1766   :  { %v4649_v59 = vpop.f32.mrb[57].mxu0 }
0x1767   :  { %v4650_v5 = vadd.f32 %v4649_v59, %v4648_v4 }
0x1769   :  { %v3971_v16 = vadd.f32 %v4650_v5, %v4246_v57 }
0x176b   :  { %4083 = vmatmul.mubr.f32.vlgmr.msra.gmra.mrb[46].mxu1 %v3971_v16 }
0x183e   :  { %v4084_v34 = vpop.f32.mrb[46].mxu1 }
0x183f   :  { %v4085_v9 = vadd.f32 %v4084_v34, %v4011_v53  ;;  %v4086_v10 = vpop.f32.mrb[47].mxu1 }
0x1840   :  { %v4087_v63 = vadd.f32 %v4086_v10, %v4015_v2 }
0x1841   :  { %v4096_v47 = vmul.f32 0.5, %v4085_v9 }
0x1842   :  { %v4097_v11 = vmul.f32 0.5, %v4087_v63 }
0x1843   :  { %v4098_v42 = vmul.f32 1.442695, %v4096_v47 }
0x1844   :  { %v4100_v12 = vmul.f32 1.442695, %v4097_v11 }
0x1845   :  { %5727 = vpow2.f32 %v4098_v42 }
0x1846   :  { %5729 = vpow2.f32 %v4100_v12 }
0x184f   :  { %v5728_v45 = vpop.eup %5727 }
0x1850   :  { %v5730_v14 = vpop.eup %5729  ;;  %v4104_v27 = vsel %vm4092_vm1, %v4085_v9, %v5728_v45 }
0x1851   :  { %v4103_v28 = vsel %vm4095_vm2, %v5730_v14, 0.0 }
0x1852   :  { %v4108_v52 = vcombine.low %v4104_v27, %v4103_v28 }
0x1854   :  { %4247 = vst.sshfl [vmem:[%s6434_s6] sm:$0x33 pattern:$0x76325410] %v4108_v52 }
0x1855   :  { %4122 = vsyncpa [#allocation3], 1 }
0x1856   :  { %4123 = vsyncpa [#allocation5], 1 }
0x1857   :  { %4124 = vsyncpa [#allocation8], 1 }

</bundles_post_ra>
